<compile_context>
chip_gen: v7x
topology: tpu7x:2x2x1
jax: 0.10.0
libtpu: 0.0.40
codegen_flags: <defaults>
</compile_context>

<pallas_src>
import numpy as np
import jax
import jax.numpy as jnp
from jax.experimental import pallas as pl
from jax.experimental.pallas import tpu as pltpu

NEG = -1e30   # max-pool "outside" sentinel: finite so 0 * NEG == 0 inside the
              # selection matmuls; safe because BatchNorm outputs are O(1).
EPS = 1e-5


# ----------------------------------------------------------------------------
# Host-side, one-time parameter preparation (pure numpy).
# ----------------------------------------------------------------------------
def _band_matrix(w, s):
    """w: (5,5,Cin,Cout) -> band (5, (s+4)*Cin, s*Cout) so that
       conv(y, x, co) = sum_dy  xp_row[y+dy, :] @ band[dy]   at col x*Cout+co."""
    _, _, cin, cout = w.shape
    band = np.zeros((5, (s + 4) * cin, s * cout), np.float32)
    for dy in range(5):
        for dx in range(5):
            for x in range(s):
                band[dy, (x + dx) * cin:(x + dx + 1) * cin,
                     x * cout:(x + 1) * cout] = w[dy, dx]
    return band


def _group_matrices(s, cout):
    """G: (s*Cout, Cout) sums the W groups per channel; G.T tiles (1,C)->(1,W*C)."""
    g = np.tile(np.eye(cout, dtype=np.float32), (s, 1))
    return g, np.ascontiguousarray(g.T)


def _row_select(h_in, pad_next):
    """Select dense-max rows 2i; if pad_next, also insert 2 zero pad rows."""
    h_out = h_in // 2
    off = 2 if pad_next else 0
    rs = np.zeros((h_out + 2 * off, h_in), np.float32)
    for i in range(h_out):
        rs[i + off, 2 * i] = 1.0
    return rs


def _col_select(w_in, cout, pad_next):
    """Select dense-max lane groups 2j; if pad_next, insert 2 zero pad groups."""
    w_out = w_in // 2
    off = 2 if pad_next else 0
    cs = np.zeros((w_in * cout, (w_out + 2 * off) * cout), np.float32)
    for j in range(w_out):
        for c in range(cout):
            cs[2 * j * cout + c, (j + off) * cout + c] = 1.0
    return cs


def _fc_reorder(fc_w, h_out, w_out, cout):
    """fc_w: (Cout*Ho*Wo, n_cls) in torch NCHW flatten order (c,h,w) ->
       (Ho, Wo*Cout, n_cls), matching the kernel's (h, w*C + c) layout."""
    n_cls = fc_w.shape[1]
    r = np.zeros((h_out, w_out * cout, n_cls), np.float32)
    for c in range(cout):
        for h in range(h_out):
            for w in range(w_out):
                r[h, w * cout + c, :] = fc_w[c * h_out * w_out + h * w_out + w, :]
    return r


def prepare_params(convs, fc_w, fc_b, cfgs):
    """Returns the flat tuple of kernel inputs (everything after x)."""
    args = []
    for (w, b, gamma, beta), cfg in zip(convs, cfgs):
        w = np.asarray(w, np.float32)
        b = np.asarray(b, np.float32).reshape(-1)
        s, c = cfg["W"], cfg["Cout"]
        g, gt = _group_matrices(s, c)
        args += [
            _band_matrix(w, s),                       # (5, (W+4)*Cin, W*Cout)
            np.tile(b, s).reshape(1, s * c),          # bias tiled to lane layout
            np.asarray(gamma, np.float32).reshape(1, c),
            np.asarray(beta, np.float32).reshape(1, c),
            g, gt,                                    # channel grouping / tiling
            _row_select(cfg["H"], cfg["pad_next"]),   # pool row decimate (+pad)
            _col_select(s, c, cfg["pad_next"]),       # pool col decimate (+pad)
        ]
    last = cfgs[-1]
    args += [
        _fc_reorder(np.asarray(fc_w, np.float32),
                    last["H"] // 2, last["W"] // 2, last["Cout"]),
        np.asarray(fc_b, np.float32).reshape(1, -1),
    ]
    return tuple(jnp.asarray(a) for a in args)


# ----------------------------------------------------------------------------
# The fused kernel.
# ----------------------------------------------------------------------------
def _make_kernel(n_batch, cfgs):
    n_layers = len(cfgs)

    def kernel(*refs):
        x_ref = refs[0]
        layer_refs = [refs[1 + 8 * li:1 + 8 * (li + 1)] for li in range(n_layers)]
        fcw_ref = refs[1 + 8 * n_layers]
        fcb_ref = refs[2 + 8 * n_layers]
        out_ref = refs[3 + 8 * n_layers]
        y_scr = refs[4 + 8 * n_layers]        # (N, H1, W1*C1) VMEM scratch

        # Per-image activations, layout (H+4, (W+4)*Cin), already zero padded.
        acts = [x_ref[i] for i in range(n_batch)]

        for cfg, lrefs in zip(cfgs, layer_refs):
            (band_ref, bias_ref, gamma_ref, beta_ref,
             g_ref, gt_ref, rs_ref, cs_ref) = lrefs
            h, w, c = cfg["H"], cfg["W"], cfg["Cout"]
            wc = w * c

            # ---- conv (5 banded MXU matmuls, K >= 96) + bias + ReLU --------
            bias = bias_ref[...]
            s1 = jnp.zeros((1, wc), jnp.float32)
            s2 = jnp.zeros((1, wc), jnp.float32)
            for i in range(n_batch):
                xp = acts[i]
                acc = jnp.zeros((h, wc), jnp.float32)
                for dy in range(5):
                    acc = acc + jnp.dot(xp[dy:dy + h, :], band_ref[dy],
                                        preferred_element_type=jnp.float32)
                y = jnp.maximum(acc + bias, 0.0)
                y_scr[i, 0:h, 0:wc] = y
                s1 = s1 + jnp.sum(y, axis=0, keepdims=True)
                s2 = s2 + jnp.sum(y * y, axis=0, keepdims=True)

            # ---- BatchNorm: single-pass stats, per-channel affine ----------
            cnt = float(n_batch * h * w)
            mean = jnp.dot(s1, g_ref[...], preferred_element_type=jnp.float32) / cnt
            ex2 = jnp.dot(s2, g_ref[...], preferred_element_type=jnp.float32) / cnt
            var = ex2 - mean * mean
            inv = jax.lax.rsqrt(var + EPS)
            scale = gamma_ref[...] * inv                      # (1, C)
            shift = beta_ref[...] - mean * scale              # (1, C)
            scale_wc = jnp.dot(scale, gt_ref[...],
                               preferred_element_type=jnp.float32)   # (1, W*C)
            shift_wc = jnp.dot(shift, gt_ref[...],
                               preferred_element_type=jnp.float32)

            # ---- BN affine + 3x3/s2/p1 max pool (+ zero pad for next conv) --
            rs = rs_ref[...]
            cs = cs_ref[...]
            hr = rs.shape[0]
            neg_row = jnp.full((1, wc), NEG, jnp.float32)
            neg_col = jnp.full((hr, c), NEG, jnp.float32)
            new_acts = []
            for i in range(n_batch):
                z = y_scr[i, 0:h, 0:wc] * scale_wc + shift_wc
                # dense 3-tap max over rows (-inf edges)
                up = jnp.concatenate([neg_row, z[0:h - 1, :]], axis=0)
                dn = jnp.concatenate([z[1:h, :], neg_row], axis=0)
                mr = jnp.maximum(z, jnp.maximum(up, dn))
                # decimate rows by 2 (+ insert zero pad rows) on the MXU
                mr = jnp.dot(rs, mr, preferred_element_type=jnp.float32)
                # dense 3-tap max over W groups (lane shifts of +-C)
                lf = jnp.concatenate([neg_col, mr[:, 0:wc - c]], axis=1)
                rt = jnp.concatenate([mr[:, c:wc], neg_col], axis=1)
                mc = jnp.maximum(mr, jnp.maximum(lf, rt))
                # decimate columns by 2 (+ insert zero pad groups) on the MXU
                new_acts.append(jnp.dot(mc, cs,
                                        preferred_element_type=jnp.float32))
            acts = new_acts

        # ---- fused fully-connected head (flatten order folded into fcw) ----
        fcb = fcb_ref[...]
        h_last = cfgs[-1]["H"] // 2
        for i in range(n_batch):
            logits = fcb
            for hh in range(h_last):
                logits = logits + jnp.dot(acts[i][hh:hh + 1, :], fcw_ref[hh],
                                          preferred_element_type=jnp.float32)
            out_ref[i:i + 1, :] = logits

    return kernel


def make_forward_fn(cfgs, n_cls):
    c0 = cfgs[0]

    def forward(x_nchw, prepared):
        n = x_nchw.shape[0]
        # NCHW -> NHWC, zero pad 2, collapse (W, C) into the lane axis.
        xh = jnp.transpose(x_nchw, (0, 2, 3, 1))
        xp = jnp.pad(xh, ((0, 0), (2, 2), (2, 2), (0, 0)))
        xp = xp.reshape(n, xp.shape[1], xp.shape[2] * xp.shape[3])
        kernel = _make_kernel(n, cfgs)
        return pl.pallas_call(
            kernel,
            out_shape=jax.ShapeDtypeStruct((n, n_cls), jnp.float32),
            scratch_shapes=[
                pltpu.VMEM((n, c0["H"], c0["W"] * c0["Cout"]), jnp.float32)],
        )(xp, *prepared)

    return jax.jit(forward)


# ----------------------------------------------------------------------------
# Pure-JAX reference (correctness check for the Pallas path).
# ----------------------------------------------------------------------------
def reference_forward(x_nchw, convs, fc_w, fc_b):
    x = jnp.transpose(x_nchw, (0, 2, 3, 1))
    for (w, b, g, beta) in convs:
        y = jax.lax.conv_general_dilated(
            x, w, window_strides=(1, 1), padding=((2, 2), (2, 2)),
            dimension_numbers=("NHWC", "HWIO", "NHWC"))
        y = y + b.reshape(1, 1, 1, -1)
        y = jnp.maximum(y, 0.0)
        mean = jnp.mean(y, axis=(0, 1, 2), keepdims=True)
        var = jnp.mean((y - mean) ** 2, axis=(0, 1, 2), keepdims=True)
        y = ((y - mean) / jnp.sqrt(var + EPS)) * g.reshape(1, 1, 1, -1) \
            + beta.reshape(1, 1, 1, -1)
        x = jax.lax.reduce_window(
            y, -jnp.inf, jax.lax.max,
            (1, 3, 3, 1), (1, 2, 2, 1), ((0, 0), (1, 1), (1, 1), (0, 0)))
    feat = jnp.transpose(x, (0, 3, 1, 2)).reshape(x.shape[0], -1)
    return feat @ fc_w + fc_b


if __name__ == "__main__":
    # Spatial must be 32 so three (3,2,1) max-pools end at 4x4 = fc1's input.
    N, C_IN, H, W = 2, 3, 32, 32
    U1, U2, U3 = 8, 8, 8
    N_CLS = 10

    keys = jax.random.split(jax.random.PRNGKey(0), 8)
    x = jax.random.normal(keys[0], (N, C_IN, H, W), jnp.float32)

    def conv_params(k, cin, cout):
        k1, k2 = jax.random.split(k)
        w = 0.1 * jax.random.normal(k1, (5, 5, cin, cout), jnp.float32)  # HWIO
        b = 0.1 * jax.random.normal(k2, (cout,), jnp.float32)
        gamma = jnp.ones((cout,), jnp.float32)     # BatchNorm default weight
        beta = jnp.zeros((cout,), jnp.float32)     # BatchNorm default bias
        return (w, b, gamma, beta)

    convs = [
        conv_params(keys[1], C_IN, U1),
        conv_params(keys[2], U1, U2),
        conv_params(keys[3], U2, U3),
    ]
    fc_w = 0.1 * jax.random.normal(keys[4], (U3 * 4 * 4, N_CLS), jnp.float32)
    fc_b = 0.1 * jax.random.normal(keys[5], (1, N_CLS), jnp.float32)

    cfgs = [
        dict(H=32, W=32, Cin=C_IN, Cout=U1, pad_next=True),
        dict(H=16, W=16, Cin=U1, Cout=U2, pad_next=True),
        dict(H=8, W=8, Cin=U2, Cout=U3, pad_next=False),
    ]
    prepared = prepare_params(convs, fc_w, fc_b, cfgs)
    fwd = make_forward_fn(cfgs, N_CLS)

    out = jax.block_until_ready(fwd(x, prepared))
    assert out.shape == (N, N_CLS)

    ref = reference_forward(x, convs, fc_w, fc_b)
    np.testing.assert_allclose(np.asarray(out), np.asarray(ref),
                               rtol=1e-2, atol=1e-2)
    print("KERNEL_OK")
</pallas_src>

<mosaic_0001>
module attributes {stable_mosaic.version = 11 : i64} {
  func.func @kernel(%arg0: memref<2x36x108xf32, #tpu.memory_space<vmem>>, %arg1: memref<5x108x256xf32, #tpu.memory_space<vmem>>, %arg2: memref<1x256xf32, #tpu.memory_space<vmem>>, %arg3: memref<1x8xf32, #tpu.memory_space<vmem>>, %arg4: memref<1x8xf32, #tpu.memory_space<vmem>>, %arg5: memref<256x8xf32, #tpu.memory_space<vmem>>, %arg6: memref<8x256xf32, #tpu.memory_space<vmem>>, %arg7: memref<20x32xf32, #tpu.memory_space<vmem>>, %arg8: memref<256x160xf32, #tpu.memory_space<vmem>>, %arg9: memref<5x160x128xf32, #tpu.memory_space<vmem>>, %arg10: memref<1x128xf32, #tpu.memory_space<vmem>>, %arg11: memref<1x8xf32, #tpu.memory_space<vmem>>, %arg12: memref<1x8xf32, #tpu.memory_space<vmem>>, %arg13: memref<128x8xf32, #tpu.memory_space<vmem>>, %arg14: memref<8x128xf32, #tpu.memory_space<vmem>>, %arg15: memref<12x16xf32, #tpu.memory_space<vmem>>, %arg16: memref<128x96xf32, #tpu.memory_space<vmem>>, %arg17: memref<5x96x64xf32, #tpu.memory_space<vmem>>, %arg18: memref<1x64xf32, #tpu.memory_space<vmem>>, %arg19: memref<1x8xf32, #tpu.memory_space<vmem>>, %arg20: memref<1x8xf32, #tpu.memory_space<vmem>>, %arg21: memref<64x8xf32, #tpu.memory_space<vmem>>, %arg22: memref<8x64xf32, #tpu.memory_space<vmem>>, %arg23: memref<4x8xf32, #tpu.memory_space<vmem>>, %arg24: memref<64x32xf32, #tpu.memory_space<vmem>>, %arg25: memref<4x32x10xf32, #tpu.memory_space<vmem>>, %arg26: memref<1x10xf32, #tpu.memory_space<vmem>>, %arg27: memref<2x10xf32, #tpu.memory_space<vmem>>, %arg28: memref<2x32x256xf32, #tpu.memory_space<vmem>>) attributes {dimension_semantics = [], scalar_prefetch = 0 : i64, scratch_operands = 1 : i64, tpu.core_type = #tpu.core_type<tc>} {
    %c0 = arith.constant 0 : index
    %c0_0 = arith.constant 0 : index
    %c0_1 = arith.constant 0 : index
    %0 = vector.load %arg0[%c0, %c0_0, %c0_1] : memref<2x36x108xf32, #tpu.memory_space<vmem>>, vector<1x36x108xf32>
    %1 = vector.shape_cast %0 : vector<1x36x108xf32> to vector<36x108xf32>
    %c1 = arith.constant 1 : index
    %c0_2 = arith.constant 0 : index
    %c0_3 = arith.constant 0 : index
    %2 = vector.load %arg0[%c1, %c0_2, %c0_3] : memref<2x36x108xf32, #tpu.memory_space<vmem>>, vector<1x36x108xf32>
    %3 = vector.shape_cast %2 : vector<1x36x108xf32> to vector<36x108xf32>
    %c0_4 = arith.constant 0 : index
    %c0_5 = arith.constant 0 : index
    %4 = vector.load %arg2[%c0_4, %c0_5] : memref<1x256xf32, #tpu.memory_space<vmem>>, vector<1x256xf32>
    %cst = arith.constant 0.000000e+00 : f32
    %5 = vector.broadcast %cst : f32 to vector<1x256xf32>
    %cst_6 = arith.constant 0.000000e+00 : f32
    %6 = vector.broadcast %cst_6 : f32 to vector<1x256xf32>
    %cst_7 = arith.constant 0.000000e+00 : f32
    %7 = vector.broadcast %cst_7 : f32 to vector<32x256xf32>
    %8 = vector.extract_strided_slice %1 {offsets = [0, 0], sizes = [32, 108], strides = [1, 1]} : vector<36x108xf32> to vector<32x108xf32>
    %c0_8 = arith.constant 0 : index
    %c0_9 = arith.constant 0 : index
    %c0_10 = arith.constant 0 : index
    %9 = vector.load %arg1[%c0_8, %c0_9, %c0_10] : memref<5x108x256xf32, #tpu.memory_space<vmem>>, vector<1x108x256xf32>
    %10 = vector.shape_cast %9 : vector<1x108x256xf32> to vector<108x256xf32>
    %cst_11 = arith.constant dense<0.000000e+00> : vector<32x256xf32>
    %11 = tpu.matmul %8, %10, %cst_11 {dimension_numbers = #tpu.dot_dimension_numbers<[1], [0], [0], [1], [0, 0, 1, 1], [], []>} : vector<32x108xf32>, vector<108x256xf32>, vector<32x256xf32> -> vector<32x256xf32>
    %12 = arith.addf %7, %11 : vector<32x256xf32>
    %13 = vector.extract_strided_slice %1 {offsets = [1, 0], sizes = [32, 108], strides = [1, 1]} : vector<36x108xf32> to vector<32x108xf32>
    %c1_12 = arith.constant 1 : index
    %c0_13 = arith.constant 0 : index
    %c0_14 = arith.constant 0 : index
    %14 = vector.load %arg1[%c1_12, %c0_13, %c0_14] : memref<5x108x256xf32, #tpu.memory_space<vmem>>, vector<1x108x256xf32>
    %15 = vector.shape_cast %14 : vector<1x108x256xf32> to vector<108x256xf32>
    %cst_15 = arith.constant dense<0.000000e+00> : vector<32x256xf32>
    %16 = tpu.matmul %13, %15, %cst_15 {dimension_numbers = #tpu.dot_dimension_numbers<[1], [0], [0], [1], [0, 0, 1, 1], [], []>} : vector<32x108xf32>, vector<108x256xf32>, vector<32x256xf32> -> vector<32x256xf32>
    %17 = arith.addf %12, %16 : vector<32x256xf32>
    %18 = vector.extract_strided_slice %1 {offsets = [2, 0], sizes = [32, 108], strides = [1, 1]} : vector<36x108xf32> to vector<32x108xf32>
    %c2 = arith.constant 2 : index
    %c0_16 = arith.constant 0 : index
    %c0_17 = arith.constant 0 : index
    %19 = vector.load %arg1[%c2, %c0_16, %c0_17] : memref<5x108x256xf32, #tpu.memory_space<vmem>>, vector<1x108x256xf32>
    %20 = vector.shape_cast %19 : vector<1x108x256xf32> to vector<108x256xf32>
    %cst_18 = arith.constant dense<0.000000e+00> : vector<32x256xf32>
    %21 = tpu.matmul %18, %20, %cst_18 {dimension_numbers = #tpu.dot_dimension_numbers<[1], [0], [0], [1], [0, 0, 1, 1], [], []>} : vector<32x108xf32>, vector<108x256xf32>, vector<32x256xf32> -> vector<32x256xf32>
    %22 = arith.addf %17, %21 : vector<32x256xf32>
    %23 = vector.extract_strided_slice %1 {offsets = [3, 0], sizes = [32, 108], strides = [1, 1]} : vector<36x108xf32> to vector<32x108xf32>
    %c3 = arith.constant 3 : index
    %c0_19 = arith.constant 0 : index
    %c0_20 = arith.constant 0 : index
    %24 = vector.load %arg1[%c3, %c0_19, %c0_20] : memref<5x108x256xf32, #tpu.memory_space<vmem>>, vector<1x108x256xf32>
    %25 = vector.shape_cast %24 : vector<1x108x256xf32> to vector<108x256xf32>
    %cst_21 = arith.constant dense<0.000000e+00> : vector<32x256xf32>
    %26 = tpu.matmul %23, %25, %cst_21 {dimension_numbers = #tpu.dot_dimension_numbers<[1], [0], [0], [1], [0, 0, 1, 1], [], []>} : vector<32x108xf32>, vector<108x256xf32>, vector<32x256xf32> -> vector<32x256xf32>
    %27 = arith.addf %22, %26 : vector<32x256xf32>
    %28 = vector.extract_strided_slice %1 {offsets = [4, 0], sizes = [32, 108], strides = [1, 1]} : vector<36x108xf32> to vector<32x108xf32>
    %c4 = arith.constant 4 : index
    %c0_22 = arith.constant 0 : index
    %c0_23 = arith.constant 0 : index
    %29 = vector.load %arg1[%c4, %c0_22, %c0_23] : memref<5x108x256xf32, #tpu.memory_space<vmem>>, vector<1x108x256xf32>
    %30 = vector.shape_cast %29 : vector<1x108x256xf32> to vector<108x256xf32>
    %cst_24 = arith.constant dense<0.000000e+00> : vector<32x256xf32>
    %31 = tpu.matmul %28, %30, %cst_24 {dimension_numbers = #tpu.dot_dimension_numbers<[1], [0], [0], [1], [0, 0, 1, 1], [], []>} : vector<32x108xf32>, vector<108x256xf32>, vector<32x256xf32> -> vector<32x256xf32>
    %32 = arith.addf %27, %31 : vector<32x256xf32>
    %33 = vector.broadcast %4 : vector<1x256xf32> to vector<32x256xf32>
    %34 = arith.addf %32, %33 : vector<32x256xf32>
    %cst_25 = arith.constant 0.000000e+00 : f32
    %35 = vector.broadcast %cst_25 : f32 to vector<32x256xf32>
    %36 = arith.maximumf %34, %35 : vector<32x256xf32>
    %c0_26 = arith.constant 0 : index
    %c0_27 = arith.constant 0 : index
    %c0_28 = arith.constant 0 : index
    %37 = vector.load %arg28[%c0_26, %c0_27, %c0_28] : memref<2x32x256xf32, #tpu.memory_space<vmem>>, vector<1x32x256xf32>
    %38 = vector.shape_cast %37 : vector<1x32x256xf32> to vector<32x256xf32>
    %39 = vector.shape_cast %36 : vector<32x256xf32> to vector<1x32x256xf32>
    tpu.vector_store %arg28[%c0_26, %c0_27, %c0_28], %39 {strides = array<i32>} : memref<2x32x256xf32, #tpu.memory_space<vmem>>, vector<1x32x256xf32>,
    %cst_29 = arith.constant dense<0.000000e+00> : vector<256xf32>
    %40 = vector.multi_reduction <add>, %36, %cst_29 [0] : vector<32x256xf32> to vector<256xf32>
    %41 = vector.shape_cast %40 : vector<256xf32> to vector<1x256xf32>
    %42 = arith.addf %5, %41 : vector<1x256xf32>
    %43 = arith.mulf %36, %36 : vector<32x256xf32>
    %cst_30 = arith.constant dense<0.000000e+00> : vector<256xf32>
    %44 = vector.multi_reduction <add>, %43, %cst_30 [0] : vector<32x256xf32> to vector<256xf32>
    %45 = vector.shape_cast %44 : vector<256xf32> to vector<1x256xf32>
    %46 = arith.addf %6, %45 : vector<1x256xf32>
    %cst_31 = arith.constant 0.000000e+00 : f32
    %47 = vector.broadcast %cst_31 : f32 to vector<32x256xf32>
    %48 = vector.extract_strided_slice %3 {offsets = [0, 0], sizes = [32, 108], strides = [1, 1]} : vector<36x108xf32> to vector<32x108xf32>
    %c0_32 = arith.constant 0 : index
    %c0_33 = arith.constant 0 : index
    %c0_34 = arith.constant 0 : index
    %49 = vector.load %arg1[%c0_32, %c0_33, %c0_34] : memref<5x108x256xf32, #tpu.memory_space<vmem>>, vector<1x108x256xf32>
    %50 = vector.shape_cast %49 : vector<1x108x256xf32> to vector<108x256xf32>
    %cst_35 = arith.constant dense<0.000000e+00> : vector<32x256xf32>
    %51 = tpu.matmul %48, %50, %cst_35 {dimension_numbers = #tpu.dot_dimension_numbers<[1], [0], [0], [1], [0, 0, 1, 1], [], []>} : vector<32x108xf32>, vector<108x256xf32>, vector<32x256xf32> -> vector<32x256xf32>
    %52 = arith.addf %47, %51 : vector<32x256xf32>
    %53 = vector.extract_strided_slice %3 {offsets = [1, 0], sizes = [32, 108], strides = [1, 1]} : vector<36x108xf32> to vector<32x108xf32>
    %c1_36 = arith.constant 1 : index
    %c0_37 = arith.constant 0 : index
    %c0_38 = arith.constant 0 : index
    %54 = vector.load %arg1[%c1_36, %c0_37, %c0_38] : memref<5x108x256xf32, #tpu.memory_space<vmem>>, vector<1x108x256xf32>
    %55 = vector.shape_cast %54 : vector<1x108x256xf32> to vector<108x256xf32>
    %cst_39 = arith.constant dense<0.000000e+00> : vector<32x256xf32>
    %56 = tpu.matmul %53, %55, %cst_39 {dimension_numbers = #tpu.dot_dimension_numbers<[1], [0], [0], [1], [0, 0, 1, 1], [], []>} : vector<32x108xf32>, vector<108x256xf32>, vector<32x256xf32> -> vector<32x256xf32>
    %57 = arith.addf %52, %56 : vector<32x256xf32>
    %58 = vector.extract_strided_slice %3 {offsets = [2, 0], sizes = [32, 108], strides = [1, 1]} : vector<36x108xf32> to vector<32x108xf32>
    %c2_40 = arith.constant 2 : index
    %c0_41 = arith.constant 0 : index
    %c0_42 = arith.constant 0 : index
    %59 = vector.load %arg1[%c2_40, %c0_41, %c0_42] : memref<5x108x256xf32, #tpu.memory_space<vmem>>, vector<1x108x256xf32>
    %60 = vector.shape_cast %59 : vector<1x108x256xf32> to vector<108x256xf32>
    %cst_43 = arith.constant dense<0.000000e+00> : vector<32x256xf32>
    %61 = tpu.matmul %58, %60, %cst_43 {dimension_numbers = #tpu.dot_dimension_numbers<[1], [0], [0], [1], [0, 0, 1, 1], [], []>} : vector<32x108xf32>, vector<108x256xf32>, vector<32x256xf32> -> vector<32x256xf32>
    %62 = arith.addf %57, %61 : vector<32x256xf32>
    %63 = vector.extract_strided_slice %3 {offsets = [3, 0], sizes = [32, 108], strides = [1, 1]} : vector<36x108xf32> to vector<32x108xf32>
    %c3_44 = arith.constant 3 : index
    %c0_45 = arith.constant 0 : index
    %c0_46 = arith.constant 0 : index
    %64 = vector.load %arg1[%c3_44, %c0_45, %c0_46] : memref<5x108x256xf32, #tpu.memory_space<vmem>>, vector<1x108x256xf32>
    %65 = vector.shape_cast %64 : vector<1x108x256xf32> to vector<108x256xf32>
    %cst_47 = arith.constant dense<0.000000e+00> : vector<32x256xf32>
    %66 = tpu.matmul %63, %65, %cst_47 {dimension_numbers = #tpu.dot_dimension_numbers<[1], [0], [0], [1], [0, 0, 1, 1], [], []>} : vector<32x108xf32>, vector<108x256xf32>, vector<32x256xf32> -> vector<32x256xf32>
    %67 = arith.addf %62, %66 : vector<32x256xf32>
    %68 = vector.extract_strided_slice %3 {offsets = [4, 0], sizes = [32, 108], strides = [1, 1]} : vector<36x108xf32> to vector<32x108xf32>
    %c4_48 = arith.constant 4 : index
    %c0_49 = arith.constant 0 : index
    %c0_50 = arith.constant 0 : index
    %69 = vector.load %arg1[%c4_48, %c0_49, %c0_50] : memref<5x108x256xf32, #tpu.memory_space<vmem>>, vector<1x108x256xf32>
    %70 = vector.shape_cast %69 : vector<1x108x256xf32> to vector<108x256xf32>
    %cst_51 = arith.constant dense<0.000000e+00> : vector<32x256xf32>
    %71 = tpu.matmul %68, %70, %cst_51 {dimension_numbers = #tpu.dot_dimension_numbers<[1], [0], [0], [1], [0, 0, 1, 1], [], []>} : vector<32x108xf32>, vector<108x256xf32>, vector<32x256xf32> -> vector<32x256xf32>
    %72 = arith.addf %67, %71 : vector<32x256xf32>
    %73 = vector.broadcast %4 : vector<1x256xf32> to vector<32x256xf32>
    %74 = arith.addf %72, %73 : vector<32x256xf32>
    %cst_52 = arith.constant 0.000000e+00 : f32
    %75 = vector.broadcast %cst_52 : f32 to vector<32x256xf32>
    %76 = arith.maximumf %74, %75 : vector<32x256xf32>
    %c1_53 = arith.constant 1 : index
    %c0_54 = arith.constant 0 : index
    %c0_55 = arith.constant 0 : index
    %77 = vector.load %arg28[%c1_53, %c0_54, %c0_55] : memref<2x32x256xf32, #tpu.memory_space<vmem>>, vector<1x32x256xf32>
    %78 = vector.shape_cast %77 : vector<1x32x256xf32> to vector<32x256xf32>
    %79 = vector.shape_cast %76 : vector<32x256xf32> to vector<1x32x256xf32>
    tpu.vector_store %arg28[%c1_53, %c0_54, %c0_55], %79 {strides = array<i32>} : memref<2x32x256xf32, #tpu.memory_space<vmem>>, vector<1x32x256xf32>,
    %cst_56 = arith.constant dense<0.000000e+00> : vector<256xf32>
    %80 = vector.multi_reduction <add>, %76, %cst_56 [0] : vector<32x256xf32> to vector<256xf32>
    %81 = vector.shape_cast %80 : vector<256xf32> to vector<1x256xf32>
    %82 = arith.addf %42, %81 : vector<1x256xf32>
    %83 = arith.mulf %76, %76 : vector<32x256xf32>
    %cst_57 = arith.constant dense<0.000000e+00> : vector<256xf32>
    %84 = vector.multi_reduction <add>, %83, %cst_57 [0] : vector<32x256xf32> to vector<256xf32>
    %85 = vector.shape_cast %84 : vector<256xf32> to vector<1x256xf32>
    %86 = arith.addf %46, %85 : vector<1x256xf32>
    %c0_58 = arith.constant 0 : index
    %c0_59 = arith.constant 0 : index
    %87 = vector.load %arg5[%c0_58, %c0_59] : memref<256x8xf32, #tpu.memory_space<vmem>>, vector<256x8xf32>
    %cst_60 = arith.constant dense<0.000000e+00> : vector<1x8xf32>
    %88 = tpu.matmul %82, %87, %cst_60 {dimension_numbers = #tpu.dot_dimension_numbers<[1], [0], [0], [1], [0, 0, 1, 1], [], []>} : vector<1x256xf32>, vector<256x8xf32>, vector<1x8xf32> -> vector<1x8xf32>
    %cst_61 = arith.constant 2.048000e+03 : f32
    %89 = vector.broadcast %cst_61 : f32 to vector<1x8xf32>
    %90 = arith.divf %88, %89 : vector<1x8xf32>
    %c0_62 = arith.constant 0 : index
    %c0_63 = arith.constant 0 : index
    %91 = vector.load %arg5[%c0_62, %c0_63] : memref<256x8xf32, #tpu.memory_space<vmem>>, vector<256x8xf32>
    %cst_64 = arith.constant dense<0.000000e+00> : vector<1x8xf32>
    %92 = tpu.matmul %86, %91, %cst_64 {dimension_numbers = #tpu.dot_dimension_numbers<[1], [0], [0], [1], [0, 0, 1, 1], [], []>} : vector<1x256xf32>, vector<256x8xf32>, vector<1x8xf32> -> vector<1x8xf32>
    %cst_65 = arith.constant 2.048000e+03 : f32
    %93 = vector.broadcast %cst_65 : f32 to vector<1x8xf32>
    %94 = arith.divf %92, %93 : vector<1x8xf32>
    %95 = arith.mulf %90, %90 : vector<1x8xf32>
    %96 = arith.subf %94, %95 : vector<1x8xf32>
    %cst_66 = arith.constant 9.99999974E-6 : f32
    %97 = vector.broadcast %cst_66 : f32 to vector<1x8xf32>
    %98 = arith.addf %96, %97 : vector<1x8xf32>
    %99 = math.rsqrt %98 : vector<1x8xf32>
    %c0_67 = arith.constant 0 : index
    %c0_68 = arith.constant 0 : index
    %100 = vector.load %arg3[%c0_67, %c0_68] : memref<1x8xf32, #tpu.memory_space<vmem>>, vector<1x8xf32>
    %101 = arith.mulf %100, %99 : vector<1x8xf32>
    %c0_69 = arith.constant 0 : index
    %c0_70 = arith.constant 0 : index
    %102 = vector.load %arg4[%c0_69, %c0_70] : memref<1x8xf32, #tpu.memory_space<vmem>>, vector<1x8xf32>
    %103 = arith.mulf %90, %101 : vector<1x8xf32>
    %104 = arith.subf %102, %103 : vector<1x8xf32>
    %c0_71 = arith.constant 0 : index
    %c0_72 = arith.constant 0 : index
    %105 = vector.load %arg6[%c0_71, %c0_72] : memref<8x256xf32, #tpu.memory_space<vmem>>, vector<8x256xf32>
    %cst_73 = arith.constant dense<0.000000e+00> : vector<1x256xf32>
    %106 = tpu.matmul %101, %105, %cst_73 {dimension_numbers = #tpu.dot_dimension_numbers<[1], [0], [0], [1], [0, 0, 1, 1], [], []>} : vector<1x8xf32>, vector<8x256xf32>, vector<1x256xf32> -> vector<1x256xf32>
    %c0_74 = arith.constant 0 : index
    %c0_75 = arith.constant 0 : index
    %107 = vector.load %arg6[%c0_74, %c0_75] : memref<8x256xf32, #tpu.memory_space<vmem>>, vector<8x256xf32>
    %cst_76 = arith.constant dense<0.000000e+00> : vector<1x256xf32>
    %108 = tpu.matmul %104, %107, %cst_76 {dimension_numbers = #tpu.dot_dimension_numbers<[1], [0], [0], [1], [0, 0, 1, 1], [], []>} : vector<1x8xf32>, vector<8x256xf32>, vector<1x256xf32> -> vector<1x256xf32>
    %c0_77 = arith.constant 0 : index
    %c0_78 = arith.constant 0 : index
    %109 = vector.load %arg7[%c0_77, %c0_78] : memref<20x32xf32, #tpu.memory_space<vmem>>, vector<20x32xf32>
    %c0_79 = arith.constant 0 : index
    %c0_80 = arith.constant 0 : index
    %110 = vector.load %arg8[%c0_79, %c0_80] : memref<256x160xf32, #tpu.memory_space<vmem>>, vector<256x160xf32>
    %cst_81 = arith.constant -1.000000e+30 : f32
    %111 = vector.broadcast %cst_81 : f32 to vector<1x256xf32>
    %cst_82 = arith.constant -1.000000e+30 : f32
    %112 = vector.broadcast %cst_82 : f32 to vector<20x8xf32>
    %c0_83 = arith.constant 0 : index
    %c0_84 = arith.constant 0 : index
    %c0_85 = arith.constant 0 : index
    %113 = vector.load %arg28[%c0_83, %c0_84, %c0_85] : memref<2x32x256xf32, #tpu.memory_space<vmem>>, vector<1x32x256xf32>
    %114 = vector.shape_cast %113 : vector<1x32x256xf32> to vector<32x256xf32>
    %115 = vector.broadcast %106 : vector<1x256xf32> to vector<32x256xf32>
    %116 = arith.mulf %114, %115 : vector<32x256xf32>
    %117 = vector.broadcast %108 : vector<1x256xf32> to vector<32x256xf32>
    %118 = arith.addf %116, %117 : vector<32x256xf32>
    %119 = vector.extract_strided_slice %118 {offsets = [0, 0], sizes = [31, 256], strides = [1, 1]} : vector<32x256xf32> to vector<31x256xf32>
    %120 = tpu.concatenate %111, %119 in 0 : vector<1x256xf32>, vector<31x256xf32> -> vector<32x256xf32>
    %121 = vector.extract_strided_slice %118 {offsets = [1, 0], sizes = [31, 256], strides = [1, 1]} : vector<32x256xf32> to vector<31x256xf32>
    %122 = tpu.concatenate %121, %111 in 0 : vector<31x256xf32>, vector<1x256xf32> -> vector<32x256xf32>
    %123 = arith.maximumf %120, %122 : vector<32x256xf32>
    %124 = arith.maximumf %118, %123 : vector<32x256xf32>
    %cst_86 = arith.constant dense<0.000000e+00> : vector<20x256xf32>
    %125 = tpu.matmul %109, %124, %cst_86 {dimension_numbers = #tpu.dot_dimension_numbers<[1], [0], [0], [1], [0, 0, 1, 1], [], []>} : vector<20x32xf32>, vector<32x256xf32>, vector<20x256xf32> -> vector<20x256xf32>
    %126 = vector.extract_strided_slice %125 {offsets = [0, 0], sizes = [20, 248], strides = [1, 1]} : vector<20x256xf32> to vector<20x248xf32>
    %127 = tpu.concatenate %112, %126 in 1 : vector<20x8xf32>, vector<20x248xf32> -> vector<20x256xf32>
    %128 = vector.extract_strided_slice %125 {offsets = [0, 8], sizes = [20, 248], strides = [1, 1]} : vector<20x256xf32> to vector<20x248xf32>
    %129 = tpu.concatenate %128, %112 in 1 : vector<20x248xf32>, vector<20x8xf32> -> vector<20x256xf32>
    %130 = arith.maximumf %127, %129 : vector<20x256xf32>
    %131 = arith.maximumf %125, %130 : vector<20x256xf32>
    %cst_87 = arith.constant dense<0.000000e+00> : vector<20x160xf32>
    %132 = tpu.matmul %131, %110, %cst_87 {dimension_numbers = #tpu.dot_dimension_numbers<[1], [0], [0], [1], [0, 0, 1, 1], [], []>} : vector<20x256xf32>, vector<256x160xf32>, vector<20x160xf32> -> vector<20x160xf32>
    %c1_88 = arith.constant 1 : index
    %c0_89 = arith.constant 0 : index
    %c0_90 = arith.constant 0 : index
    %133 = vector.load %arg28[%c1_88, %c0_89, %c0_90] : memref<2x32x256xf32, #tpu.memory_space<vmem>>, vector<1x32x256xf32>
    %134 = vector.shape_cast %133 : vector<1x32x256xf32> to vector<32x256xf32>
    %135 = vector.broadcast %106 : vector<1x256xf32> to vector<32x256xf32>
    %136 = arith.mulf %134, %135 : vector<32x256xf32>
    %137 = vector.broadcast %108 : vector<1x256xf32> to vector<32x256xf32>
    %138 = arith.addf %136, %137 : vector<32x256xf32>
    %139 = vector.extract_strided_slice %138 {offsets = [0, 0], sizes = [31, 256], strides = [1, 1]} : vector<32x256xf32> to vector<31x256xf32>
    %140 = tpu.concatenate %111, %139 in 0 : vector<1x256xf32>, vector<31x256xf32> -> vector<32x256xf32>
    %141 = vector.extract_strided_slice %138 {offsets = [1, 0], sizes = [31, 256], strides = [1, 1]} : vector<32x256xf32> to vector<31x256xf32>
    %142 = tpu.concatenate %141, %111 in 0 : vector<31x256xf32>, vector<1x256xf32> -> vector<32x256xf32>
    %143 = arith.maximumf %140, %142 : vector<32x256xf32>
    %144 = arith.maximumf %138, %143 : vector<32x256xf32>
    %cst_91 = arith.constant dense<0.000000e+00> : vector<20x256xf32>
    %145 = tpu.matmul %109, %144, %cst_91 {dimension_numbers = #tpu.dot_dimension_numbers<[1], [0], [0], [1], [0, 0, 1, 1], [], []>} : vector<20x32xf32>, vector<32x256xf32>, vector<20x256xf32> -> vector<20x256xf32>
    %146 = vector.extract_strided_slice %145 {offsets = [0, 0], sizes = [20, 248], strides = [1, 1]} : vector<20x256xf32> to vector<20x248xf32>
    %147 = tpu.concatenate %112, %146 in 1 : vector<20x8xf32>, vector<20x248xf32> -> vector<20x256xf32>
    %148 = vector.extract_strided_slice %145 {offsets = [0, 8], sizes = [20, 248], strides = [1, 1]} : vector<20x256xf32> to vector<20x248xf32>
    %149 = tpu.concatenate %148, %112 in 1 : vector<20x248xf32>, vector<20x8xf32> -> vector<20x256xf32>
    %150 = arith.maximumf %147, %149 : vector<20x256xf32>
    %151 = arith.maximumf %145, %150 : vector<20x256xf32>
    %cst_92 = arith.constant dense<0.000000e+00> : vector<20x160xf32>
    %152 = tpu.matmul %151, %110, %cst_92 {dimension_numbers = #tpu.dot_dimension_numbers<[1], [0], [0], [1], [0, 0, 1, 1], [], []>} : vector<20x256xf32>, vector<256x160xf32>, vector<20x160xf32> -> vector<20x160xf32>
    %c0_93 = arith.constant 0 : index
    %c0_94 = arith.constant 0 : index
    %153 = vector.load %arg10[%c0_93, %c0_94] : memref<1x128xf32, #tpu.memory_space<vmem>>, vector<1x128xf32>
    %cst_95 = arith.constant 0.000000e+00 : f32
    %154 = vector.broadcast %cst_95 : f32 to vector<1x128xf32>
    %cst_96 = arith.constant 0.000000e+00 : f32
    %155 = vector.broadcast %cst_96 : f32 to vector<1x128xf32>
    %cst_97 = arith.constant 0.000000e+00 : f32
    %156 = vector.broadcast %cst_97 : f32 to vector<16x128xf32>
    %157 = vector.extract_strided_slice %132 {offsets = [0, 0], sizes = [16, 160], strides = [1, 1]} : vector<20x160xf32> to vector<16x160xf32>
    %c0_98 = arith.constant 0 : index
    %c0_99 = arith.constant 0 : index
    %c0_100 = arith.constant 0 : index
    %158 = vector.load %arg9[%c0_98, %c0_99, %c0_100] : memref<5x160x128xf32, #tpu.memory_space<vmem>>, vector<1x160x128xf32>
    %159 = vector.shape_cast %158 : vector<1x160x128xf32> to vector<160x128xf32>
    %cst_101 = arith.constant dense<0.000000e+00> : vector<16x128xf32>
    %160 = tpu.matmul %157, %159, %cst_101 {dimension_numbers = #tpu.dot_dimension_numbers<[1], [0], [0], [1], [0, 0, 1, 1], [], []>} : vector<16x160xf32>, vector<160x128xf32>, vector<16x128xf32> -> vector<16x128xf32>
    %161 = arith.addf %156, %160 : vector<16x128xf32>
    %162 = vector.extract_strided_slice %132 {offsets = [1, 0], sizes = [16, 160], strides = [1, 1]} : vector<20x160xf32> to vector<16x160xf32>
    %c1_102 = arith.constant 1 : index
    %c0_103 = arith.constant 0 : index
    %c0_104 = arith.constant 0 : index
    %163 = vector.load %arg9[%c1_102, %c0_103, %c0_104] : memref<5x160x128xf32, #tpu.memory_space<vmem>>, vector<1x160x128xf32>
    %164 = vector.shape_cast %163 : vector<1x160x128xf32> to vector<160x128xf32>
    %cst_105 = arith.constant dense<0.000000e+00> : vector<16x128xf32>
    %165 = tpu.matmul %162, %164, %cst_105 {dimension_numbers = #tpu.dot_dimension_numbers<[1], [0], [0], [1], [0, 0, 1, 1], [], []>} : vector<16x160xf32>, vector<160x128xf32>, vector<16x128xf32> -> vector<16x128xf32>
    %166 = arith.addf %161, %165 : vector<16x128xf32>
    %167 = vector.extract_strided_slice %132 {offsets = [2, 0], sizes = [16, 160], strides = [1, 1]} : vector<20x160xf32> to vector<16x160xf32>
    %c2_106 = arith.constant 2 : index
    %c0_107 = arith.constant 0 : index
    %c0_108 = arith.constant 0 : index
    %168 = vector.load %arg9[%c2_106, %c0_107, %c0_108] : memref<5x160x128xf32, #tpu.memory_space<vmem>>, vector<1x160x128xf32>
    %169 = vector.shape_cast %168 : vector<1x160x128xf32> to vector<160x128xf32>
    %cst_109 = arith.constant dense<0.000000e+00> : vector<16x128xf32>
    %170 = tpu.matmul %167, %169, %cst_109 {dimension_numbers = #tpu.dot_dimension_numbers<[1], [0], [0], [1], [0, 0, 1, 1], [], []>} : vector<16x160xf32>, vector<160x128xf32>, vector<16x128xf32> -> vector<16x128xf32>
    %171 = arith.addf %166, %170 : vector<16x128xf32>
    %172 = vector.extract_strided_slice %132 {offsets = [3, 0], sizes = [16, 160], strides = [1, 1]} : vector<20x160xf32> to vector<16x160xf32>
    %c3_110 = arith.constant 3 : index
    %c0_111 = arith.constant 0 : index
    %c0_112 = arith.constant 0 : index
    %173 = vector.load %arg9[%c3_110, %c0_111, %c0_112] : memref<5x160x128xf32, #tpu.memory_space<vmem>>, vector<1x160x128xf32>
    %174 = vector.shape_cast %173 : vector<1x160x128xf32> to vector<160x128xf32>
    %cst_113 = arith.constant dense<0.000000e+00> : vector<16x128xf32>
    %175 = tpu.matmul %172, %174, %cst_113 {dimension_numbers = #tpu.dot_dimension_numbers<[1], [0], [0], [1], [0, 0, 1, 1], [], []>} : vector<16x160xf32>, vector<160x128xf32>, vector<16x128xf32> -> vector<16x128xf32>
    %176 = arith.addf %171, %175 : vector<16x128xf32>
    %177 = vector.extract_strided_slice %132 {offsets = [4, 0], sizes = [16, 160], strides = [1, 1]} : vector<20x160xf32> to vector<16x160xf32>
    %c4_114 = arith.constant 4 : index
    %c0_115 = arith.constant 0 : index
    %c0_116 = arith.constant 0 : index
    %178 = vector.load %arg9[%c4_114, %c0_115, %c0_116] : memref<5x160x128xf32, #tpu.memory_space<vmem>>, vector<1x160x128xf32>
    %179 = vector.shape_cast %178 : vector<1x160x128xf32> to vector<160x128xf32>
    %cst_117 = arith.constant dense<0.000000e+00> : vector<16x128xf32>
    %180 = tpu.matmul %177, %179, %cst_117 {dimension_numbers = #tpu.dot_dimension_numbers<[1], [0], [0], [1], [0, 0, 1, 1], [], []>} : vector<16x160xf32>, vector<160x128xf32>, vector<16x128xf32> -> vector<16x128xf32>
    %181 = arith.addf %176, %180 : vector<16x128xf32>
    %182 = vector.broadcast %153 : vector<1x128xf32> to vector<16x128xf32>
    %183 = arith.addf %181, %182 : vector<16x128xf32>
    %cst_118 = arith.constant 0.000000e+00 : f32
    %184 = vector.broadcast %cst_118 : f32 to vector<16x128xf32>
    %185 = arith.maximumf %183, %184 : vector<16x128xf32>
    %c0_119 = arith.constant 0 : index
    %c0_120 = arith.constant 0 : index
    %c0_121 = arith.constant 0 : index
    %186 = vector.load %arg28[%c0_119, %c0_120, %c0_121] : memref<2x32x256xf32, #tpu.memory_space<vmem>>, vector<1x16x128xf32>
    %187 = vector.shape_cast %186 : vector<1x16x128xf32> to vector<16x128xf32>
    %188 = vector.shape_cast %185 : vector<16x128xf32> to vector<1x16x128xf32>
    tpu.vector_store %arg28[%c0_119, %c0_120, %c0_121], %188 {strides = array<i32>} : memref<2x32x256xf32, #tpu.memory_space<vmem>>, vector<1x16x128xf32>,
    %cst_122 = arith.constant dense<0.000000e+00> : vector<128xf32>
    %189 = vector.multi_reduction <add>, %185, %cst_122 [0] : vector<16x128xf32> to vector<128xf32>
    %190 = vector.shape_cast %189 : vector<128xf32> to vector<1x128xf32>
    %191 = arith.addf %154, %190 : vector<1x128xf32>
    %192 = arith.mulf %185, %185 : vector<16x128xf32>
    %cst_123 = arith.constant dense<0.000000e+00> : vector<128xf32>
    %193 = vector.multi_reduction <add>, %192, %cst_123 [0] : vector<16x128xf32> to vector<128xf32>
    %194 = vector.shape_cast %193 : vector<128xf32> to vector<1x128xf32>
    %195 = arith.addf %155, %194 : vector<1x128xf32>
    %cst_124 = arith.constant 0.000000e+00 : f32
    %196 = vector.broadcast %cst_124 : f32 to vector<16x128xf32>
    %197 = vector.extract_strided_slice %152 {offsets = [0, 0], sizes = [16, 160], strides = [1, 1]} : vector<20x160xf32> to vector<16x160xf32>
    %c0_125 = arith.constant 0 : index
    %c0_126 = arith.constant 0 : index
    %c0_127 = arith.constant 0 : index
    %198 = vector.load %arg9[%c0_125, %c0_126, %c0_127] : memref<5x160x128xf32, #tpu.memory_space<vmem>>, vector<1x160x128xf32>
    %199 = vector.shape_cast %198 : vector<1x160x128xf32> to vector<160x128xf32>
    %cst_128 = arith.constant dense<0.000000e+00> : vector<16x128xf32>
    %200 = tpu.matmul %197, %199, %cst_128 {dimension_numbers = #tpu.dot_dimension_numbers<[1], [0], [0], [1], [0, 0, 1, 1], [], []>} : vector<16x160xf32>, vector<160x128xf32>, vector<16x128xf32> -> vector<16x128xf32>
    %201 = arith.addf %196, %200 : vector<16x128xf32>
    %202 = vector.extract_strided_slice %152 {offsets = [1, 0], sizes = [16, 160], strides = [1, 1]} : vector<20x160xf32> to vector<16x160xf32>
    %c1_129 = arith.constant 1 : index
    %c0_130 = arith.constant 0 : index
    %c0_131 = arith.constant 0 : index
    %203 = vector.load %arg9[%c1_129, %c0_130, %c0_131] : memref<5x160x128xf32, #tpu.memory_space<vmem>>, vector<1x160x128xf32>
    %204 = vector.shape_cast %203 : vector<1x160x128xf32> to vector<160x128xf32>
    %cst_132 = arith.constant dense<0.000000e+00> : vector<16x128xf32>
    %205 = tpu.matmul %202, %204, %cst_132 {dimension_numbers = #tpu.dot_dimension_numbers<[1], [0], [0], [1], [0, 0, 1, 1], [], []>} : vector<16x160xf32>, vector<160x128xf32>, vector<16x128xf32> -> vector<16x128xf32>
    %206 = arith.addf %201, %205 : vector<16x128xf32>
    %207 = vector.extract_strided_slice %152 {offsets = [2, 0], sizes = [16, 160], strides = [1, 1]} : vector<20x160xf32> to vector<16x160xf32>
    %c2_133 = arith.constant 2 : index
    %c0_134 = arith.constant 0 : index
    %c0_135 = arith.constant 0 : index
    %208 = vector.load %arg9[%c2_133, %c0_134, %c0_135] : memref<5x160x128xf32, #tpu.memory_space<vmem>>, vector<1x160x128xf32>
    %209 = vector.shape_cast %208 : vector<1x160x128xf32> to vector<160x128xf32>
    %cst_136 = arith.constant dense<0.000000e+00> : vector<16x128xf32>
    %210 = tpu.matmul %207, %209, %cst_136 {dimension_numbers = #tpu.dot_dimension_numbers<[1], [0], [0], [1], [0, 0, 1, 1], [], []>} : vector<16x160xf32>, vector<160x128xf32>, vector<16x128xf32> -> vector<16x128xf32>
    %211 = arith.addf %206, %210 : vector<16x128xf32>
    %212 = vector.extract_strided_slice %152 {offsets = [3, 0], sizes = [16, 160], strides = [1, 1]} : vector<20x160xf32> to vector<16x160xf32>
    %c3_137 = arith.constant 3 : index
    %c0_138 = arith.constant 0 : index
    %c0_139 = arith.constant 0 : index
    %213 = vector.load %arg9[%c3_137, %c0_138, %c0_139] : memref<5x160x128xf32, #tpu.memory_space<vmem>>, vector<1x160x128xf32>
    %214 = vector.shape_cast %213 : vector<1x160x128xf32> to vector<160x128xf32>
    %cst_140 = arith.constant dense<0.000000e+00> : vector<16x128xf32>
    %215 = tpu.matmul %212, %214, %cst_140 {dimension_numbers = #tpu.dot_dimension_numbers<[1], [0], [0], [1], [0, 0, 1, 1], [], []>} : vector<16x160xf32>, vector<160x128xf32>, vector<16x128xf32> -> vector<16x128xf32>
    %216 = arith.addf %211, %215 : vector<16x128xf32>
    %217 = vector.extract_strided_slice %152 {offsets = [4, 0], sizes = [16, 160], strides = [1, 1]} : vector<20x160xf32> to vector<16x160xf32>
    %c4_141 = arith.constant 4 : index
    %c0_142 = arith.constant 0 : index
    %c0_143 = arith.constant 0 : index
    %218 = vector.load %arg9[%c4_141, %c0_142, %c0_143] : memref<5x160x128xf32, #tpu.memory_space<vmem>>, vector<1x160x128xf32>
    %219 = vector.shape_cast %218 : vector<1x160x128xf32> to vector<160x128xf32>
    %cst_144 = arith.constant dense<0.000000e+00> : vector<16x128xf32>
    %220 = tpu.matmul %217, %219, %cst_144 {dimension_numbers = #tpu.dot_dimension_numbers<[1], [0], [0], [1], [0, 0, 1, 1], [], []>} : vector<16x160xf32>, vector<160x128xf32>, vector<16x128xf32> -> vector<16x128xf32>
    %221 = arith.addf %216, %220 : vector<16x128xf32>
    %222 = vector.broadcast %153 : vector<1x128xf32> to vector<16x128xf32>
    %223 = arith.addf %221, %222 : vector<16x128xf32>
    %cst_145 = arith.constant 0.000000e+00 : f32
    %224 = vector.broadcast %cst_145 : f32 to vector<16x128xf32>
    %225 = arith.maximumf %223, %224 : vector<16x128xf32>
    %c1_146 = arith.constant 1 : index
    %c0_147 = arith.constant 0 : index
    %c0_148 = arith.constant 0 : index
    %226 = vector.load %arg28[%c1_146, %c0_147, %c0_148] : memref<2x32x256xf32, #tpu.memory_space<vmem>>, vector<1x16x128xf32>
    %227 = vector.shape_cast %226 : vector<1x16x128xf32> to vector<16x128xf32>
    %228 = vector.shape_cast %225 : vector<16x128xf32> to vector<1x16x128xf32>
    tpu.vector_store %arg28[%c1_146, %c0_147, %c0_148], %228 {strides = array<i32>} : memref<2x32x256xf32, #tpu.memory_space<vmem>>, vector<1x16x128xf32>,
    %cst_149 = arith.constant dense<0.000000e+00> : vector<128xf32>
    %229 = vector.multi_reduction <add>, %225, %cst_149 [0] : vector<16x128xf32> to vector<128xf32>
    %230 = vector.shape_cast %229 : vector<128xf32> to vector<1x128xf32>
    %231 = arith.addf %191, %230 : vector<1x128xf32>
    %232 = arith.mulf %225, %225 : vector<16x128xf32>
    %cst_150 = arith.constant dense<0.000000e+00> : vector<128xf32>
    %233 = vector.multi_reduction <add>, %232, %cst_150 [0] : vector<16x128xf32> to vector<128xf32>
    %234 = vector.shape_cast %233 : vector<128xf32> to vector<1x128xf32>
    %235 = arith.addf %195, %234 : vector<1x128xf32>
    %c0_151 = arith.constant 0 : index
    %c0_152 = arith.constant 0 : index
    %236 = vector.load %arg13[%c0_151, %c0_152] : memref<128x8xf32, #tpu.memory_space<vmem>>, vector<128x8xf32>
    %cst_153 = arith.constant dense<0.000000e+00> : vector<1x8xf32>
    %237 = tpu.matmul %231, %236, %cst_153 {dimension_numbers = #tpu.dot_dimension_numbers<[1], [0], [0], [1], [0, 0, 1, 1], [], []>} : vector<1x128xf32>, vector<128x8xf32>, vector<1x8xf32> -> vector<1x8xf32>
    %cst_154 = arith.constant 5.120000e+02 : f32
    %238 = vector.broadcast %cst_154 : f32 to vector<1x8xf32>
    %239 = arith.divf %237, %238 : vector<1x8xf32>
    %c0_155 = arith.constant 0 : index
    %c0_156 = arith.constant 0 : index
    %240 = vector.load %arg13[%c0_155, %c0_156] : memref<128x8xf32, #tpu.memory_space<vmem>>, vector<128x8xf32>
    %cst_157 = arith.constant dense<0.000000e+00> : vector<1x8xf32>
    %241 = tpu.matmul %235, %240, %cst_157 {dimension_numbers = #tpu.dot_dimension_numbers<[1], [0], [0], [1], [0, 0, 1, 1], [], []>} : vector<1x128xf32>, vector<128x8xf32>, vector<1x8xf32> -> vector<1x8xf32>
    %cst_158 = arith.constant 5.120000e+02 : f32
    %242 = vector.broadcast %cst_158 : f32 to vector<1x8xf32>
    %243 = arith.divf %241, %242 : vector<1x8xf32>
    %244 = arith.mulf %239, %239 : vector<1x8xf32>
    %245 = arith.subf %243, %244 : vector<1x8xf32>
    %cst_159 = arith.constant 9.99999974E-6 : f32
    %246 = vector.broadcast %cst_159 : f32 to vector<1x8xf32>
    %247 = arith.addf %245, %246 : vector<1x8xf32>
    %248 = math.rsqrt %247 : vector<1x8xf32>
    %c0_160 = arith.constant 0 : index
    %c0_161 = arith.constant 0 : index
    %249 = vector.load %arg11[%c0_160, %c0_161] : memref<1x8xf32, #tpu.memory_space<vmem>>, vector<1x8xf32>
    %250 = arith.mulf %249, %248 : vector<1x8xf32>
    %c0_162 = arith.constant 0 : index
    %c0_163 = arith.constant 0 : index
    %251 = vector.load %arg12[%c0_162, %c0_163] : memref<1x8xf32, #tpu.memory_space<vmem>>, vector<1x8xf32>
    %252 = arith.mulf %239, %250 : vector<1x8xf32>
    %253 = arith.subf %251, %252 : vector<1x8xf32>
    %c0_164 = arith.constant 0 : index
    %c0_165 = arith.constant 0 : index
    %254 = vector.load %arg14[%c0_164, %c0_165] : memref<8x128xf32, #tpu.memory_space<vmem>>, vector<8x128xf32>
    %cst_166 = arith.constant dense<0.000000e+00> : vector<1x128xf32>
    %255 = tpu.matmul %250, %254, %cst_166 {dimension_numbers = #tpu.dot_dimension_numbers<[1], [0], [0], [1], [0, 0, 1, 1], [], []>} : vector<1x8xf32>, vector<8x128xf32>, vector<1x128xf32> -> vector<1x128xf32>
    %c0_167 = arith.constant 0 : index
    %c0_168 = arith.constant 0 : index
    %256 = vector.load %arg14[%c0_167, %c0_168] : memref<8x128xf32, #tpu.memory_space<vmem>>, vector<8x128xf32>
    %cst_169 = arith.constant dense<0.000000e+00> : vector<1x128xf32>
    %257 = tpu.matmul %253, %256, %cst_169 {dimension_numbers = #tpu.dot_dimension_numbers<[1], [0], [0], [1], [0, 0, 1, 1], [], []>} : vector<1x8xf32>, vector<8x128xf32>, vector<1x128xf32> -> vector<1x128xf32>
    %c0_170 = arith.constant 0 : index
    %c0_171 = arith.constant 0 : index
    %258 = vector.load %arg15[%c0_170, %c0_171] : memref<12x16xf32, #tpu.memory_space<vmem>>, vector<12x16xf32>
    %c0_172 = arith.constant 0 : index
    %c0_173 = arith.constant 0 : index
    %259 = vector.load %arg16[%c0_172, %c0_173] : memref<128x96xf32, #tpu.memory_space<vmem>>, vector<128x96xf32>
    %cst_174 = arith.constant -1.000000e+30 : f32
    %260 = vector.broadcast %cst_174 : f32 to vector<1x128xf32>
    %cst_175 = arith.constant -1.000000e+30 : f32
    %261 = vector.broadcast %cst_175 : f32 to vector<12x8xf32>
    %c0_176 = arith.constant 0 : index
    %c0_177 = arith.constant 0 : index
    %c0_178 = arith.constant 0 : index
    %262 = vector.load %arg28[%c0_176, %c0_177, %c0_178] : memref<2x32x256xf32, #tpu.memory_space<vmem>>, vector<1x16x128xf32>
    %263 = vector.shape_cast %262 : vector<1x16x128xf32> to vector<16x128xf32>
    %264 = vector.broadcast %255 : vector<1x128xf32> to vector<16x128xf32>
    %265 = arith.mulf %263, %264 : vector<16x128xf32>
    %266 = vector.broadcast %257 : vector<1x128xf32> to vector<16x128xf32>
    %267 = arith.addf %265, %266 : vector<16x128xf32>
    %268 = vector.extract_strided_slice %267 {offsets = [0, 0], sizes = [15, 128], strides = [1, 1]} : vector<16x128xf32> to vector<15x128xf32>
    %269 = tpu.concatenate %260, %268 in 0 : vector<1x128xf32>, vector<15x128xf32> -> vector<16x128xf32>
    %270 = vector.extract_strided_slice %267 {offsets = [1, 0], sizes = [15, 128], strides = [1, 1]} : vector<16x128xf32> to vector<15x128xf32>
    %271 = tpu.concatenate %270, %260 in 0 : vector<15x128xf32>, vector<1x128xf32> -> vector<16x128xf32>
    %272 = arith.maximumf %269, %271 : vector<16x128xf32>
    %273 = arith.maximumf %267, %272 : vector<16x128xf32>
    %cst_179 = arith.constant dense<0.000000e+00> : vector<12x128xf32>
    %274 = tpu.matmul %258, %273, %cst_179 {dimension_numbers = #tpu.dot_dimension_numbers<[1], [0], [0], [1], [0, 0, 1, 1], [], []>} : vector<12x16xf32>, vector<16x128xf32>, vector<12x128xf32> -> vector<12x128xf32>
    %275 = vector.extract_strided_slice %274 {offsets = [0, 0], sizes = [12, 120], strides = [1, 1]} : vector<12x128xf32> to vector<12x120xf32>
    %276 = tpu.concatenate %261, %275 in 1 : vector<12x8xf32>, vector<12x120xf32> -> vector<12x128xf32>
    %277 = vector.extract_strided_slice %274 {offsets = [0, 8], sizes = [12, 120], strides = [1, 1]} : vector<12x128xf32> to vector<12x120xf32>
    %278 = tpu.concatenate %277, %261 in 1 : vector<12x120xf32>, vector<12x8xf32> -> vector<12x128xf32>
    %279 = arith.maximumf %276, %278 : vector<12x128xf32>
    %280 = arith.maximumf %274, %279 : vector<12x128xf32>
    %cst_180 = arith.constant dense<0.000000e+00> : vector<12x96xf32>
    %281 = tpu.matmul %280, %259, %cst_180 {dimension_numbers = #tpu.dot_dimension_numbers<[1], [0], [0], [1], [0, 0, 1, 1], [], []>} : vector<12x128xf32>, vector<128x96xf32>, vector<12x96xf32> -> vector<12x96xf32>
    %c1_181 = arith.constant 1 : index
    %c0_182 = arith.constant 0 : index
    %c0_183 = arith.constant 0 : index
    %282 = vector.load %arg28[%c1_181, %c0_182, %c0_183] : memref<2x32x256xf32, #tpu.memory_space<vmem>>, vector<1x16x128xf32>
    %283 = vector.shape_cast %282 : vector<1x16x128xf32> to vector<16x128xf32>
    %284 = vector.broadcast %255 : vector<1x128xf32> to vector<16x128xf32>
    %285 = arith.mulf %283, %284 : vector<16x128xf32>
    %286 = vector.broadcast %257 : vector<1x128xf32> to vector<16x128xf32>
    %287 = arith.addf %285, %286 : vector<16x128xf32>
    %288 = vector.extract_strided_slice %287 {offsets = [0, 0], sizes = [15, 128], strides = [1, 1]} : vector<16x128xf32> to vector<15x128xf32>
    %289 = tpu.concatenate %260, %288 in 0 : vector<1x128xf32>, vector<15x128xf32> -> vector<16x128xf32>
    %290 = vector.extract_strided_slice %287 {offsets = [1, 0], sizes = [15, 128], strides = [1, 1]} : vector<16x128xf32> to vector<15x128xf32>
    %291 = tpu.concatenate %290, %260 in 0 : vector<15x128xf32>, vector<1x128xf32> -> vector<16x128xf32>
    %292 = arith.maximumf %289, %291 : vector<16x128xf32>
    %293 = arith.maximumf %287, %292 : vector<16x128xf32>
    %cst_184 = arith.constant dense<0.000000e+00> : vector<12x128xf32>
    %294 = tpu.matmul %258, %293, %cst_184 {dimension_numbers = #tpu.dot_dimension_numbers<[1], [0], [0], [1], [0, 0, 1, 1], [], []>} : vector<12x16xf32>, vector<16x128xf32>, vector<12x128xf32> -> vector<12x128xf32>
    %295 = vector.extract_strided_slice %294 {offsets = [0, 0], sizes = [12, 120], strides = [1, 1]} : vector<12x128xf32> to vector<12x120xf32>
    %296 = tpu.concatenate %261, %295 in 1 : vector<12x8xf32>, vector<12x120xf32> -> vector<12x128xf32>
    %297 = vector.extract_strided_slice %294 {offsets = [0, 8], sizes = [12, 120], strides = [1, 1]} : vector<12x128xf32> to vector<12x120xf32>
    %298 = tpu.concatenate %297, %261 in 1 : vector<12x120xf32>, vector<12x8xf32> -> vector<12x128xf32>
    %299 = arith.maximumf %296, %298 : vector<12x128xf32>
    %300 = arith.maximumf %294, %299 : vector<12x128xf32>
    %cst_185 = arith.constant dense<0.000000e+00> : vector<12x96xf32>
    %301 = tpu.matmul %300, %259, %cst_185 {dimension_numbers = #tpu.dot_dimension_numbers<[1], [0], [0], [1], [0, 0, 1, 1], [], []>} : vector<12x128xf32>, vector<128x96xf32>, vector<12x96xf32> -> vector<12x96xf32>
    %c0_186 = arith.constant 0 : index
    %c0_187 = arith.constant 0 : index
    %302 = vector.load %arg18[%c0_186, %c0_187] : memref<1x64xf32, #tpu.memory_space<vmem>>, vector<1x64xf32>
    %cst_188 = arith.constant 0.000000e+00 : f32
    %303 = vector.broadcast %cst_188 : f32 to vector<1x64xf32>
    %cst_189 = arith.constant 0.000000e+00 : f32
    %304 = vector.broadcast %cst_189 : f32 to vector<1x64xf32>
    %cst_190 = arith.constant 0.000000e+00 : f32
    %305 = vector.broadcast %cst_190 : f32 to vector<8x64xf32>
    %306 = vector.extract_strided_slice %281 {offsets = [0, 0], sizes = [8, 96], strides = [1, 1]} : vector<12x96xf32> to vector<8x96xf32>
    %c0_191 = arith.constant 0 : index
    %c0_192 = arith.constant 0 : index
    %c0_193 = arith.constant 0 : index
    %307 = vector.load %arg17[%c0_191, %c0_192, %c0_193] : memref<5x96x64xf32, #tpu.memory_space<vmem>>, vector<1x96x64xf32>
    %308 = vector.shape_cast %307 : vector<1x96x64xf32> to vector<96x64xf32>
    %cst_194 = arith.constant dense<0.000000e+00> : vector<8x64xf32>
    %309 = tpu.matmul %306, %308, %cst_194 {dimension_numbers = #tpu.dot_dimension_numbers<[1], [0], [0], [1], [0, 0, 1, 1], [], []>} : vector<8x96xf32>, vector<96x64xf32>, vector<8x64xf32> -> vector<8x64xf32>
    %310 = arith.addf %305, %309 : vector<8x64xf32>
    %311 = vector.extract_strided_slice %281 {offsets = [1, 0], sizes = [8, 96], strides = [1, 1]} : vector<12x96xf32> to vector<8x96xf32>
    %c1_195 = arith.constant 1 : index
    %c0_196 = arith.constant 0 : index
    %c0_197 = arith.constant 0 : index
    %312 = vector.load %arg17[%c1_195, %c0_196, %c0_197] : memref<5x96x64xf32, #tpu.memory_space<vmem>>, vector<1x96x64xf32>
    %313 = vector.shape_cast %312 : vector<1x96x64xf32> to vector<96x64xf32>
    %cst_198 = arith.constant dense<0.000000e+00> : vector<8x64xf32>
    %314 = tpu.matmul %311, %313, %cst_198 {dimension_numbers = #tpu.dot_dimension_numbers<[1], [0], [0], [1], [0, 0, 1, 1], [], []>} : vector<8x96xf32>, vector<96x64xf32>, vector<8x64xf32> -> vector<8x64xf32>
    %315 = arith.addf %310, %314 : vector<8x64xf32>
    %316 = vector.extract_strided_slice %281 {offsets = [2, 0], sizes = [8, 96], strides = [1, 1]} : vector<12x96xf32> to vector<8x96xf32>
    %c2_199 = arith.constant 2 : index
    %c0_200 = arith.constant 0 : index
    %c0_201 = arith.constant 0 : index
    %317 = vector.load %arg17[%c2_199, %c0_200, %c0_201] : memref<5x96x64xf32, #tpu.memory_space<vmem>>, vector<1x96x64xf32>
    %318 = vector.shape_cast %317 : vector<1x96x64xf32> to vector<96x64xf32>
    %cst_202 = arith.constant dense<0.000000e+00> : vector<8x64xf32>
    %319 = tpu.matmul %316, %318, %cst_202 {dimension_numbers = #tpu.dot_dimension_numbers<[1], [0], [0], [1], [0, 0, 1, 1], [], []>} : vector<8x96xf32>, vector<96x64xf32>, vector<8x64xf32> -> vector<8x64xf32>
    %320 = arith.addf %315, %319 : vector<8x64xf32>
    %321 = vector.extract_strided_slice %281 {offsets = [3, 0], sizes = [8, 96], strides = [1, 1]} : vector<12x96xf32> to vector<8x96xf32>
    %c3_203 = arith.constant 3 : index
    %c0_204 = arith.constant 0 : index
    %c0_205 = arith.constant 0 : index
    %322 = vector.load %arg17[%c3_203, %c0_204, %c0_205] : memref<5x96x64xf32, #tpu.memory_space<vmem>>, vector<1x96x64xf32>
    %323 = vector.shape_cast %322 : vector<1x96x64xf32> to vector<96x64xf32>
    %cst_206 = arith.constant dense<0.000000e+00> : vector<8x64xf32>
    %324 = tpu.matmul %321, %323, %cst_206 {dimension_numbers = #tpu.dot_dimension_numbers<[1], [0], [0], [1], [0, 0, 1, 1], [], []>} : vector<8x96xf32>, vector<96x64xf32>, vector<8x64xf32> -> vector<8x64xf32>
    %325 = arith.addf %320, %324 : vector<8x64xf32>
    %326 = vector.extract_strided_slice %281 {offsets = [4, 0], sizes = [8, 96], strides = [1, 1]} : vector<12x96xf32> to vector<8x96xf32>
    %c4_207 = arith.constant 4 : index
    %c0_208 = arith.constant 0 : index
    %c0_209 = arith.constant 0 : index
    %327 = vector.load %arg17[%c4_207, %c0_208, %c0_209] : memref<5x96x64xf32, #tpu.memory_space<vmem>>, vector<1x96x64xf32>
    %328 = vector.shape_cast %327 : vector<1x96x64xf32> to vector<96x64xf32>
    %cst_210 = arith.constant dense<0.000000e+00> : vector<8x64xf32>
    %329 = tpu.matmul %326, %328, %cst_210 {dimension_numbers = #tpu.dot_dimension_numbers<[1], [0], [0], [1], [0, 0, 1, 1], [], []>} : vector<8x96xf32>, vector<96x64xf32>, vector<8x64xf32> -> vector<8x64xf32>
    %330 = arith.addf %325, %329 : vector<8x64xf32>
    %331 = vector.broadcast %302 : vector<1x64xf32> to vector<8x64xf32>
    %332 = arith.addf %330, %331 : vector<8x64xf32>
    %cst_211 = arith.constant 0.000000e+00 : f32
    %333 = vector.broadcast %cst_211 : f32 to vector<8x64xf32>
    %334 = arith.maximumf %332, %333 : vector<8x64xf32>
    %c0_212 = arith.constant 0 : index
    %c0_213 = arith.constant 0 : index
    %c0_214 = arith.constant 0 : index
    %335 = vector.load %arg28[%c0_212, %c0_213, %c0_214] : memref<2x32x256xf32, #tpu.memory_space<vmem>>, vector<1x8x64xf32>
    %336 = vector.shape_cast %335 : vector<1x8x64xf32> to vector<8x64xf32>
    %337 = vector.shape_cast %334 : vector<8x64xf32> to vector<1x8x64xf32>
    tpu.vector_store %arg28[%c0_212, %c0_213, %c0_214], %337 {strides = array<i32>} : memref<2x32x256xf32, #tpu.memory_space<vmem>>, vector<1x8x64xf32>,
    %cst_215 = arith.constant dense<0.000000e+00> : vector<64xf32>
    %338 = vector.multi_reduction <add>, %334, %cst_215 [0] : vector<8x64xf32> to vector<64xf32>
    %339 = vector.shape_cast %338 : vector<64xf32> to vector<1x64xf32>
    %340 = arith.addf %303, %339 : vector<1x64xf32>
    %341 = arith.mulf %334, %334 : vector<8x64xf32>
    %cst_216 = arith.constant dense<0.000000e+00> : vector<64xf32>
    %342 = vector.multi_reduction <add>, %341, %cst_216 [0] : vector<8x64xf32> to vector<64xf32>
    %343 = vector.shape_cast %342 : vector<64xf32> to vector<1x64xf32>
    %344 = arith.addf %304, %343 : vector<1x64xf32>
    %cst_217 = arith.constant 0.000000e+00 : f32
    %345 = vector.broadcast %cst_217 : f32 to vector<8x64xf32>
    %346 = vector.extract_strided_slice %301 {offsets = [0, 0], sizes = [8, 96], strides = [1, 1]} : vector<12x96xf32> to vector<8x96xf32>
    %c0_218 = arith.constant 0 : index
    %c0_219 = arith.constant 0 : index
    %c0_220 = arith.constant 0 : index
    %347 = vector.load %arg17[%c0_218, %c0_219, %c0_220] : memref<5x96x64xf32, #tpu.memory_space<vmem>>, vector<1x96x64xf32>
    %348 = vector.shape_cast %347 : vector<1x96x64xf32> to vector<96x64xf32>
    %cst_221 = arith.constant dense<0.000000e+00> : vector<8x64xf32>
    %349 = tpu.matmul %346, %348, %cst_221 {dimension_numbers = #tpu.dot_dimension_numbers<[1], [0], [0], [1], [0, 0, 1, 1], [], []>} : vector<8x96xf32>, vector<96x64xf32>, vector<8x64xf32> -> vector<8x64xf32>
    %350 = arith.addf %345, %349 : vector<8x64xf32>
    %351 = vector.extract_strided_slice %301 {offsets = [1, 0], sizes = [8, 96], strides = [1, 1]} : vector<12x96xf32> to vector<8x96xf32>
    %c1_222 = arith.constant 1 : index
    %c0_223 = arith.constant 0 : index
    %c0_224 = arith.constant 0 : index
    %352 = vector.load %arg17[%c1_222, %c0_223, %c0_224] : memref<5x96x64xf32, #tpu.memory_space<vmem>>, vector<1x96x64xf32>
    %353 = vector.shape_cast %352 : vector<1x96x64xf32> to vector<96x64xf32>
    %cst_225 = arith.constant dense<0.000000e+00> : vector<8x64xf32>
    %354 = tpu.matmul %351, %353, %cst_225 {dimension_numbers = #tpu.dot_dimension_numbers<[1], [0], [0], [1], [0, 0, 1, 1], [], []>} : vector<8x96xf32>, vector<96x64xf32>, vector<8x64xf32> -> vector<8x64xf32>
    %355 = arith.addf %350, %354 : vector<8x64xf32>
    %356 = vector.extract_strided_slice %301 {offsets = [2, 0], sizes = [8, 96], strides = [1, 1]} : vector<12x96xf32> to vector<8x96xf32>
    %c2_226 = arith.constant 2 : index
    %c0_227 = arith.constant 0 : index
    %c0_228 = arith.constant 0 : index
    %357 = vector.load %arg17[%c2_226, %c0_227, %c0_228] : memref<5x96x64xf32, #tpu.memory_space<vmem>>, vector<1x96x64xf32>
    %358 = vector.shape_cast %357 : vector<1x96x64xf32> to vector<96x64xf32>
    %cst_229 = arith.constant dense<0.000000e+00> : vector<8x64xf32>
    %359 = tpu.matmul %356, %358, %cst_229 {dimension_numbers = #tpu.dot_dimension_numbers<[1], [0], [0], [1], [0, 0, 1, 1], [], []>} : vector<8x96xf32>, vector<96x64xf32>, vector<8x64xf32> -> vector<8x64xf32>
    %360 = arith.addf %355, %359 : vector<8x64xf32>
    %361 = vector.extract_strided_slice %301 {offsets = [3, 0], sizes = [8, 96], strides = [1, 1]} : vector<12x96xf32> to vector<8x96xf32>
    %c3_230 = arith.constant 3 : index
    %c0_231 = arith.constant 0 : index
    %c0_232 = arith.constant 0 : index
    %362 = vector.load %arg17[%c3_230, %c0_231, %c0_232] : memref<5x96x64xf32, #tpu.memory_space<vmem>>, vector<1x96x64xf32>
    %363 = vector.shape_cast %362 : vector<1x96x64xf32> to vector<96x64xf32>
    %cst_233 = arith.constant dense<0.000000e+00> : vector<8x64xf32>
    %364 = tpu.matmul %361, %363, %cst_233 {dimension_numbers = #tpu.dot_dimension_numbers<[1], [0], [0], [1], [0, 0, 1, 1], [], []>} : vector<8x96xf32>, vector<96x64xf32>, vector<8x64xf32> -> vector<8x64xf32>
    %365 = arith.addf %360, %364 : vector<8x64xf32>
    %366 = vector.extract_strided_slice %301 {offsets = [4, 0], sizes = [8, 96], strides = [1, 1]} : vector<12x96xf32> to vector<8x96xf32>
    %c4_234 = arith.constant 4 : index
    %c0_235 = arith.constant 0 : index
    %c0_236 = arith.constant 0 : index
    %367 = vector.load %arg17[%c4_234, %c0_235, %c0_236] : memref<5x96x64xf32, #tpu.memory_space<vmem>>, vector<1x96x64xf32>
    %368 = vector.shape_cast %367 : vector<1x96x64xf32> to vector<96x64xf32>
    %cst_237 = arith.constant dense<0.000000e+00> : vector<8x64xf32>
    %369 = tpu.matmul %366, %368, %cst_237 {dimension_numbers = #tpu.dot_dimension_numbers<[1], [0], [0], [1], [0, 0, 1, 1], [], []>} : vector<8x96xf32>, vector<96x64xf32>, vector<8x64xf32> -> vector<8x64xf32>
    %370 = arith.addf %365, %369 : vector<8x64xf32>
    %371 = vector.broadcast %302 : vector<1x64xf32> to vector<8x64xf32>
    %372 = arith.addf %370, %371 : vector<8x64xf32>
    %cst_238 = arith.constant 0.000000e+00 : f32
    %373 = vector.broadcast %cst_238 : f32 to vector<8x64xf32>
    %374 = arith.maximumf %372, %373 : vector<8x64xf32>
    %c1_239 = arith.constant 1 : index
    %c0_240 = arith.constant 0 : index
    %c0_241 = arith.constant 0 : index
    %375 = vector.load %arg28[%c1_239, %c0_240, %c0_241] : memref<2x32x256xf32, #tpu.memory_space<vmem>>, vector<1x8x64xf32>
    %376 = vector.shape_cast %375 : vector<1x8x64xf32> to vector<8x64xf32>
    %377 = vector.shape_cast %374 : vector<8x64xf32> to vector<1x8x64xf32>
    tpu.vector_store %arg28[%c1_239, %c0_240, %c0_241], %377 {strides = array<i32>} : memref<2x32x256xf32, #tpu.memory_space<vmem>>, vector<1x8x64xf32>,
    %cst_242 = arith.constant dense<0.000000e+00> : vector<64xf32>
    %378 = vector.multi_reduction <add>, %374, %cst_242 [0] : vector<8x64xf32> to vector<64xf32>
    %379 = vector.shape_cast %378 : vector<64xf32> to vector<1x64xf32>
    %380 = arith.addf %340, %379 : vector<1x64xf32>
    %381 = arith.mulf %374, %374 : vector<8x64xf32>
    %cst_243 = arith.constant dense<0.000000e+00> : vector<64xf32>
    %382 = vector.multi_reduction <add>, %381, %cst_243 [0] : vector<8x64xf32> to vector<64xf32>
    %383 = vector.shape_cast %382 : vector<64xf32> to vector<1x64xf32>
    %384 = arith.addf %344, %383 : vector<1x64xf32>
    %c0_244 = arith.constant 0 : index
    %c0_245 = arith.constant 0 : index
    %385 = vector.load %arg21[%c0_244, %c0_245] : memref<64x8xf32, #tpu.memory_space<vmem>>, vector<64x8xf32>
    %cst_246 = arith.constant dense<0.000000e+00> : vector<1x8xf32>
    %386 = tpu.matmul %380, %385, %cst_246 {dimension_numbers = #tpu.dot_dimension_numbers<[1], [0], [0], [1], [0, 0, 1, 1], [], []>} : vector<1x64xf32>, vector<64x8xf32>, vector<1x8xf32> -> vector<1x8xf32>
    %cst_247 = arith.constant 1.280000e+02 : f32
    %387 = vector.broadcast %cst_247 : f32 to vector<1x8xf32>
    %388 = arith.divf %386, %387 : vector<1x8xf32>
    %c0_248 = arith.constant 0 : index
    %c0_249 = arith.constant 0 : index
    %389 = vector.load %arg21[%c0_248, %c0_249] : memref<64x8xf32, #tpu.memory_space<vmem>>, vector<64x8xf32>
    %cst_250 = arith.constant dense<0.000000e+00> : vector<1x8xf32>
    %390 = tpu.matmul %384, %389, %cst_250 {dimension_numbers = #tpu.dot_dimension_numbers<[1], [0], [0], [1], [0, 0, 1, 1], [], []>} : vector<1x64xf32>, vector<64x8xf32>, vector<1x8xf32> -> vector<1x8xf32>
    %cst_251 = arith.constant 1.280000e+02 : f32
    %391 = vector.broadcast %cst_251 : f32 to vector<1x8xf32>
    %392 = arith.divf %390, %391 : vector<1x8xf32>
    %393 = arith.mulf %388, %388 : vector<1x8xf32>
    %394 = arith.subf %392, %393 : vector<1x8xf32>
    %cst_252 = arith.constant 9.99999974E-6 : f32
    %395 = vector.broadcast %cst_252 : f32 to vector<1x8xf32>
    %396 = arith.addf %394, %395 : vector<1x8xf32>
    %397 = math.rsqrt %396 : vector<1x8xf32>
    %c0_253 = arith.constant 0 : index
    %c0_254 = arith.constant 0 : index
    %398 = vector.load %arg19[%c0_253, %c0_254] : memref<1x8xf32, #tpu.memory_space<vmem>>, vector<1x8xf32>
    %399 = arith.mulf %398, %397 : vector<1x8xf32>
    %c0_255 = arith.constant 0 : index
    %c0_256 = arith.constant 0 : index
    %400 = vector.load %arg20[%c0_255, %c0_256] : memref<1x8xf32, #tpu.memory_space<vmem>>, vector<1x8xf32>
    %401 = arith.mulf %388, %399 : vector<1x8xf32>
    %402 = arith.subf %400, %401 : vector<1x8xf32>
    %c0_257 = arith.constant 0 : index
    %c0_258 = arith.constant 0 : index
    %403 = vector.load %arg22[%c0_257, %c0_258] : memref<8x64xf32, #tpu.memory_space<vmem>>, vector<8x64xf32>
    %cst_259 = arith.constant dense<0.000000e+00> : vector<1x64xf32>
    %404 = tpu.matmul %399, %403, %cst_259 {dimension_numbers = #tpu.dot_dimension_numbers<[1], [0], [0], [1], [0, 0, 1, 1], [], []>} : vector<1x8xf32>, vector<8x64xf32>, vector<1x64xf32> -> vector<1x64xf32>
    %c0_260 = arith.constant 0 : index
    %c0_261 = arith.constant 0 : index
    %405 = vector.load %arg22[%c0_260, %c0_261] : memref<8x64xf32, #tpu.memory_space<vmem>>, vector<8x64xf32>
    %cst_262 = arith.constant dense<0.000000e+00> : vector<1x64xf32>
    %406 = tpu.matmul %402, %405, %cst_262 {dimension_numbers = #tpu.dot_dimension_numbers<[1], [0], [0], [1], [0, 0, 1, 1], [], []>} : vector<1x8xf32>, vector<8x64xf32>, vector<1x64xf32> -> vector<1x64xf32>
    %c0_263 = arith.constant 0 : index
    %c0_264 = arith.constant 0 : index
    %407 = vector.load %arg23[%c0_263, %c0_264] : memref<4x8xf32, #tpu.memory_space<vmem>>, vector<4x8xf32>
    %c0_265 = arith.constant 0 : index
    %c0_266 = arith.constant 0 : index
    %408 = vector.load %arg24[%c0_265, %c0_266] : memref<64x32xf32, #tpu.memory_space<vmem>>, vector<64x32xf32>
    %cst_267 = arith.constant -1.000000e+30 : f32
    %409 = vector.broadcast %cst_267 : f32 to vector<1x64xf32>
    %cst_268 = arith.constant -1.000000e+30 : f32
    %410 = vector.broadcast %cst_268 : f32 to vector<4x8xf32>
    %c0_269 = arith.constant 0 : index
    %c0_270 = arith.constant 0 : index
    %c0_271 = arith.constant 0 : index
    %411 = vector.load %arg28[%c0_269, %c0_270, %c0_271] : memref<2x32x256xf32, #tpu.memory_space<vmem>>, vector<1x8x64xf32>
    %412 = vector.shape_cast %411 : vector<1x8x64xf32> to vector<8x64xf32>
    %413 = vector.broadcast %404 : vector<1x64xf32> to vector<8x64xf32>
    %414 = arith.mulf %412, %413 : vector<8x64xf32>
    %415 = vector.broadcast %406 : vector<1x64xf32> to vector<8x64xf32>
    %416 = arith.addf %414, %415 : vector<8x64xf32>
    %417 = vector.extract_strided_slice %416 {offsets = [0, 0], sizes = [7, 64], strides = [1, 1]} : vector<8x64xf32> to vector<7x64xf32>
    %418 = tpu.concatenate %409, %417 in 0 : vector<1x64xf32>, vector<7x64xf32> -> vector<8x64xf32>
    %419 = vector.extract_strided_slice %416 {offsets = [1, 0], sizes = [7, 64], strides = [1, 1]} : vector<8x64xf32> to vector<7x64xf32>
    %420 = tpu.concatenate %419, %409 in 0 : vector<7x64xf32>, vector<1x64xf32> -> vector<8x64xf32>
    %421 = arith.maximumf %418, %420 : vector<8x64xf32>
    %422 = arith.maximumf %416, %421 : vector<8x64xf32>
    %cst_272 = arith.constant dense<0.000000e+00> : vector<4x64xf32>
    %423 = tpu.matmul %407, %422, %cst_272 {dimension_numbers = #tpu.dot_dimension_numbers<[1], [0], [0], [1], [0, 0, 1, 1], [], []>} : vector<4x8xf32>, vector<8x64xf32>, vector<4x64xf32> -> vector<4x64xf32>
    %424 = vector.extract_strided_slice %423 {offsets = [0, 0], sizes = [4, 56], strides = [1, 1]} : vector<4x64xf32> to vector<4x56xf32>
    %425 = tpu.concatenate %410, %424 in 1 : vector<4x8xf32>, vector<4x56xf32> -> vector<4x64xf32>
    %426 = vector.extract_strided_slice %423 {offsets = [0, 8], sizes = [4, 56], strides = [1, 1]} : vector<4x64xf32> to vector<4x56xf32>
    %427 = tpu.concatenate %426, %410 in 1 : vector<4x56xf32>, vector<4x8xf32> -> vector<4x64xf32>
    %428 = arith.maximumf %425, %427 : vector<4x64xf32>
    %429 = arith.maximumf %423, %428 : vector<4x64xf32>
    %cst_273 = arith.constant dense<0.000000e+00> : vector<4x32xf32>
    %430 = tpu.matmul %429, %408, %cst_273 {dimension_numbers = #tpu.dot_dimension_numbers<[1], [0], [0], [1], [0, 0, 1, 1], [], []>} : vector<4x64xf32>, vector<64x32xf32>, vector<4x32xf32> -> vector<4x32xf32>
    %c1_274 = arith.constant 1 : index
    %c0_275 = arith.constant 0 : index
    %c0_276 = arith.constant 0 : index
    %431 = vector.load %arg28[%c1_274, %c0_275, %c0_276] : memref<2x32x256xf32, #tpu.memory_space<vmem>>, vector<1x8x64xf32>
    %432 = vector.shape_cast %431 : vector<1x8x64xf32> to vector<8x64xf32>
    %433 = vector.broadcast %404 : vector<1x64xf32> to vector<8x64xf32>
    %434 = arith.mulf %432, %433 : vector<8x64xf32>
    %435 = vector.broadcast %406 : vector<1x64xf32> to vector<8x64xf32>
    %436 = arith.addf %434, %435 : vector<8x64xf32>
    %437 = vector.extract_strided_slice %436 {offsets = [0, 0], sizes = [7, 64], strides = [1, 1]} : vector<8x64xf32> to vector<7x64xf32>
    %438 = tpu.concatenate %409, %437 in 0 : vector<1x64xf32>, vector<7x64xf32> -> vector<8x64xf32>
    %439 = vector.extract_strided_slice %436 {offsets = [1, 0], sizes = [7, 64], strides = [1, 1]} : vector<8x64xf32> to vector<7x64xf32>
    %440 = tpu.concatenate %439, %409 in 0 : vector<7x64xf32>, vector<1x64xf32> -> vector<8x64xf32>
    %441 = arith.maximumf %438, %440 : vector<8x64xf32>
    %442 = arith.maximumf %436, %441 : vector<8x64xf32>
    %cst_277 = arith.constant dense<0.000000e+00> : vector<4x64xf32>
    %443 = tpu.matmul %407, %442, %cst_277 {dimension_numbers = #tpu.dot_dimension_numbers<[1], [0], [0], [1], [0, 0, 1, 1], [], []>} : vector<4x8xf32>, vector<8x64xf32>, vector<4x64xf32> -> vector<4x64xf32>
    %444 = vector.extract_strided_slice %443 {offsets = [0, 0], sizes = [4, 56], strides = [1, 1]} : vector<4x64xf32> to vector<4x56xf32>
    %445 = tpu.concatenate %410, %444 in 1 : vector<4x8xf32>, vector<4x56xf32> -> vector<4x64xf32>
    %446 = vector.extract_strided_slice %443 {offsets = [0, 8], sizes = [4, 56], strides = [1, 1]} : vector<4x64xf32> to vector<4x56xf32>
    %447 = tpu.concatenate %446, %410 in 1 : vector<4x56xf32>, vector<4x8xf32> -> vector<4x64xf32>
    %448 = arith.maximumf %445, %447 : vector<4x64xf32>
    %449 = arith.maximumf %443, %448 : vector<4x64xf32>
    %cst_278 = arith.constant dense<0.000000e+00> : vector<4x32xf32>
    %450 = tpu.matmul %449, %408, %cst_278 {dimension_numbers = #tpu.dot_dimension_numbers<[1], [0], [0], [1], [0, 0, 1, 1], [], []>} : vector<4x64xf32>, vector<64x32xf32>, vector<4x32xf32> -> vector<4x32xf32>
    %c0_279 = arith.constant 0 : index
    %c0_280 = arith.constant 0 : index
    %451 = vector.load %arg26[%c0_279, %c0_280] : memref<1x10xf32, #tpu.memory_space<vmem>>, vector<1x10xf32>
    %452 = vector.extract_strided_slice %430 {offsets = [0, 0], sizes = [1, 32], strides = [1, 1]} : vector<4x32xf32> to vector<1x32xf32>
    %c0_281 = arith.constant 0 : index
    %c0_282 = arith.constant 0 : index
    %c0_283 = arith.constant 0 : index
    %453 = vector.load %arg25[%c0_281, %c0_282, %c0_283] : memref<4x32x10xf32, #tpu.memory_space<vmem>>, vector<1x32x10xf32>
    %454 = vector.shape_cast %453 : vector<1x32x10xf32> to vector<32x10xf32>
    %cst_284 = arith.constant dense<0.000000e+00> : vector<1x10xf32>
    %455 = tpu.matmul %452, %454, %cst_284 {dimension_numbers = #tpu.dot_dimension_numbers<[1], [0], [0], [1], [0, 0, 1, 1], [], []>} : vector<1x32xf32>, vector<32x10xf32>, vector<1x10xf32> -> vector<1x10xf32>
    %456 = arith.addf %451, %455 : vector<1x10xf32>
    %457 = vector.extract_strided_slice %430 {offsets = [1, 0], sizes = [1, 32], strides = [1, 1]} : vector<4x32xf32> to vector<1x32xf32>
    %c1_285 = arith.constant 1 : index
    %c0_286 = arith.constant 0 : index
    %c0_287 = arith.constant 0 : index
    %458 = vector.load %arg25[%c1_285, %c0_286, %c0_287] : memref<4x32x10xf32, #tpu.memory_space<vmem>>, vector<1x32x10xf32>
    %459 = vector.shape_cast %458 : vector<1x32x10xf32> to vector<32x10xf32>
    %cst_288 = arith.constant dense<0.000000e+00> : vector<1x10xf32>
    %460 = tpu.matmul %457, %459, %cst_288 {dimension_numbers = #tpu.dot_dimension_numbers<[1], [0], [0], [1], [0, 0, 1, 1], [], []>} : vector<1x32xf32>, vector<32x10xf32>, vector<1x10xf32> -> vector<1x10xf32>
    %461 = arith.addf %456, %460 : vector<1x10xf32>
    %462 = vector.extract_strided_slice %430 {offsets = [2, 0], sizes = [1, 32], strides = [1, 1]} : vector<4x32xf32> to vector<1x32xf32>
    %c2_289 = arith.constant 2 : index
    %c0_290 = arith.constant 0 : index
    %c0_291 = arith.constant 0 : index
    %463 = vector.load %arg25[%c2_289, %c0_290, %c0_291] : memref<4x32x10xf32, #tpu.memory_space<vmem>>, vector<1x32x10xf32>
    %464 = vector.shape_cast %463 : vector<1x32x10xf32> to vector<32x10xf32>
    %cst_292 = arith.constant dense<0.000000e+00> : vector<1x10xf32>
    %465 = tpu.matmul %462, %464, %cst_292 {dimension_numbers = #tpu.dot_dimension_numbers<[1], [0], [0], [1], [0, 0, 1, 1], [], []>} : vector<1x32xf32>, vector<32x10xf32>, vector<1x10xf32> -> vector<1x10xf32>
    %466 = arith.addf %461, %465 : vector<1x10xf32>
    %467 = vector.extract_strided_slice %430 {offsets = [3, 0], sizes = [1, 32], strides = [1, 1]} : vector<4x32xf32> to vector<1x32xf32>
    %c3_293 = arith.constant 3 : index
    %c0_294 = arith.constant 0 : index
    %c0_295 = arith.constant 0 : index
    %468 = vector.load %arg25[%c3_293, %c0_294, %c0_295] : memref<4x32x10xf32, #tpu.memory_space<vmem>>, vector<1x32x10xf32>
    %469 = vector.shape_cast %468 : vector<1x32x10xf32> to vector<32x10xf32>
    %cst_296 = arith.constant dense<0.000000e+00> : vector<1x10xf32>
    %470 = tpu.matmul %467, %469, %cst_296 {dimension_numbers = #tpu.dot_dimension_numbers<[1], [0], [0], [1], [0, 0, 1, 1], [], []>} : vector<1x32xf32>, vector<32x10xf32>, vector<1x10xf32> -> vector<1x10xf32>
    %471 = arith.addf %466, %470 : vector<1x10xf32>
    %c0_297 = arith.constant 0 : index
    %c0_298 = arith.constant 0 : index
    %472 = vector.load %arg27[%c0_297, %c0_298] : memref<2x10xf32, #tpu.memory_space<vmem>>, vector<1x10xf32>
    tpu.vector_store %arg27[%c0_297, %c0_298], %471 {strides = array<i32>} : memref<2x10xf32, #tpu.memory_space<vmem>>, vector<1x10xf32>,
    %473 = vector.extract_strided_slice %450 {offsets = [0, 0], sizes = [1, 32], strides = [1, 1]} : vector<4x32xf32> to vector<1x32xf32>
    %c0_299 = arith.constant 0 : index
    %c0_300 = arith.constant 0 : index
    %c0_301 = arith.constant 0 : index
    %474 = vector.load %arg25[%c0_299, %c0_300, %c0_301] : memref<4x32x10xf32, #tpu.memory_space<vmem>>, vector<1x32x10xf32>
    %475 = vector.shape_cast %474 : vector<1x32x10xf32> to vector<32x10xf32>
    %cst_302 = arith.constant dense<0.000000e+00> : vector<1x10xf32>
    %476 = tpu.matmul %473, %475, %cst_302 {dimension_numbers = #tpu.dot_dimension_numbers<[1], [0], [0], [1], [0, 0, 1, 1], [], []>} : vector<1x32xf32>, vector<32x10xf32>, vector<1x10xf32> -> vector<1x10xf32>
    %477 = arith.addf %451, %476 : vector<1x10xf32>
    %478 = vector.extract_strided_slice %450 {offsets = [1, 0], sizes = [1, 32], strides = [1, 1]} : vector<4x32xf32> to vector<1x32xf32>
    %c1_303 = arith.constant 1 : index
    %c0_304 = arith.constant 0 : index
    %c0_305 = arith.constant 0 : index
    %479 = vector.load %arg25[%c1_303, %c0_304, %c0_305] : memref<4x32x10xf32, #tpu.memory_space<vmem>>, vector<1x32x10xf32>
    %480 = vector.shape_cast %479 : vector<1x32x10xf32> to vector<32x10xf32>
    %cst_306 = arith.constant dense<0.000000e+00> : vector<1x10xf32>
    %481 = tpu.matmul %478, %480, %cst_306 {dimension_numbers = #tpu.dot_dimension_numbers<[1], [0], [0], [1], [0, 0, 1, 1], [], []>} : vector<1x32xf32>, vector<32x10xf32>, vector<1x10xf32> -> vector<1x10xf32>
    %482 = arith.addf %477, %481 : vector<1x10xf32>
    %483 = vector.extract_strided_slice %450 {offsets = [2, 0], sizes = [1, 32], strides = [1, 1]} : vector<4x32xf32> to vector<1x32xf32>
    %c2_307 = arith.constant 2 : index
    %c0_308 = arith.constant 0 : index
    %c0_309 = arith.constant 0 : index
    %484 = vector.load %arg25[%c2_307, %c0_308, %c0_309] : memref<4x32x10xf32, #tpu.memory_space<vmem>>, vector<1x32x10xf32>
    %485 = vector.shape_cast %484 : vector<1x32x10xf32> to vector<32x10xf32>
    %cst_310 = arith.constant dense<0.000000e+00> : vector<1x10xf32>
    %486 = tpu.matmul %483, %485, %cst_310 {dimension_numbers = #tpu.dot_dimension_numbers<[1], [0], [0], [1], [0, 0, 1, 1], [], []>} : vector<1x32xf32>, vector<32x10xf32>, vector<1x10xf32> -> vector<1x10xf32>
    %487 = arith.addf %482, %486 : vector<1x10xf32>
    %488 = vector.extract_strided_slice %450 {offsets = [3, 0], sizes = [1, 32], strides = [1, 1]} : vector<4x32xf32> to vector<1x32xf32>
    %c3_311 = arith.constant 3 : index
    %c0_312 = arith.constant 0 : index
    %c0_313 = arith.constant 0 : index
    %489 = vector.load %arg25[%c3_311, %c0_312, %c0_313] : memref<4x32x10xf32, #tpu.memory_space<vmem>>, vector<1x32x10xf32>
    %490 = vector.shape_cast %489 : vector<1x32x10xf32> to vector<32x10xf32>
    %cst_314 = arith.constant dense<0.000000e+00> : vector<1x10xf32>
    %491 = tpu.matmul %488, %490, %cst_314 {dimension_numbers = #tpu.dot_dimension_numbers<[1], [0], [0], [1], [0, 0, 1, 1], [], []>} : vector<1x32xf32>, vector<32x10xf32>, vector<1x10xf32> -> vector<1x10xf32>
    %492 = arith.addf %487, %491 : vector<1x10xf32>
    %c1_315 = arith.constant 1 : index
    %c0_316 = arith.constant 0 : index
    %493 = vector.load %arg27[%c1_315, %c0_316] : memref<2x10xf32, #tpu.memory_space<vmem>>, vector<1x10xf32>
    tpu.vector_store %arg27[%c1_315, %c0_316], %492 {strides = array<i32>} : memref<2x10xf32, #tpu.memory_space<vmem>>, vector<1x10xf32>,
    return
  }
}

</mosaic_0001>

<bundles_post_ra>
// kernel: forward.1
= control target key start
LH: loop header
LB: loop body
LE: loop exit
PB: predicated region body
PF: predicated region fallthrough
CT: control target
= control target key end

     0   :  { %s13097_s0 = inlined_call_operand.vmem [shape: f32[2,36,108], index: 0, kind: input, shape index: {}]   ;;  %s13098_s1 = inlined_call_operand.vmem [shape: f32[5,108,256], index: 1, kind: input, shape index: {}]   ;;  %s13099_s2 = inlined_call_operand.vmem [shape: f32[1,256], index: 2, kind: input, shape index: {}]   ;;  %s13100_s3 = inlined_call_operand.vmem [shape: f32[1,8], index: 3, kind: input, shape index: {}]   ;;  %s13101_s4 = inlined_call_operand.vmem [shape: f32[1,8], index: 4, kind: input, shape index: {}]   ;;  %s13102_s5 = inlined_call_operand.vmem [shape: f32[256,8], index: 5, kind: input, shape index: {}]   ;;  %s13103_s6 = inlined_call_operand.vmem [shape: f32[8,256], index: 6, kind: input, shape index: {}]   ;;  %s13104_s7 = inlined_call_operand.vmem [shape: f32[20,32], index: 7, kind: input, shape index: {}]   ;;  %s13105_s8 = inlined_call_operand.vmem [shape: f32[256,160], index: 8, kind: input, shape index: {}]   ;;  %s13106_s9 = inlined_call_operand.vmem [shape: f32[5,160,128], index: 9, kind: input, shape index: {}]   ;;  %s13107_s10 = inlined_call_operand.vmem [shape: f32[1,128], index: 10, kind: input, shape index: {}]   ;;  %s13108_s11 = inlined_call_operand.vmem [shape: f32[1,8], index: 11, kind: input, shape index: {}]   ;;  %s13109_s12 = inlined_call_operand.vmem [shape: f32[1,8], index: 12, kind: input, shape index: {}]   ;;  %s13110_s13 = inlined_call_operand.vmem [shape: f32[128,8], index: 13, kind: input, shape index: {}]   ;;  %s13111_s14 = inlined_call_operand.vmem [shape: f32[8,128], index: 14, kind: input, shape index: {}]   ;;  %s13112_s15 = inlined_call_operand.vmem [shape: f32[12,16], index: 15, kind: input, shape index: {}]   ;;  %s13113_s16 = inlined_call_operand.vmem [shape: f32[128,96], index: 16, kind: input, shape index: {}]   ;;  %s13114_s17 = inlined_call_operand.vmem [shape: f32[5,96,64], index: 17, kind: input, shape index: {}]   ;;  %s13115_s18 = inlined_call_operand.vmem [shape: f32[1,64], index: 18, kind: input, shape index: {}]   ;;  %s13116_s19 = inlined_call_operand.vmem [shape: f32[1,8], index: 19, kind: input, shape index: {}]   ;;  %s13117_s20 = inlined_call_operand.vmem [shape: f32[1,8], index: 20, kind: input, shape index: {}]   ;;  %s13118_s21 = inlined_call_operand.vmem [shape: f32[64,8], index: 21, kind: input, shape index: {}]   ;;  %s13119_s22 = inlined_call_operand.vmem [shape: f32[8,64], index: 22, kind: input, shape index: {}]   ;;  %s13120_s23 = inlined_call_operand.vmem [shape: f32[4,8], index: 23, kind: input, shape index: {}]   ;;  %s13121_s24 = inlined_call_operand.vmem [shape: f32[64,32], index: 24, kind: input, shape index: {}]   ;;  %s13122_s25 = inlined_call_operand.vmem [shape: f32[4,32,10], index: 25, kind: input, shape index: {}]   ;;  %s13123_s26 = inlined_call_operand.vmem [shape: f32[1,10], index: 26, kind: input, shape index: {}]   ;;  %s13124_s27 = inlined_call_operand.hbm [shape: f32[2,10], index: 27, kind: output, shape index: {}]  }
   0x1   :  { %13148 = sst [smem:[#allocation19_spill]] %s13097_s0 }
   0x2   :  { %13149 = sst [smem:[#allocation20_spill]] %s13098_s1 }
   0x3   :  { %13150 = sst [smem:[#allocation21_spill]] %s13099_s2 }
   0x4   :  { %13151 = sst [smem:[#allocation22_spill]] %s13100_s3 }
   0x5   :  { %13152 = sst [smem:[#allocation23_spill]] %s13101_s4 }
   0x6   :  { %13153 = sst [smem:[#allocation24_spill]] %s13102_s5 }
   0x7   :  { %13154 = sst [smem:[#allocation25_spill]] %s13103_s6 }
   0x8   :  { %13155 = sst [smem:[#allocation26_spill]] %s13104_s7 }
   0x9   :  { %13156 = sst [smem:[#allocation27_spill]] %s13105_s8 }
   0xa   :  { %13157 = sst [smem:[#allocation28_spill]] %s13106_s9 }
   0xb   :  { %13158 = sst [smem:[#allocation29_spill]] %s13107_s10 }
   0xc   :  { %13159 = sst [smem:[#allocation30_spill]] %s13108_s11 }
   0xd   :  { %s13160_s8 = sld [smem:[#allocation20_spill]]  ;;  %v13132_v7 = vmov 0.0   ;;  %s13161_s5 = sld [smem:[#allocation19_spill]]  ;;  %vm558_vm0 = vcmask 1044480   ;;  %vm180_vm1 = vcmask 1043456   ;;  %vm9952_vm2 = vmmov 1  }
   0xe   :  { %251 = vmatprep.mubr.f32.mxu0 %v13132_v7  ;;  %1059 = vmatprep.mubr.f32.mxu1 %v13132_v7  ;;  %vm10225_vm3 = vmpackc.low %vm180_vm1, %vm9952_vm2  ;;  %vm161_vm4 = vcmask 1046528   ;;  %vm171_vm5 = vcmask 883712  }
  0x13   :  { %v6943_v0 = vld [vmem:[%s13160_s8 + $0xe8] sm:$0xff]  ;;  %v6945_v1 = vld [vmem:[%s13160_s8 + $0xf8] sm:$0xff]  ;;  %v6942_v2 = vld [vmem:[%s13160_s8 + $0xe0] sm:$0xff] }
  0x14   :  { %v8552_v3 = vpack.c.bf16 %v6945_v1, %v6943_v0  ;;  %v6944_v4 = vld [vmem:[%s13160_s8 + $0xf0] sm:$0xff]  ;;  %v6947_v5 = vld [vmem:[%s13160_s8 + $0x108] sm:$0xff]  ;;  %v6949_v6 = vld [vmem:[%s13160_s8 + $0x118] sm:$0xff] }
  0x15   :  { %v8554_v8 = vpack.c.bf16 %v6944_v4, %v6942_v2  ;;  %v8556_v9 = vpack.c.bf16 %v6949_v6, %v6947_v5  ;;  %v6946_v10 = vld [vmem:[%s13160_s8 + $0x100] sm:$0xff]  ;;  %v6948_v11 = vld [vmem:[%s13160_s8 + $0x110] sm:$0xff]  ;;  %v6951_v12 = vld [vmem:[%s13160_s8 + $0x128] sm:$0xff] }
  0x16   :  { %8553 = vmatprep.subr.bf16.mxu0 %v8552_v3  ;;  %8703 = vmatprep.subr.bf16.mxu1 %v8552_v3  ;;  %v6953_v13 = vld [vmem:[%s13160_s8 + $0x138] sm:$0xff]  ;;  %v8558_v14 = vpack.c.bf16 %v6948_v11, %v6946_v10  ;;  %v6950_v16 = vld [vmem:[%s13160_s8 + $0x120] sm:$0xff]  ;;  %v6952_v17 = vld [vmem:[%s13160_s8 + $0x130] sm:$0xff] }
  0x17   :  { %8555 = vmatpush1.bf16.msra.mxu0 %v8554_v8  ;;  %8705 = vmatpush1.bf16.msra.mxu1 %v8554_v8  ;;  %v8560_v15 = vpack.c.bf16 %v6953_v13, %v6951_v12  ;;  %v6955_v18 = vld [vmem:[%s13160_s8 + $0x148] sm:$0xff]  ;;  %v6957_v19 = vld [vmem:[%s13160_s8 + $0x158] sm:$0xff]  ;;  %v8562_v20 = vpack.c.bf16 %v6952_v17, %v6950_v16  ;;  %v6954_v22 = vld [vmem:[%s13160_s8 + $0x140] sm:$0xff] }
  0x18   :  { %8557 = vmatprep.subr.bf16.mxu0 %v8556_v9  ;;  %8707 = vmatprep.subr.bf16.mxu1 %v8556_v9  ;;  %v8564_v21 = vpack.c.bf16 %v6957_v19, %v6955_v18  ;;  %v6956_v23 = vld [vmem:[%s13160_s8 + $0x150] sm:$0xff]  ;;  %v6959_v24 = vld [vmem:[%s13160_s8 + $0x168] sm:$0xff]  ;;  %v6961_v25 = vld [vmem:[%s13160_s8 + $0x178] sm:$0xff] }
  0x19   :  { %v8566_v26 = vpack.c.bf16 %v6956_v23, %v6954_v22  ;;  %v8568_v27 = vpack.c.bf16 %v6961_v25, %v6959_v24  ;;  %v6958_v28 = vld [vmem:[%s13160_s8 + $0x160] sm:$0xff]  ;;  %v6960_v29 = vld [vmem:[%s13160_s8 + $0x170] sm:$0xff]  ;;  %v6963_v30 = vld [vmem:[%s13160_s8 + $0x188] sm:$0xff] }
  0x1a   :  { %v6965_v31 = vld [vmem:[%s13160_s8 + $0x198] sm:$0xff]  ;;  %v10169_v32 = vld [vmem:[%s13161_s5] sm:$0xff]  ;;  %v10174_v33 = vld [vmem:[%s13161_s5 + $0x8] sm:$0xff]  ;;  %v8570_v34 = vpack.c.bf16 %v6960_v29, %v6958_v28 }
  0x1b   :  { %8559 = vmatpush1.bf16.msra.mxu0 %v8558_v14  ;;  %8709 = vmatpush1.bf16.msra.mxu1 %v8558_v14  ;;  %v10179_v35 = vld [vmem:[%s13161_s5 + $0x28] sm:$0xff]  ;;  %v10184_v36 = vld [vmem:[%s13161_s5 + $0x30] sm:$0xff]  ;;  %v559_v37 = vrot.slane %v10169_v32, 3  ;;  %v560_v38 = vrot.slane %v10174_v33, 3  ;;  %v8572_v39 = vpack.c.bf16 %v6965_v31, %v6963_v30  ;;  %v6962_v40 = vld [vmem:[%s13160_s8 + $0x180] sm:$0xff]  ;;  %v162_v58 = vrot.slane %v10169_v32, 1 }
  0x1c   :  { %8561 = vmatprep.subr.bf16.mxu0 %v8560_v15  ;;  %8711 = vmatprep.subr.bf16.mxu1 %v8560_v15  ;;  %v6964_v41 = vld [vmem:[%s13160_s8 + $0x190] sm:$0xff]  ;;  %v1363_v42 = vrot.slane %v10179_v35, 3  ;;  %v1364_v43 = vrot.slane %v10184_v36, 3  ;;  %v6967_v44 = vld [vmem:[%s13160_s8 + $0x1a8] sm:$0xff]  ;;  %v6969_v45 = vld [vmem:[%s13160_s8 + $0x1b8] sm:$0xf] }
  0x1d   :  { %v7111_v46 = vld [vmem:[%s13160_s8 + $0x1b8] sm:$0xf]  ;;  %v10208_v47 = vsel %vm558_vm0, %v559_v37, %v560_v38  ;;  %v8574_v49 = vpack.c.bf16 %v6964_v41, %v6962_v40  ;;  %v8576_v50 = vpack.c.bf16 %v6969_v45, %v6967_v44  ;;  %v6966_v52 = vld [vmem:[%s13160_s8 + $0x1a0] sm:$0xff]  ;;  %v6968_v53 = vld [vmem:[%s13160_s8 + $0x1b0] sm:$0xf]  ;;  %v163_v59 = vrot.slane %v10174_v33, 1 }
  0x1e   :  { %v10213_v48 = vsel %vm558_vm0, %v1363_v42, %v1364_v43  ;;  %v8726_v51 = vpack.c.bf16 %v7111_v46, %v6967_v44  ;;  %v7110_v54 = vld [vmem:[%s13160_s8 + $0x1b0] sm:$0xf]  ;;  %v100_v56 = vld [vmem:[%s13160_s8 + $0x8] sm:$0xff]  ;;  %v102_v57 = vld [vmem:[%s13160_s8 + $0x18] sm:$0xff]  ;;  %v972_v60 = vrot.slane %v10179_v35, 1  ;;  %v973_v61 = vrot.slane %v10184_v36, 1 }
  0x1f   :  { %8563 = vmatpush1.bf16.msra.mxu0 %v8562_v20  ;;  %8713 = vmatpush1.bf16.msra.mxu1 %v8562_v20  ;;  %v8579_v62 = vpack.c.bf16 %v6968_v53, %v6966_v52  ;;  %v8729_v63 = vpack.c.bf16 %v7110_v54, %v6966_v52  ;;  %v99_v0 = vld [vmem:[%s13160_s8] sm:$0xff]  ;;  %v101_v1 = vld [vmem:[%s13160_s8 + $0x10] sm:$0xff]  ;;  %v8582_v2 = vpack.c.bf16 %v102_v57, %v100_v56  ;;  %v10257_v4 = vld [vmem:[%s13161_s5 + $0x38] sm:$0xff]  ;;  %v708_v44 = vrot.slane %v10169_v32, 4 }
  0x20   :  { %8565 = vmatprep.subr.bf16.mxu0 %v8564_v21  ;;  %8715 = vmatprep.subr.bf16.mxu1 %v8564_v21  ;;  %v10252_v3 = vld [vmem:[%s13161_s5 + $0x10] sm:$0xff]  ;;  %v104_v5 = vld [vmem:[%s13160_s8 + $0x28] sm:$0xff]  ;;  %v106_v6 = vld [vmem:[%s13160_s8 + $0x38] sm:$0xff]  ;;  %v164_v8 = vsel %vm161_vm4, %v162_v58, %v163_v59  ;;  %v8584_v9 = vpack.c.bf16 %v101_v1, %v99_v0  ;;  %v974_v10 = vsel %vm161_vm4, %v972_v60, %v973_v61  ;;  %v975_v16 = vrot.slane %v10257_v4, 1 }
  0x21   :  { %v103_v11 = vld [vmem:[%s13160_s8 + $0x20] sm:$0xff]  ;;  %v10273_v12 = vld [vmem:[%s13161_s5 + $0x18] sm:$0xff]  ;;  %v562_v13 = vrot.slane %v10252_v3, 3  ;;  %v105_v14 = vld [vmem:[%s13160_s8 + $0x30] sm:$0xff]  ;;  %v165_v15 = vrot.slane %v10252_v3, 1  ;;  %v1366_v18 = vrot.slane %v10257_v4, 3  ;;  %v8586_v20 = vpack.c.bf16 %v106_v6, %v104_v5 }
  0x22   :  { %v10288_v17 = vld [vmem:[%s13161_s5 + $0x40] sm:$0xff]  ;;  %v564_v19 = vrot.slane %v10273_v12, 3  ;;  %v108_v24 = vld [vmem:[%s13160_s8 + $0x48] sm:$0xff]  ;;  %v110_v25 = vld [vmem:[%s13160_s8 + $0x58] sm:$0xff]  ;;  %v8588_v31 = vpack.c.bf16 %v105_v14, %v103_v11  ;;  %v976_v42 = vsel %vm161_vm4, %v973_v61, %v975_v16  ;;  %v1511_v54 = vrot.slane %v10179_v35, 4 }
  0x23   :  { %8567 = vmatpush1.bf16.msra.mxu0 %v8566_v26  ;;  %8717 = vmatpush1.bf16.msra.mxu1 %v8566_v26  ;;  %v10295_v21 = vld [vmem:[%s13161_s5 + $0x20] sm:$0xf]  ;;  %v10300_v22 = vsel %vm558_vm0, %v560_v38, %v562_v13  ;;  %v1368_v23 = vrot.slane %v10288_v17, 3  ;;  %v167_v26 = vrot.slane %v10273_v12, 1  ;;  %v10318_v28 = vsel %vm558_vm0, %v1364_v43, %v1366_v18  ;;  %v109_v37 = vld [vmem:[%s13160_s8 + $0x50] sm:$0xff]  ;;  %v114_v52 = vld [vmem:[%s13160_s8 + $0x78] sm:$0xff] }
  0x24   :  { %8569 = vmatprep.subr.bf16.mxu0 %v8568_v27  ;;  %8719 = vmatprep.subr.bf16.mxu1 %v8568_v27  ;;  %v10313_v27 = vld [vmem:[%s13161_s5 + $0x48] sm:$0xf]  ;;  %v10321_v29 = vsel %vm558_vm0, %v562_v13, %v564_v19  ;;  %v566_v30 = vrot.slane %v10295_v21, 3  ;;  %v977_v38 = vrot.slane %v10288_v17, 1  ;;  %v166_v41 = vsel %vm161_vm4, %v163_v59, %v165_v15  ;;  %v111_v61 = vld [vmem:[%s13160_s8 + $0x60] sm:$0xff] }
  0x25   :  { %v1370_v40 = vrot.slane %v10313_v27, 3  ;;  %v8590_v45 = vpack.c.bf16 %v110_v25, %v108_v24  ;;  %v168_v53 = vsel %vm161_vm4, %v165_v15, %v167_v26  ;;  %v1512_v56 = vrot.slane %v10184_v36, 4  ;;  %v115_v25 = vld [vmem:[%s13160_s8 + $0x80] sm:$0xff] }
  0x26   :  { %v10340_v43 = vsel %vm558_vm0, %v564_v19, %v566_v30  ;;  %v978_v57 = vsel %vm161_vm4, %v975_v16, %v977_v38  ;;  %v169_v58 = vrot.slane %v10295_v21, 1  ;;  %v711_v60 = vrot.slane %v10252_v3, 4  ;;  %v117_v30 = vld [vmem:[%s13160_s8 + $0x90] sm:$0xff] }
  0x27   :  { %8571 = vmatpush1.bf16.msra.mxu0 %v8570_v34  ;;  %8721 = vmatpush1.bf16.msra.mxu1 %v8570_v34  ;;  %v107_v34 = vld [vmem:[%s13160_s8 + $0x40] sm:$0xff]  ;;  %v10344_v46 = vsel %vm558_vm0, %v1368_v23, %v1370_v40  ;;  %v10376_v0 = vsel %vm180_vm1, %v1511_v54, %v1512_v56  ;;  %v1514_v1 = vrot.slane %v10257_v4, 4  ;;  %v715_v14 = vrot.slane %v10295_v21, 4  ;;  %v937_v54 = vld [vmem:[%s13160_s8 + $0xd0] sm:$0xf] }
  0x28   :  { %8573 = vmatprep.subr.bf16.mxu0 %v8572_v39  ;;  %8723 = vmatprep.subr.bf16.mxu1 %v8572_v39  ;;  %v10334_v39 = vsel %vm558_vm0, %v1366_v18, %v1368_v23  ;;  %v1518_v18 = vrot.slane %v10313_v27, 4  ;;  %v170_v19 = vsel %vm161_vm4, %v167_v26, %v169_v58  ;;  %v120_v26 = vld [vmem:[%s13160_s8 + $0xa8] sm:$0xff]  ;;  %v119_v40 = vld [vmem:[%s13160_s8 + $0xa0] sm:$0xff] }
  0x29   :  { %v10393_v11 = vsel %vm180_vm1, %v1512_v56, %v1514_v1  ;;  %v6983_v56 = vld [vmem:[%s13160_s8 + $0x1c8] sm:$0xff] }
  0x2b   :  { %8575 = vmatpush1.bf16.msra.mxu0 %v8574_v49  ;;  %8725 = vmatpush1.bf16.msra.mxu1 %v8574_v49  ;;  %v709_v49 = vrot.slane %v10174_v33, 4 }
  0x2c   :  { %8578 = vmatprep.subr.msk.bf16.mxu0 %vm10225_vm3, %v8576_v50  ;;  %8728 = vmatprep.subr.msk.bf16.mxu1 %vm10225_vm3, %v8726_v51  ;;  %v8592_v50 = vpack.c.bf16 %v109_v37, %v107_v34  ;;  %v112_v51 = vld [vmem:[%s13160_s8 + $0x68] sm:$0xff]  ;;  %v122_v34 = vld [vmem:[%s13160_s8 + $0xb8] sm:$0xff]  ;;  %v8600_v37 = vpack.c.bf16 %v117_v30, %v115_v25 }
  0x2d   :  { %v10365_v59 = vsel %vm180_vm1, %v708_v44, %v709_v49  ;;  %v8594_v5 = vpack.c.bf16 %v114_v52, %v112_v51  ;;  %v10381_v6 = vsel %vm180_vm1, %v709_v49, %v711_v60  ;;  %v126_v44 = vld [vmem:[%s13160_s8 + $0xd8] sm:$0xf]  ;;  %v123_v52 = vld [vmem:[%s13160_s8 + $0xc0] sm:$0xff] }
  0x2f   :  { %8581 = vmatpush1.bf16.msk.msra.mxu0 %vm10225_vm3, %v8579_v62  ;;  %8731 = vmatpush1.bf16.msk.msra.mxu1 %vm10225_vm3, %v8729_v63  ;;  %v113_v62 = vld [vmem:[%s13160_s8 + $0x70] sm:$0xff]  ;;  %v979_v63 = vrot.slane %v10313_v27, 1 }
  0x30   :  { %8583 = vmatprep.subr.bf16.mxu0 %v8582_v2  ;;  %8733 = vmatprep.subr.bf16.mxu1 %v8582_v2  ;;  %v713_v2 = vrot.slane %v10273_v12, 4  ;;  %v8596_v15 = vpack.c.bf16 %v113_v62, %v111_v61  ;;  %v6982_v62 = vld [vmem:[%s13160_s8 + $0x1c0] sm:$0xff] }
  0x32   :  { %6972 = vmatmul.mubr.msk.f32.vlgmr.msra.gmra.mrb[0].mxu0 %vm171_vm5, %v164_v8  ;;  %7114 = vmatmul.mubr.msk.f32.vlgmr.msra.gmra.mrb[0].mxu1 %vm171_vm5, %v974_v10  ;;  %v1516_v8 = vrot.slane %v10288_v17, 4  ;;  %v118_v10 = vld [vmem:[%s13160_s8 + $0x98] sm:$0xff]  ;;  %v10396_v13 = vsel %vm180_vm1, %v711_v60, %v713_v2  ;;  %v10410_v23 = vsel %vm180_vm1, %v713_v2, %v715_v14  ;;  %v8759_v60 = vpack.c.bf16 %v937_v54, %v123_v52 }
  0x33   :  { %8585 = vmatpush1.bf16.msra.mxu0 %v8584_v9  ;;  %8735 = vmatpush1.bf16.msra.mxu1 %v8584_v9  ;;  %v116_v9 = vld [vmem:[%s13160_s8 + $0x88] sm:$0xff]  ;;  %v6989_v2 = vld [vmem:[%s13160_s8 + $0x1f8] sm:$0xff] }
  0x34   :  { %8587 = vmatprep.subr.bf16.mxu0 %v8586_v20  ;;  %8737 = vmatprep.subr.bf16.mxu1 %v8586_v20  ;;  %v10402_v16 = vsel %vm180_vm1, %v1514_v1, %v1516_v8  ;;  %v980_v20 = vsel %vm161_vm4, %v977_v38, %v979_v63  ;;  %v8598_v24 = vpack.c.bf16 %v118_v10, %v116_v9  ;;  %v6984_v63 = vld [vmem:[%s13160_s8 + $0x1d0] sm:$0xff]  ;;  %v6987_v1 = vld [vmem:[%s13160_s8 + $0x1e8] sm:$0xff] }
  0x35   :  { %257 = vmatprep.mubr.f32.mxu0 %v13132_v7  ;;  %1065 = vmatprep.mubr.f32.mxu1 %v13132_v7  ;;  %v8602_v38 = vpack.c.bf16 %v122_v34, %v120_v26 }
  0x36   :  { %6973 = vmatmul.mubr.msk.f32.gmra.mrb[2].mxu0 %vm171_vm5, %v166_v41  ;;  %7115 = vmatmul.mubr.msk.f32.gmra.mrb[2].mxu1 %vm171_vm5, %v976_v42  ;;  %v121_v41 = vld [vmem:[%s13160_s8 + $0xb0] sm:$0xff]  ;;  %v124_v42 = vld [vmem:[%s13160_s8 + $0xc8] sm:$0xff] }
  0x37   :  { %8589 = vmatpush1.bf16.msra.mxu0 %v8588_v31  ;;  %8739 = vmatpush1.bf16.msra.mxu1 %v8588_v31  ;;  %v10419_v31 = vsel %vm180_vm1, %v1516_v8, %v1518_v18  ;;  %v8604_v49 = vpack.c.bf16 %v121_v41, %v119_v40 }
  0x38   :  { %8591 = vmatprep.subr.bf16.mxu0 %v8590_v45  ;;  %8741 = vmatprep.subr.bf16.mxu1 %v8590_v45  ;;  %v938_v45 = vld [vmem:[%s13160_s8 + $0xd8] sm:$0xf] }
  0x39   :  { %263 = vmatprep.mubr.f32.mxu0 %v13132_v7  ;;  %1071 = vmatprep.mubr.f32.mxu1 %v13132_v7  ;;  %v8756_v51 = vpack.c.bf16 %v938_v45, %v124_v42 }
  0x3a   :  { %6974 = vmatmul.mubr.msk.f32.gmra.mrb[4].mxu0 %vm171_vm5, %v168_v53  ;;  %7116 = vmatmul.mubr.msk.f32.gmra.mrb[4].mxu1 %vm171_vm5, %v978_v57  ;;  %v125_v53 = vld [vmem:[%s13160_s8 + $0xd0] sm:$0xf]  ;;  %v6985_v57 = vld [vmem:[%s13160_s8 + $0x1d8] sm:$0xff] }
  0x3b   :  { %8593 = vmatpush1.bf16.msra.mxu0 %v8592_v50  ;;  %8743 = vmatpush1.bf16.msra.mxu1 %v8592_v50  ;;  %v8606_v50 = vpack.c.bf16 %v126_v44, %v124_v42  ;;  %v8609_v58 = vpack.c.bf16 %v125_v53, %v123_v52  ;;  %v8612_v61 = vpack.c.bf16 %v6985_v57, %v6983_v56 }
  0x3c   :  { %8595 = vmatprep.subr.bf16.mxu0 %v8594_v5  ;;  %8745 = vmatprep.subr.bf16.mxu1 %v8594_v5 }
  0x3d   :  { %269 = vmatprep.mubr.f32.mxu0 %v13132_v7  ;;  %1077 = vmatprep.mubr.f32.mxu1 %v13132_v7 }
  0x3e   :  { %6975 = vmatmul.mubr.msk.f32.gmra.mrb[6].mxu0 %vm171_vm5, %v170_v19  ;;  %7117 = vmatmul.mubr.msk.f32.gmra.mrb[6].mxu1 %vm171_vm5, %v980_v20 }
  0x3f   :  { %8597 = vmatpush1.bf16.msra.mxu0 %v8596_v15  ;;  %8747 = vmatpush1.bf16.msra.mxu1 %v8596_v15 }
  0x40   :  { %8599 = vmatprep.subr.bf16.mxu0 %v8598_v24  ;;  %8749 = vmatprep.subr.bf16.mxu1 %v8598_v24 }
  0x41   :  { %354 = vmatprep.mubr.f32.mxu0 %v13132_v7  ;;  %1162 = vmatprep.mubr.f32.mxu1 %v13132_v7 }
  0x43   :  { %8601 = vmatpush1.bf16.msra.mxu0 %v8600_v37  ;;  %8751 = vmatpush1.bf16.msra.mxu1 %v8600_v37 }
  0x44   :  { %8603 = vmatprep.subr.bf16.mxu0 %v8602_v38  ;;  %8753 = vmatprep.subr.bf16.mxu1 %v8602_v38 }
  0x47   :  { %8605 = vmatpush1.bf16.msra.mxu0 %v8604_v49  ;;  %8755 = vmatpush1.bf16.msra.mxu1 %v8604_v49 }
  0x48   :  { %8608 = vmatprep.subr.msk.bf16.mxu0 %vm10225_vm3, %v8606_v50  ;;  %8758 = vmatprep.subr.msk.bf16.mxu1 %vm10225_vm3, %v8756_v51 }
  0x49   :  { %32 = vsyncpa [#allocation4], 0  ;;  %v8614_v5 = vpack.c.bf16 %v6984_v63, %v6982_v62  ;;  %v8616_v8 = vpack.c.bf16 %v6989_v2, %v6987_v1  ;;  %v6986_v9 = vld [vmem:[%s13160_s8 + $0x1e0] sm:$0xff]  ;;  %v6988_v10 = vld [vmem:[%s13160_s8 + $0x1f0] sm:$0xff]  ;;  %vm408_vm6 = vcmask 1045504   ;;  %s13164_s9 = sld [smem:[#allocation24_spill]] }
  0x4a   :  { %v6991_v14 = vld [vmem:[%s13160_s8 + $0x208] sm:$0xff]  ;;  %v6993_v15 = vld [vmem:[%s13160_s8 + $0x218] sm:$0xff]  ;;  %v8618_v18 = vpack.c.bf16 %v6988_v10, %v6986_v9  ;;  %v6990_v20 = vld [vmem:[%s13160_s8 + $0x200] sm:$0xff]  ;;  %v409_v10 = vrot.slane %v10169_v32, 2  ;;  %s13166_s2 = sld [smem:[#allocation21_spill]]  ;;  %s13167_s7 = sld [smem:[#allocation25_spill]] }
  0x4b   :  { %8611 = vmatpush1.bf16.msk.msra.mxu0 %vm10225_vm3, %v8609_v58  ;;  %8761 = vmatpush1.bf16.msk.msra.mxu1 %vm10225_vm3, %v8759_v60  ;;  %v8620_v19 = vpack.c.bf16 %v6993_v15, %v6991_v14  ;;  %v6992_v24 = vld [vmem:[%s13160_s8 + $0x210] sm:$0xff]  ;;  %v6995_v25 = vld [vmem:[%s13160_s8 + $0x228] sm:$0xff]  ;;  %v6997_v30 = vld [vmem:[%s13160_s8 + $0x238] sm:$0xff]  ;;  %v410_v14 = vrot.slane %v10174_v33, 2  ;;  %s13168_s0 = sld [smem:[#allocation22_spill]]  ;;  %vm1890_vm7 = vcmask 64512  }
  0x4c   :  { %8613 = vmatprep.subr.bf16.mxu0 %v8612_v61  ;;  %8763 = vmatprep.subr.bf16.mxu1 %v8612_v61  ;;  %v8622_v26 = vpack.c.bf16 %v6992_v24, %v6990_v20  ;;  %v8624_v34 = vpack.c.bf16 %v6997_v30, %v6995_v25  ;;  %v6994_v37 = vld [vmem:[%s13160_s8 + $0x220] sm:$0xff]  ;;  %v6996_v38 = vld [vmem:[%s13160_s8 + $0x230] sm:$0xff]  ;;  %v6999_v40 = vld [vmem:[%s13160_s8 + $0x248] sm:$0xff]  ;;  %v1216_v20 = vrot.slane %v10184_v36, 2  ;;  %s13169_s5 = sld [smem:[#allocation23_spill]]  ;;  %vm2154_vm8 = vcmask 1040384  }
  0x4d   :  { %v7001_v41 = vld [vmem:[%s13160_s8 + $0x258] sm:$0xff]  ;;  %v8626_v42 = vpack.c.bf16 %v6996_v38, %v6994_v37  ;;  %v6998_v45 = vld [vmem:[%s13160_s8 + $0x240] sm:$0xff]  ;;  %v7000_v49 = vld [vmem:[%s13160_s8 + $0x250] sm:$0xff]  ;;  %v411_v25 = vsel %vm408_vm6, %v409_v10, %v410_v14  ;;  %v1218_v37 = vrot.slane %v10257_v4, 2  ;;  %vm2219_vm9 = vcmask 261120   ;;  %s13170_s11 = sld [smem:[#allocation26_spill]] }
  0x4e   :  { %6978 = vmatmul.mubr.msk.f32.vlgmr.msra.gmra.mrb[0].mxu0 %vm171_vm5, %v10169_v32  ;;  %7120 = vmatmul.mubr.msk.f32.vlgmr.msra.gmra.mrb[0].mxu1 %vm171_vm5, %v10179_v35  ;;  %v8628_v44 = vpack.c.bf16 %v7001_v41, %v6999_v40  ;;  %v7003_v50 = vld [vmem:[%s13160_s8 + $0x268] sm:$0xff]  ;;  %v7005_v51 = vld [vmem:[%s13160_s8 + $0x278] sm:$0xff]  ;;  %v8630_v52 = vpack.c.bf16 %v7000_v49, %v6998_v45  ;;  %v7002_v54 = vld [vmem:[%s13160_s8 + $0x260] sm:$0xff]  ;;  %s13171_s30 = sld [smem:[#allocation27_spill]]  ;;  %s9953_s28 = smov 8   ;;  %vm2354_vm10 = vcmask 982016  }
  0x4f   :  { %8615 = vmatpush1.bf16.msra.mxu0 %v8614_v5  ;;  %8765 = vmatpush1.bf16.msra.mxu1 %v8614_v5  ;;  %v8632_v53 = vpack.c.bf16 %v7005_v51, %v7003_v50  ;;  %v7004_v56 = vld [vmem:[%s13160_s8 + $0x270] sm:$0xff]  ;;  %v7007_v57 = vld [vmem:[%s13160_s8 + $0x288] sm:$0xff]  ;;  %v7009_v58 = vld [vmem:[%s13160_s8 + $0x298] sm:$0xf]  ;;  %v1219_v49 = vsel %vm408_vm6, %v1216_v20, %v1218_v37  ;;  %v1220_v50 = vrot.slane %v10288_v17, 2  ;;  %s13172_s29 = sld [smem:[#allocation28_spill]] }
  0x50   :  { %8617 = vmatprep.subr.bf16.mxu0 %v8616_v8  ;;  %8767 = vmatprep.subr.bf16.mxu1 %v8616_v8  ;;  %v7151_v60 = vld [vmem:[%s13160_s8 + $0x298] sm:$0xf]  ;;  %v8634_v61 = vpack.c.bf16 %v7004_v56, %v7002_v54  ;;  %v8636_v62 = vpack.c.bf16 %v7009_v58, %v7007_v57  ;;  %v7006_v1 = vld [vmem:[%s13160_s8 + $0x280] sm:$0xff]  ;;  %v7008_v2 = vld [vmem:[%s13160_s8 + $0x290] sm:$0xf]  ;;  %v416_v58 = vrot.slane %v10295_v21, 2 }
  0x51   :  { %360 = vmatprep.mubr.f32.mxu0 %v13132_v7  ;;  %1168 = vmatprep.mubr.f32.mxu1 %v13132_v7  ;;  %v8786_v63 = vpack.c.bf16 %v7151_v60, %v7007_v57  ;;  %v7150_v5 = vld [vmem:[%s13160_s8 + $0x290] sm:$0xf]  ;;  %v7017_v8 = vld [vmem:[%s13160_s8 + $0x2a8] sm:$0xff]  ;;  %v7019_v9 = vld [vmem:[%s13160_s8 + $0x2b8] sm:$0xff]  ;;  %v8639_v15 = vpack.c.bf16 %v7008_v2, %v7006_v1  ;;  %v1221_v57 = vsel %vm408_vm6, %v1218_v37, %v1220_v50  ;;  %v1222_v60 = vrot.slane %v10313_v27, 2  ;;  %s13200_s1 = sld [smem:[#allocation29_spill]] }
  0x52   :  { %6979 = vmatmul.mubr.msk.f32.gmra.mrb[2].mxu0 %vm171_vm5, %v10174_v33  ;;  %7121 = vmatmul.mubr.msk.f32.gmra.mrb[2].mxu1 %vm171_vm5, %v10184_v36  ;;  %v8642_v24 = vpack.c.bf16 %v7019_v9, %v7017_v8  ;;  %v7016_v32 = vld [vmem:[%s13160_s8 + $0x2a0] sm:$0xff]  ;;  %v7018_v33 = vld [vmem:[%s13160_s8 + $0x2b0] sm:$0xff]  ;;  %v7023_v36 = vld [vmem:[%s13160_s8 + $0x2d8] sm:$0xff]  ;;  %vm9956_vm11 = vmmov 0   ;;  %vm4324_vm12 = vcmask 130048   ;;  %vm4730_vm13 = vcmask 785408  }
  0x53   :  { %8619 = vmatpush1.bf16.msra.mxu0 %v8618_v18  ;;  %8769 = vmatpush1.bf16.msra.mxu1 %v8618_v18  ;;  %v8789_v18 = vpack.c.bf16 %v7150_v5, %v7006_v1  ;;  %v8644_v30 = vpack.c.bf16 %v7018_v33, %v7016_v32  ;;  %v7020_v40 = vld [vmem:[%s13160_s8 + $0x2c0] sm:$0xff]  ;;  %v7022_v41 = vld [vmem:[%s13160_s8 + $0x2d0] sm:$0xff]  ;;  %v7031_v54 = vld [vmem:[%s13160_s8 + $0x318] sm:$0xff]  ;;  %v1223_v5 = vsel %vm408_vm6, %v1220_v50, %v1222_v60  ;;  %vm5150_vm14 = vcmask 523264  }
  0x54   :  { %8621 = vmatprep.subr.bf16.mxu0 %v8620_v19  ;;  %8771 = vmatprep.subr.bf16.mxu1 %v8620_v19  ;;  %v1215_v19 = vrot.slane %v10179_v35, 2  ;;  %v7021_v35 = vld [vmem:[%s13160_s8 + $0x2c8] sm:$0xff]  ;;  %v7035_v21 = vld [vmem:[%s13160_s8 + $0x338] sm:$0xff]  ;;  %v7032_v9 = vld [vmem:[%s13160_s8 + $0x320] sm:$0xff]  ;;  %vm6049_vm15 = vcmask 457728  }
  0x55   :  { %366 = vmatprep.mubr.f32.mxu0 %v13132_v7  ;;  %1174 = vmatprep.mubr.f32.mxu1 %v13132_v7  ;;  %v8646_v38 = vpack.c.bf16 %v7023_v36, %v7021_v35  ;;  %v7033_v1 = vld [vmem:[%s13160_s8 + $0x328] sm:$0xff]  ;;  %v7034_v10 = vld [vmem:[%s13160_s8 + $0x330] sm:$0xff]  ;;  %v7043_v33 = vld [vmem:[%s13160_s8 + $0x378] sm:$0xf] }
  0x56   :  { %6980 = vmatmul.mubr.msk.f32.gmra.mrb[4].mxu0 %vm171_vm5, %v10252_v3  ;;  %7122 = vmatmul.mubr.msk.f32.gmra.mrb[4].mxu1 %vm171_vm5, %v10257_v4  ;;  %v414_v4 = vrot.slane %v10273_v12, 2  ;;  %v8658_v8 = vpack.c.bf16 %v7035_v21, %v7033_v1  ;;  %v7041_v32 = vld [vmem:[%s13160_s8 + $0x368] sm:$0xff]  ;;  %v7185_v35 = vld [vmem:[%s13160_s8 + $0x378] sm:$0xf]  ;;  %v7184_v37 = vld [vmem:[%s13160_s8 + $0x370] sm:$0xf] }
  0x57   :  { %8623 = vmatpush1.bf16.msra.mxu0 %v8622_v26  ;;  %8773 = vmatpush1.bf16.msra.mxu1 %v8622_v26  ;;  %v1217_v26 = vsel %vm408_vm6, %v1215_v19, %v1216_v20  ;;  %v7036_v20 = vld [vmem:[%s13160_s8 + $0x340] sm:$0xff] }
  0x58   :  { %8625 = vmatprep.subr.bf16.mxu0 %v8624_v34  ;;  %8775 = vmatprep.subr.bf16.mxu1 %v8624_v34  ;;  %v412_v34 = vrot.slane %v10252_v3, 2  ;;  %v7027_v3 = vld [vmem:[%s13160_s8 + $0x2f8] sm:$0xff]  ;;  %v417_v2 = vsel %vm408_vm6, %v414_v4, %v416_v58  ;;  %v7060_v58 = vld [vmem:[%s13160_s8 + $0x3d0] sm:$0xff]  ;;  %v1720_v55 = vld [vmem:[%s13164_s9 + $0x80] sm:$0xff] }
  0x59   :  { %372 = vmatprep.mubr.f32.mxu0 %v13132_v7  ;;  %1180 = vmatprep.mubr.f32.mxu1 %v13132_v7 }
  0x5a   :  { %6981 = vmatmul.mubr.msk.f32.gmra.mrb[6].mxu0 %vm171_vm5, %v10273_v12  ;;  %7123 = vmatmul.mubr.msk.f32.gmra.mrb[6].mxu1 %vm171_vm5, %v10288_v17  ;;  %v413_v45 = vsel %vm408_vm6, %v410_v14, %v412_v34  ;;  %v7026_v12 = vld [vmem:[%s13160_s8 + $0x2f0] sm:$0xff]  ;;  %v415_v17 = vsel %vm408_vm6, %v412_v34, %v414_v4  ;;  %v7037_v14 = vld [vmem:[%s13160_s8 + $0x348] sm:$0xff]  ;;  %v7050_v4 = vld [vmem:[%s13160_s8 + $0x380] sm:$0xff] }
  0x5b   :  { %8627 = vmatpush1.bf16.msra.mxu0 %v8626_v42  ;;  %8777 = vmatpush1.bf16.msra.mxu1 %v8626_v42  ;;  %v7025_v42 = vld [vmem:[%s13160_s8 + $0x2e8] sm:$0xff]  ;;  %v7042_v34 = vld [vmem:[%s13160_s8 + $0x370] sm:$0xf] }
  0x5c   :  { %8629 = vmatprep.subr.bf16.mxu0 %v8628_v44  ;;  %8779 = vmatprep.subr.bf16.mxu1 %v8628_v44  ;;  %v8648_v44 = vpack.c.bf16 %v7022_v41, %v7020_v40  ;;  %v8650_v51 = vpack.c.bf16 %v7027_v3, %v7025_v42  ;;  %v7053_v40 = vld [vmem:[%s13160_s8 + $0x398] sm:$0xff] }
  0x5d   :  { %496 = vmatprep.mubr.f32.mxu0 %v13132_v7  ;;  %1302 = vmatprep.mubr.f32.mxu1 %v13132_v7 }
  0x5f   :  { %8631 = vmatpush1.bf16.msra.mxu0 %v8630_v52  ;;  %8781 = vmatpush1.bf16.msra.mxu1 %v8630_v52  ;;  %v7024_v52 = vld [vmem:[%s13160_s8 + $0x2e0] sm:$0xff] }
  0x60   :  { %8633 = vmatprep.subr.bf16.mxu0 %v8632_v53  ;;  %8783 = vmatprep.subr.bf16.mxu1 %v8632_v53  ;;  %v7029_v53 = vld [vmem:[%s13160_s8 + $0x308] sm:$0xff]  ;;  %v8652_v56 = vpack.c.bf16 %v7026_v12, %v7024_v52  ;;  %v7054_v52 = vld [vmem:[%s13160_s8 + $0x3a0] sm:$0xff]  ;;  %v7056_v12 = vld [vmem:[%s13160_s8 + $0x3b0] sm:$0xff] }
  0x63   :  { %8635 = vmatpush1.bf16.msra.mxu0 %v8634_v61  ;;  %8785 = vmatpush1.bf16.msra.mxu1 %v8634_v61  ;;  %v8654_v61 = vpack.c.bf16 %v7031_v54, %v7029_v53  ;;  %v7059_v53 = vld [vmem:[%s13160_s8 + $0x3c8] sm:$0xff]  ;;  %v7061_v54 = vld [vmem:[%s13160_s8 + $0x3d8] sm:$0xff] }
  0x64   :  { %8638 = vmatprep.subr.msk.bf16.mxu0 %vm10225_vm3, %v8636_v62  ;;  %8788 = vmatprep.subr.msk.bf16.mxu1 %vm10225_vm3, %v8786_v63  ;;  %v7028_v62 = vld [vmem:[%s13160_s8 + $0x300] sm:$0xff]  ;;  %v7030_v63 = vld [vmem:[%s13160_s8 + $0x310] sm:$0xff] }
  0x65   :  { %v8656_v27 = vpack.c.bf16 %v7030_v63, %v7028_v62  ;;  %v7062_v62 = vld [vmem:[%s13160_s8 + $0x3e0] sm:$0xff]  ;;  %v7064_v63 = vld [vmem:[%s13160_s8 + $0x3f0] sm:$0xff] }
  0x66   :  { %v8686_v1 = vpack.c.bf16 %v7064_v63, %v7062_v62  ;;  %v1716_v63 = vld [vmem:[%s13164_s9 + $0x60] sm:$0xff] }
  0x67   :  { %8641 = vmatpush1.bf16.msk.msra.mxu0 %vm10225_vm3, %v8639_v15  ;;  %8791 = vmatpush1.bf16.msk.msra.mxu1 %vm10225_vm3, %v8789_v18  ;;  %v7039_v15 = vld [vmem:[%s13160_s8 + $0x358] sm:$0xff]  ;;  %v8660_v18 = vpack.c.bf16 %v7034_v10, %v7032_v9  ;;  %v7070_v9 = vld [vmem:[%s13160_s8 + $0x420] sm:$0xff]  ;;  %v7072_v10 = vld [vmem:[%s13160_s8 + $0x430] sm:$0xff] }
  0x68   :  { %8643 = vmatprep.subr.bf16.mxu0 %v8642_v24  ;;  %8793 = vmatprep.subr.bf16.mxu1 %v8642_v24  ;;  %v8662_v19 = vpack.c.bf16 %v7039_v15, %v7037_v14  ;;  %v7038_v24 = vld [vmem:[%s13160_s8 + $0x350] sm:$0xff]  ;;  %v7219_v14 = vld [vmem:[%s13160_s8 + $0x458] sm:$0xf]  ;;  %v8694_v15 = vpack.c.bf16 %v7072_v10, %v7070_v9  ;;  %v98_v10 = vld [vmem:[%s13166_s2] sm:$0x3] }
  0x69   :  { %v8664_v36 = vpack.c.bf16 %v7038_v24, %v7036_v20  ;;  %v7074_v20 = vld [vmem:[%s13160_s8 + $0x440] sm:$0xff]  ;;  %v7076_v24 = vld [vmem:[%s13160_s8 + $0x450] sm:$0xf] }
  0x6a   :  { %7012 = vmatmul.mubr.msk.f32.vlgmr.msra.gmra.mrb[0].mxu0 %vm171_vm5, %v411_v25  ;;  %7154 = vmatmul.mubr.msk.f32.vlgmr.msra.gmra.mrb[0].mxu1 %vm171_vm5, %v1217_v26  ;;  %v8666_v25 = vpack.c.bf16 %v7043_v33, %v7041_v32  ;;  %v7040_v26 = vld [vmem:[%s13160_s8 + $0x360] sm:$0xff]  ;;  %v8699_v33 = vpack.c.bf16 %v7076_v24, %v7074_v20 }
  0x6b   :  { %8645 = vmatpush1.bf16.msra.mxu0 %v8644_v30  ;;  %8795 = vmatpush1.bf16.msra.mxu1 %v8644_v30  ;;  %v8816_v30 = vpack.c.bf16 %v7185_v35, %v7041_v32  ;;  %v8669_v41 = vpack.c.bf16 %v7042_v34, %v7040_v26  ;;  %v8819_v42 = vpack.c.bf16 %v7184_v37, %v7040_v26  ;;  %v7218_v32 = vld [vmem:[%s13160_s8 + $0x450] sm:$0xf]  ;;  %v1724_v26 = vld [vmem:[%s13164_s9 + $0xa0] sm:$0xff]  ;;  %v1725_v34 = vld [vmem:[%s13164_s9 + $0xa8] sm:$0xff] }
  0x6c   :  { %8647 = vmatprep.subr.bf16.mxu0 %v8646_v38  ;;  %8797 = vmatprep.subr.bf16.mxu1 %v8646_v38  ;;  %v7051_v38 = vld [vmem:[%s13160_s8 + $0x388] sm:$0xff]  ;;  %v8849_v35 = vpack.c.bf16 %v7218_v32, %v7074_v20  ;;  %v8860_v37 = vpack.c.bf16 %v1725_v34, %v1724_v26 }
  0x6d   :  { %502 = vmatprep.mubr.f32.mxu0 %v13132_v7  ;;  %1308 = vmatprep.mubr.f32.mxu1 %v13132_v7  ;;  %v8672_v3 = vpack.c.bf16 %v7053_v40, %v7051_v38  ;;  %v1708_v38 = vld [vmem:[%s13164_s9 + $0x20] sm:$0xff]  ;;  %v1709_v40 = vld [vmem:[%s13164_s9 + $0x28] sm:$0xff] }
  0x6e   :  { %7013 = vmatmul.mubr.msk.f32.gmra.mrb[2].mxu0 %vm171_vm5, %v413_v45  ;;  %7155 = vmatmul.mubr.msk.f32.gmra.mrb[2].mxu1 %vm171_vm5, %v1219_v49  ;;  %v7055_v45 = vld [vmem:[%s13160_s8 + $0x3a8] sm:$0xff]  ;;  %v7057_v49 = vld [vmem:[%s13160_s8 + $0x3b8] sm:$0xff] }
  0x6f   :  { %8649 = vmatpush1.bf16.msra.mxu0 %v8648_v44  ;;  %8799 = vmatpush1.bf16.msra.mxu1 %v8648_v44  ;;  %v7052_v44 = vld [vmem:[%s13160_s8 + $0x390] sm:$0xff] }
  0x70   :  { %8651 = vmatprep.subr.bf16.mxu0 %v8650_v51  ;;  %8801 = vmatprep.subr.bf16.mxu1 %v8650_v51  ;;  %v8674_v50 = vpack.c.bf16 %v7052_v44, %v7050_v4  ;;  %v8676_v51 = vpack.c.bf16 %v7057_v49, %v7055_v45  ;;  %v1710_v44 = vld [vmem:[%s13164_s9 + $0x30] sm:$0xff]  ;;  %v1711_v45 = vld [vmem:[%s13164_s9 + $0x38] sm:$0xff] }
  0x71   :  { %508 = vmatprep.mubr.f32.mxu0 %v13132_v7  ;;  %1314 = vmatprep.mubr.f32.mxu1 %v13132_v7  ;;  %v8866_v49 = vpack.c.bf16 %v1711_v45, %v1710_v44 }
  0x72   :  { %7014 = vmatmul.mubr.msk.f32.gmra.mrb[4].mxu0 %vm171_vm5, %v415_v17  ;;  %7156 = vmatmul.mubr.msk.f32.gmra.mrb[4].mxu1 %vm171_vm5, %v1221_v57  ;;  %v8678_v17 = vpack.c.bf16 %v7056_v12, %v7054_v52  ;;  %v7058_v57 = vld [vmem:[%s13160_s8 + $0x3c0] sm:$0xff] }
  0x73   :  { %8653 = vmatpush1.bf16.msra.mxu0 %v8652_v56  ;;  %8803 = vmatpush1.bf16.msra.mxu1 %v8652_v56  ;;  %v8680_v56 = vpack.c.bf16 %v7061_v54, %v7059_v53  ;;  %v8682_v60 = vpack.c.bf16 %v7060_v58, %v7058_v57  ;;  %v1712_v12 = vld [vmem:[%s13164_s9 + $0x40] sm:$0xff]  ;;  %v1713_v53 = vld [vmem:[%s13164_s9 + $0x48] sm:$0xff]  ;;  %v1714_v58 = vld [vmem:[%s13164_s9 + $0x50] sm:$0xff] }
  0x74   :  { %8655 = vmatprep.subr.bf16.mxu0 %v8654_v61  ;;  %8805 = vmatprep.subr.bf16.mxu1 %v8654_v61  ;;  %v8870_v54 = vpack.c.bf16 %v1713_v53, %v1712_v12 }
  0x75   :  { %514 = vmatprep.mubr.f32.mxu0 %v13132_v7  ;;  %1320 = vmatprep.mubr.f32.mxu1 %v13132_v7 }
  0x76   :  { %7015 = vmatmul.mubr.msk.f32.gmra.mrb[6].mxu0 %vm171_vm5, %v417_v2  ;;  %7157 = vmatmul.mubr.msk.f32.gmra.mrb[6].mxu1 %vm171_vm5, %v1223_v5  ;;  %v7068_v2 = vld [vmem:[%s13160_s8 + $0x410] sm:$0xff] }
  0x77   :  { %8657 = vmatpush1.bf16.msra.mxu0 %v8656_v27  ;;  %8807 = vmatpush1.bf16.msra.mxu1 %v8656_v27  ;;  %v7066_v27 = vld [vmem:[%s13160_s8 + $0x400] sm:$0xff] }
  0x78   :  { %8659 = vmatprep.subr.bf16.mxu0 %v8658_v8  ;;  %8809 = vmatprep.subr.bf16.mxu1 %v8658_v8  ;;  %v8690_v5 = vpack.c.bf16 %v7068_v2, %v7066_v27  ;;  %v1718_v2 = vld [vmem:[%s13164_s9 + $0x70] sm:$0xff] }
  0x79   :  { %646 = vmatprep.mubr.f32.mxu0 %v13132_v7  ;;  %1450 = vmatprep.mubr.f32.mxu1 %v13132_v7 }
  0x7b   :  { %8661 = vmatpush1.bf16.msra.mxu0 %v8660_v18  ;;  %8811 = vmatpush1.bf16.msra.mxu1 %v8660_v18 }
  0x7c   :  { %8663 = vmatprep.subr.bf16.mxu0 %v8662_v19  ;;  %8813 = vmatprep.subr.bf16.mxu1 %v8662_v19 }
  0x7f   :  { %8665 = vmatpush1.bf16.msra.mxu0 %v8664_v36  ;;  %8815 = vmatpush1.bf16.msra.mxu1 %v8664_v36  ;;  %v1706_v36 = vld [vmem:[%s13164_s9 + $0x10] sm:$0xff] }
  0x80   :  { %8668 = vmatprep.subr.msk.bf16.mxu0 %vm10225_vm3, %v8666_v25  ;;  %8818 = vmatprep.subr.msk.bf16.mxu1 %vm10225_vm3, %v8816_v30  ;;  %v1707_v25 = vld [vmem:[%s13164_s9 + $0x18] sm:$0xff] }
  0x81   :  { %v8858_v30 = vpack.c.bf16 %v1707_v25, %v1706_v36 }
  0x83   :  { %8671 = vmatpush1.bf16.msk.msra.mxu0 %vm10225_vm3, %v8669_v41  ;;  %8821 = vmatpush1.bf16.msk.msra.mxu1 %vm10225_vm3, %v8819_v42  ;;  %v8862_v41 = vpack.c.bf16 %v1709_v40, %v1708_v38  ;;  %v1726_v42 = vld [vmem:[%s13164_s9 + $0xb0] sm:$0xff] }
  0x84   :  { %8673 = vmatprep.subr.bf16.mxu0 %v8672_v3  ;;  %8823 = vmatprep.subr.bf16.mxu1 %v8672_v3  ;;  %v1727_v3 = vld [vmem:[%s13164_s9 + $0xb8] sm:$0xff] }
  0x85   :  { %v8864_v4 = vpack.c.bf16 %v1727_v3, %v1726_v42 }
  0x86   :  { %7046 = vmatmul.mubr.msk.f32.vlgmr.msra.gmra.mrb[0].mxu0 %vm171_vm5, %v10208_v47  ;;  %7188 = vmatmul.mubr.msk.f32.vlgmr.msra.gmra.mrb[0].mxu1 %vm171_vm5, %v10213_v48  ;;  %v7063_v47 = vld [vmem:[%s13160_s8 + $0x3e8] sm:$0xff]  ;;  %v7065_v48 = vld [vmem:[%s13160_s8 + $0x3f8] sm:$0xff] }
  0x87   :  { %8675 = vmatpush1.bf16.msra.mxu0 %v8674_v50  ;;  %8825 = vmatpush1.bf16.msra.mxu1 %v8674_v50  ;;  %v8684_v61 = vpack.c.bf16 %v7065_v48, %v7063_v47  ;;  %v1728_v50 = vld [vmem:[%s13164_s9 + $0xc0] sm:$0xff]  ;;  %v1715_v47 = vld [vmem:[%s13164_s9 + $0x58] sm:$0xff] }
  0x88   :  { %8677 = vmatprep.subr.bf16.mxu0 %v8676_v51  ;;  %8827 = vmatprep.subr.bf16.mxu1 %v8676_v51  ;;  %v1729_v51 = vld [vmem:[%s13164_s9 + $0xc8] sm:$0xff]  ;;  %v8874_v48 = vpack.c.bf16 %v1715_v47, %v1714_v58 }
  0x89   :  { %652 = vmatprep.mubr.f32.mxu0 %v13132_v7  ;;  %1456 = vmatprep.mubr.f32.mxu1 %v13132_v7  ;;  %v8868_v52 = vpack.c.bf16 %v1729_v51, %v1728_v50 }
  0x8a   :  { %7047 = vmatmul.mubr.msk.f32.gmra.mrb[2].mxu0 %vm171_vm5, %v10300_v22  ;;  %7189 = vmatmul.mubr.msk.f32.gmra.mrb[2].mxu1 %vm171_vm5, %v10318_v28  ;;  %v7067_v22 = vld [vmem:[%s13160_s8 + $0x408] sm:$0xff]  ;;  %v7069_v28 = vld [vmem:[%s13160_s8 + $0x418] sm:$0xff] }
  0x8b   :  { %8679 = vmatpush1.bf16.msra.mxu0 %v8678_v17  ;;  %8829 = vmatpush1.bf16.msra.mxu1 %v8678_v17  ;;  %v8688_v21 = vpack.c.bf16 %v7069_v28, %v7067_v22  ;;  %v1730_v17 = vld [vmem:[%s13164_s9 + $0xd0] sm:$0xff]  ;;  %v1717_v22 = vld [vmem:[%s13164_s9 + $0x68] sm:$0xff] }
  0x8c   :  { %8681 = vmatprep.subr.bf16.mxu0 %v8680_v56  ;;  %8831 = vmatprep.subr.bf16.mxu1 %v8680_v56  ;;  %v1731_v56 = vld [vmem:[%s13164_s9 + $0xd8] sm:$0xff]  ;;  %v8878_v28 = vpack.c.bf16 %v1717_v22, %v1716_v63 }
  0x8d   :  { %658 = vmatprep.mubr.f32.mxu0 %v13132_v7  ;;  %1462 = vmatprep.mubr.f32.mxu1 %v13132_v7  ;;  %v8872_v57 = vpack.c.bf16 %v1731_v56, %v1730_v17 }
  0x8e   :  { %7048 = vmatmul.mubr.msk.f32.gmra.mrb[4].mxu0 %vm171_vm5, %v10321_v29  ;;  %7190 = vmatmul.mubr.msk.f32.gmra.mrb[4].mxu1 %vm171_vm5, %v10334_v39  ;;  %v7071_v29 = vld [vmem:[%s13160_s8 + $0x428] sm:$0xff]  ;;  %v7073_v39 = vld [vmem:[%s13160_s8 + $0x438] sm:$0xff] }
  0x8f   :  { %8683 = vmatpush1.bf16.msra.mxu0 %v8682_v60  ;;  %8833 = vmatpush1.bf16.msra.mxu1 %v8682_v60  ;;  %v8692_v8 = vpack.c.bf16 %v7073_v39, %v7071_v29  ;;  %v1732_v60 = vld [vmem:[%s13164_s9 + $0xe0] sm:$0xff]  ;;  %v1719_v29 = vld [vmem:[%s13164_s9 + $0x78] sm:$0xff] }
  0x90   :  { %8685 = vmatprep.subr.bf16.mxu0 %v8684_v61  ;;  %8835 = vmatprep.subr.bf16.mxu1 %v8684_v61  ;;  %v1733_v61 = vld [vmem:[%s13164_s9 + $0xe8] sm:$0xff]  ;;  %v8882_v39 = vpack.c.bf16 %v1719_v29, %v1718_v2 }
  0x91   :  { %664 = vmatprep.mubr.f32.mxu0 %v13132_v7  ;;  %1468 = vmatprep.mubr.f32.mxu1 %v13132_v7  ;;  %v8876_v62 = vpack.c.bf16 %v1733_v61, %v1732_v60 }
  0x92   :  { %7049 = vmatmul.mubr.msk.f32.gmra.mrb[6].mxu0 %vm171_vm5, %v10340_v43  ;;  %7191 = vmatmul.mubr.msk.f32.gmra.mrb[6].mxu1 %vm171_vm5, %v10344_v46  ;;  %v7075_v43 = vld [vmem:[%s13160_s8 + $0x448] sm:$0xff]  ;;  %v7077_v46 = vld [vmem:[%s13160_s8 + $0x458] sm:$0xf] }
  0x93   :  { %8687 = vmatpush1.bf16.msra.mxu0 %v8686_v1  ;;  %8837 = vmatpush1.bf16.msra.mxu1 %v8686_v1  ;;  %v8696_v18 = vpack.c.bf16 %v7077_v46, %v7075_v43  ;;  %v8846_v19 = vpack.c.bf16 %v7219_v14, %v7075_v43  ;;  %v1734_v1 = vld [vmem:[%s13164_s9 + $0xf0] sm:$0xff] }
  0x94   :  { %8689 = vmatprep.subr.bf16.mxu0 %v8688_v21  ;;  %8839 = vmatprep.subr.bf16.mxu1 %v8688_v21  ;;  %v1735_v21 = vld [vmem:[%s13164_s9 + $0xf8] sm:$0xff] }
  0x95   :  { %795 = vmatprep.mubr.f32.mxu0 %v13132_v7  ;;  %1598 = vmatprep.mubr.f32.mxu1 %v13132_v7  ;;  %v8880_v27 = vpack.c.bf16 %v1735_v21, %v1734_v1 }
  0x97   :  { %8691 = vmatpush1.bf16.msra.mxu0 %v8690_v5  ;;  %8841 = vmatpush1.bf16.msra.mxu1 %v8690_v5  ;;  %v829_v5 = vlaneseq }
  0x98   :  { %8693 = vmatprep.subr.bf16.mxu0 %v8692_v8  ;;  %8843 = vmatprep.subr.bf16.mxu1 %v8692_v8 }
  0x99   :  { %v830_v8 = vshrl.u32 %v829_v5, 7 }
  0x9b   :  { %8695 = vmatpush1.bf16.msra.mxu0 %v8694_v15  ;;  %8845 = vmatpush1.bf16.msra.mxu1 %v8694_v15  ;;  %v10959_v9 = vsub.s32 0, %v830_v8  ;;  %v835_v43 = vsub.s32 1, %v830_v8 }
  0x9c   :  { %8698 = vmatprep.subr.msk.bf16.mxu0 %vm10225_vm3, %v8696_v18  ;;  %8848 = vmatprep.subr.msk.bf16.mxu1 %vm10225_vm3, %v8846_v19 }
  0x9d   :  { %13165 = vst [vmem:[#allocation6_spill] sm:$0xff] %v10959_v9  ;;  %v832_v46 = vrot.slane %v98_v10, %v10959_v9  ;;  %v836_v14 = vrot.slane %v98_v10, %v835_v43 }
  0x9f   :  { %8701 = vmatpush1.bf16.msk.msra.mxu0 %vm10225_vm3, %v8699_v33  ;;  %8851 = vmatpush1.bf16.msk.msra.mxu1 %vm10225_vm3, %v8849_v35 }
  0xa2   :  { %7080 = vmatmul.mubr.msk.f32.vlgmr.msra.gmra.mrb[0].mxu0 %vm171_vm5, %v10365_v59  ;;  %7222 = vmatmul.mubr.msk.f32.vlgmr.msra.gmra.mrb[0].mxu1 %vm171_vm5, %v10376_v0  ;;  %v1721_v59 = vld [vmem:[%s13164_s9 + $0x88] sm:$0xff] }
  0xa3   :  { %801 = vmatprep.mubr.f32.mxu0 %v13132_v7  ;;  %1604 = vmatprep.mubr.f32.mxu1 %v13132_v7  ;;  %v8852_v0 = vpack.c.bf16 %v1721_v59, %v1720_v55 }
  0xa5   :  { %8853 = vmatprep.subr.bf16.mxu0 %v8852_v0  ;;  %8885 = vmatprep.subr.bf16.mxu1 %v8852_v0 }
  0xa6   :  { %7081 = vmatmul.mubr.msk.f32.gmra.mrb[2].mxu0 %vm171_vm5, %v10381_v6  ;;  %7223 = vmatmul.mubr.msk.f32.gmra.mrb[2].mxu1 %vm171_vm5, %v10393_v11  ;;  %v1704_v6 = vld [vmem:[%s13164_s9] sm:$0xff]  ;;  %v1705_v11 = vld [vmem:[%s13164_s9 + $0x8] sm:$0xff] }
  0xa7   :  { %807 = vmatprep.mubr.f32.mxu0 %v13132_v7  ;;  %1610 = vmatprep.mubr.f32.mxu1 %v13132_v7 }
  0xaa   :  { %7082 = vmatmul.mubr.msk.f32.gmra.mrb[4].mxu0 %vm171_vm5, %v10396_v13  ;;  %7224 = vmatmul.mubr.msk.f32.gmra.mrb[4].mxu1 %vm171_vm5, %v10402_v16  ;;  %v8854_v13 = vpack.c.bf16 %v1705_v11, %v1704_v6  ;;  %v1722_v16 = vld [vmem:[%s13164_s9 + $0x90] sm:$0xff] }
  0xab   :  { %813 = vmatprep.mubr.f32.mxu0 %v13132_v7  ;;  %1616 = vmatprep.mubr.f32.mxu1 %v13132_v7 }
  0xac   :  { %8855 = vmatpush3.bf16.msra.mxu0 %v8854_v13  ;;  %8887 = vmatpush3.bf16.msra.mxu1 %v8854_v13 }
  0xae   :  { %7083 = vmatmul.mubr.msk.f32.gmra.mrb[6].mxu0 %vm171_vm5, %v10410_v23  ;;  %7225 = vmatmul.mubr.msk.f32.gmra.mrb[6].mxu1 %vm171_vm5, %v10419_v31  ;;  %v1723_v23 = vld [vmem:[%s13164_s9 + $0x98] sm:$0xff]  ;;  %s13201_s9 = sld [smem:[#allocation30_spill]] }
  0xaf   :  { %v8856_v31 = vpack.c.bf16 %v1723_v23, %v1722_v16 }
  0xb1   :  { %8857 = vmatprep.subr.bf16.mxu0 %v8856_v31  ;;  %8889 = vmatprep.subr.bf16.mxu1 %v8856_v31 }
  0xb2   :  { %8859 = vmatpush3.bf16.msra.mxu0 %v8858_v30  ;;  %8891 = vmatpush3.bf16.msra.mxu1 %v8858_v30 }
  0xb3   :  { %8861 = vmatprep.subr.bf16.mxu0 %v8860_v37  ;;  %8893 = vmatprep.subr.bf16.mxu1 %v8860_v37 }
  0xb6   :  { %8863 = vmatpush3.bf16.msra.mxu0 %v8862_v41  ;;  %8895 = vmatpush3.bf16.msra.mxu1 %v8862_v41 }
  0xb7   :  { %8865 = vmatprep.subr.bf16.mxu0 %v8864_v4  ;;  %8897 = vmatprep.subr.bf16.mxu1 %v8864_v4 }
  0xba   :  { %8867 = vmatpush3.bf16.msra.mxu0 %v8866_v49  ;;  %8899 = vmatpush3.bf16.msra.mxu1 %v8866_v49 }
  0xbb   :  { %8869 = vmatprep.subr.bf16.mxu0 %v8868_v52  ;;  %8901 = vmatprep.subr.bf16.mxu1 %v8868_v52 }
  0xbe   :  { %8871 = vmatpush3.bf16.msra.mxu0 %v8870_v54  ;;  %8903 = vmatpush3.bf16.msra.mxu1 %v8870_v54 }
  0xbf   :  { %8873 = vmatprep.subr.bf16.mxu0 %v8872_v57  ;;  %8905 = vmatprep.subr.bf16.mxu1 %v8872_v57 }
  0xc2   :  { %8875 = vmatpush3.bf16.msra.mxu0 %v8874_v48  ;;  %8907 = vmatpush3.bf16.msra.mxu1 %v8874_v48 }
  0xc3   :  { %8877 = vmatprep.subr.bf16.mxu0 %v8876_v62  ;;  %8909 = vmatprep.subr.bf16.mxu1 %v8876_v62 }
  0xc6   :  { %8879 = vmatpush3.bf16.msra.mxu0 %v8878_v28  ;;  %8911 = vmatpush3.bf16.msra.mxu1 %v8878_v28 }
  0xc7   :  { %8881 = vmatprep.subr.bf16.mxu0 %v8880_v27  ;;  %8913 = vmatprep.subr.bf16.mxu1 %v8880_v27 }
  0xca   :  { %8883 = vmatpush3.bf16.msra.mxu0 %v8882_v39  ;;  %8915 = vmatpush3.bf16.msra.mxu1 %v8882_v39 }
 0x175   :  { %v797_v15 = vpop.f32.mrb[0].mxu0  ;;  %v1600_v18 = vpop.f32.mrb[0].mxu1 }
 0x176   :  { %v839_v19 = vadd.f32 %v832_v46, %v797_v15  ;;  %v1631_v20 = vadd.f32 %v1600_v18, %v832_v46  ;;  %v799_v24 = vpop.f32.mrb[1].mxu0  ;;  %v1602_v32 = vpop.f32.mrb[1].mxu1 }
 0x177   :  { %v840_v33 = vadd.f32 %v836_v14, %v799_v24  ;;  %v1632_v35 = vadd.f32 %v1602_v32, %v836_v14 }
 0x178   :  { %v10965_v55 = vmax.f32 %v839_v19, 0.0  ;;  %v10967_v59 = vmax.f32 %v1631_v20, 0.0 }
 0x179   :  { %v10969_v0 = vmax.f32 %v840_v33, 0.0  ;;  %v10971_v6 = vmax.f32 %v1632_v35, 0.0  ;;  %v803_v11 = vpop.f32.mrb[2].mxu0  ;;  %v1606_v13 = vpop.f32.mrb[2].mxu1 }
 0x17a   :  { %v841_v16 = vadd.f32 %v832_v46, %v803_v11  ;;  %v1633_v23 = vadd.f32 %v1606_v13, %v832_v46  ;;  %v805_v31 = vpop.f32.mrb[3].mxu0  ;;  %v1608_v36 = vpop.f32.mrb[3].mxu1  ;;  %v883_v26 = vmul.f32 %v10965_v55, %v10965_v55  ;;  %v1676_v34 = vmul.f32 %v10967_v59, %v10967_v59 }
 0x17b   :  { %v842_v25 = vadd.f32 %v836_v14, %v805_v31  ;;  %v1634_v30 = vadd.f32 %v1608_v36, %v836_v14  ;;  %v884_v40 = vmul.f32 %v10969_v0, %v10969_v0  ;;  %v1677_v41 = vmul.f32 %v10971_v6, %v10971_v6 }
 0x17c   :  { %v10977_v37 = vmax.f32 %v841_v16, 0.0  ;;  %v10979_v38 = vmax.f32 %v1633_v23, 0.0 }
 0x17d   :  { %v10985_v42 = vmax.f32 %v842_v25, 0.0  ;;  %v10987_v3 = vmax.f32 %v1634_v30, 0.0  ;;  %v809_v4 = vpop.f32.mrb[4].mxu0  ;;  %v1612_v44 = vpop.f32.mrb[4].mxu1 }
 0x17e   :  { %v863_v45 = vadd.f32 %v10977_v37, %v10965_v55  ;;  %v885_v49 = vmul.f32 %v10977_v37, %v10977_v37  ;;  %v1656_v50 = vadd.f32 %v10979_v38, %v10967_v59  ;;  %v1678_v51 = vmul.f32 %v10979_v38, %v10979_v38  ;;  %v811_v52 = vpop.f32.mrb[5].mxu0  ;;  %v1614_v12 = vpop.f32.mrb[5].mxu1 }
 0x17f   :  { %v872_v53 = vadd.f32 %v10985_v42, %v10969_v0  ;;  %v886_v54 = vmul.f32 %v10985_v42, %v10985_v42  ;;  %v1665_v17 = vadd.f32 %v10987_v3, %v10971_v6  ;;  %v1679_v56 = vmul.f32 %v10987_v3, %v10987_v3 }
 0x180   :  { %v891_v57 = vadd.f32 %v885_v49, %v883_v26  ;;  %v1684_v58 = vadd.f32 %v1678_v51, %v1676_v34  ;;  %v843_v47 = vadd.f32 %v832_v46, %v809_v4  ;;  %v1635_v48 = vadd.f32 %v1612_v44, %v832_v46 }
 0x181   :  { %v900_v60 = vadd.f32 %v886_v54, %v884_v40  ;;  %v1693_v61 = vadd.f32 %v1679_v56, %v1677_v41  ;;  %v844_v62 = vadd.f32 %v836_v14, %v811_v52  ;;  %v1636_v63 = vadd.f32 %v1614_v12, %v836_v14  ;;  %v815_v22 = vpop.f32.mrb[6].mxu0  ;;  %v1618_v28 = vpop.f32.mrb[6].mxu1 }
 0x182   :  { %v11005_v1 = vmax.f32 %v843_v47, 0.0  ;;  %v11007_v21 = vmax.f32 %v1635_v48, 0.0  ;;  %v845_v27 = vadd.f32 %v832_v46, %v815_v22  ;;  %v1637_v2 = vadd.f32 %v1618_v28, %v832_v46  ;;  %v817_v29 = vpop.f32.mrb[7].mxu0  ;;  %v1620_v39 = vpop.f32.mrb[7].mxu1 }
 0x183   :  { %v11009_v5 = vmax.f32 %v844_v62, 0.0  ;;  %v11011_v8 = vmax.f32 %v1636_v63, 0.0  ;;  %v846_v10 = vadd.f32 %v836_v14, %v817_v29  ;;  %v1638_v43 = vadd.f32 %v1620_v39, %v836_v14 }
 0x184   :  { %v864_v15 = vadd.f32 %v863_v45, %v11005_v1  ;;  %v887_v18 = vmul.f32 %v11005_v1, %v11005_v1  ;;  %v1657_v19 = vadd.f32 %v1656_v50, %v11007_v21  ;;  %v1680_v20 = vmul.f32 %v11007_v21, %v11007_v21 }
 0x185   :  { %v873_v46 = vadd.f32 %v872_v53, %v11009_v5  ;;  %v888_v24 = vmul.f32 %v11009_v5, %v11009_v5  ;;  %v1666_v32 = vadd.f32 %v1665_v17, %v11011_v8  ;;  %v1681_v14 = vmul.f32 %v11011_v8, %v11011_v8 }
 0x186   :  { %v892_v33 = vadd.f32 %v891_v57, %v887_v18  ;;  %v1685_v35 = vadd.f32 %v1684_v58, %v1680_v20  ;;  %v11025_v11 = vmax.f32 %v845_v27, 0.0  ;;  %v11027_v13 = vmax.f32 %v1637_v2, 0.0 }
 0x187   :  { %v901_v16 = vadd.f32 %v900_v60, %v888_v24  ;;  %v1694_v23 = vadd.f32 %v1693_v61, %v1681_v14  ;;  %v11029_v31 = vmax.f32 %v846_v10, 0.0  ;;  %v11031_v36 = vmax.f32 %v1638_v43, 0.0 }
 0x188   :  { %v865_v25 = vadd.f32 %v864_v15, %v11025_v11  ;;  %v889_v30 = vmul.f32 %v11025_v11, %v11025_v11  ;;  %v1658_v26 = vadd.f32 %v1657_v19, %v11027_v13  ;;  %v1682_v34 = vmul.f32 %v11027_v13, %v11027_v13 }
 0x189   :  { %v874_v40 = vadd.f32 %v873_v46, %v11029_v31  ;;  %v890_v41 = vmul.f32 %v11029_v31, %v11029_v31  ;;  %v1667_v4 = vadd.f32 %v1666_v32, %v11031_v36  ;;  %v1683_v44 = vmul.f32 %v11031_v36, %v11031_v36 }
 0x18a   :  { %v866_v45 = vrot.slane %v865_v25, 4  ;;  %v893_v49 = vadd.f32 %v892_v33, %v889_v30  ;;  %v1659_v50 = vrot.slane %v1658_v26, 4  ;;  %v1686_v51 = vadd.f32 %v1685_v35, %v1682_v34 }
 0x18b   :  { %v875_v52 = vrot.slane %v874_v40, 4  ;;  %v902_v12 = vadd.f32 %v901_v16, %v890_v41  ;;  %v1668_v53 = vrot.slane %v1667_v4, 4  ;;  %v1695_v54 = vadd.f32 %v1694_v23, %v1683_v44 }
 0x18c   :  { %v867_v17 = vadd.f32 %v866_v45, %v865_v25  ;;  %v894_v56 = vrot.slane %v893_v49, 4  ;;  %v1660_v57 = vadd.f32 %v1659_v50, %v1658_v26  ;;  %v1687_v58 = vrot.slane %v1686_v51, 4 }
 0x18d   :  { %v876_v47 = vadd.f32 %v875_v52, %v874_v40  ;;  %v903_v48 = vrot.slane %v902_v12, 4  ;;  %v1669_v60 = vadd.f32 %v1668_v53, %v1667_v4  ;;  %v1696_v61 = vrot.slane %v1695_v54, 4 }
 0x18e   :  { %v868_v62 = vrot.slane %v867_v17, 2  ;;  %v895_v63 = vadd.f32 %v894_v56, %v893_v49  ;;  %v1661_v22 = vrot.slane %v1660_v57, 2  ;;  %v1688_v28 = vadd.f32 %v1687_v58, %v1686_v51  ;;  %v1888_v58 = vld [vmem:[%s13167_s7] sm:$0xff] }
 0x18f   :  { %v877_v27 = vrot.slane %v876_v47, 2  ;;  %v904_v2 = vadd.f32 %v903_v48, %v902_v12  ;;  %v1670_v29 = vrot.slane %v1669_v60, 2  ;;  %v1697_v39 = vadd.f32 %v1696_v61, %v1695_v54 }
 0x190   :  { %v869_v10 = vadd.f32 %v868_v62, %v867_v17  ;;  %v896_v43 = vrot.slane %v895_v63, 2  ;;  %v1662_v15 = vadd.f32 %v1661_v22, %v1660_v57  ;;  %v1689_v18 = vrot.slane %v1688_v28, 2  ;;  %v1889_v57 = vld [vmem:[%s13167_s7 + $0x8] sm:$0xff] }
 0x191   :  { %v878_v19 = vadd.f32 %v877_v27, %v876_v47  ;;  %v1671_v20 = vadd.f32 %v1670_v29, %v1669_v60  ;;  %v905_v46 = vrot.slane %v904_v2, 2  ;;  %v1698_v24 = vrot.slane %v1697_v39, 2  ;;  %1894 = vmatprep.subr.mxu0 %v1889_v57  ;;  %1968 = vmatprep.subr.mxu1 %v1889_v57 }
 0x192   :  { %v870_v32 = vrot.slane %v869_v10, 1  ;;  %v897_v14 = vadd.f32 %v896_v43, %v895_v63  ;;  %v1663_v33 = vrot.slane %v1662_v15, 1  ;;  %v1690_v35 = vadd.f32 %v1689_v18, %v1688_v28 }
 0x193   :  { %v879_v16 = vrot.slane %v878_v19, 1  ;;  %v1672_v23 = vrot.slane %v1671_v20, 1  ;;  %v906_v25 = vadd.f32 %v905_v46, %v904_v2  ;;  %v1699_v30 = vadd.f32 %v1698_v24, %v1697_v39  ;;  %v1883_v39 = vld [vmem:[%s13168_s0] sm:$0x1]  ;;  %s9954_s0 = smov 120  }
 0x194   :  { %v871_v26 = vadd.f32 %v870_v32, %v869_v10  ;;  %v898_v34 = vrot.slane %v897_v14, 1  ;;  %v1664_v40 = vadd.f32 %v1663_v33, %v1662_v15  ;;  %v1691_v41 = vrot.slane %v1690_v35, 1  ;;  %v1885_v15 = vld [vmem:[%s13169_s5] sm:$0x1] }
 0x195   :  { %v880_v4 = vadd.f32 %v879_v16, %v878_v19  ;;  %v1673_v44 = vadd.f32 %v1672_v23, %v1671_v20  ;;  %v907_v45 = vrot.slane %v906_v25, 1  ;;  %v1700_v49 = vrot.slane %v1699_v30, 1 }
 0x196   :  { %v899_v50 = vadd.f32 %v898_v34, %v897_v14  ;;  %v1692_v51 = vadd.f32 %v1691_v41, %v1690_v35  ;;  %v1674_v54 = vadd.f32 %v1664_v40, %v871_v26 }
 0x197   :  { %v1675_v52 = vadd.f32 %v1673_v44, %v880_v4  ;;  %v908_v12 = vadd.f32 %v907_v45, %v906_v25  ;;  %v1701_v53 = vadd.f32 %v1700_v49, %v1699_v30 }
 0x198   :  { %v1702_v56 = vadd.f32 %v1692_v51, %v899_v50 }
 0x199   :  { %1800 = vmatprep.mubr.f32.mxu0 %v1675_v52  ;;  %v1703_v17 = vadd.f32 %v1701_v53, %v908_v12 }
 0x19a   :  { %1801 = vmatmul.mubr.f32.vlgmr.msra.gmra.mrb[8].mxu0 %v1674_v54 }
 0x19b   :  { %1872 = vmatprep.mubr.f32.mxu1 %v1703_v17  ;;  %1958 = vmatprep.mubr.f32.mxu0 %v13132_v7 }
 0x19c   :  { %1873 = vmatmul.mubr.f32.vlgmr.msra.gmra.mrb[8].mxu1 %v1702_v56  ;;  %1895 = vmatpush1.msra.mxu0 %v1888_v58 }
 0x19d   :  { %2032 = vmatprep.mubr.f32.mxu1 %v13132_v7  ;;  %1969 = vmatpush1.msra.mxu1 %v1888_v58 }
 0x26d   :  { %v7600_v47 = vpop.f32.mrb[8].mxu0 }
 0x26e   :  { %v7601_v48 = vpop.f32.mrb[9].mxu0 }
 0x26f   :  { %v7602_v60 = vadd.f32 %v7601_v48, %v7600_v47  ;;  %v7635_v61 = vpop.f32.mrb[8].mxu1 }
 0x270   :  { %v7636_v62 = vpop.f32.mrb[9].mxu1 }
 0x271   :  { %v1807_v63 = vmul.f32 0.00048828125, %v7602_v60  ;;  %v7637_v22 = vadd.f32 %v7636_v62, %v7635_v61 }
 0x273   :  { %v1879_v28 = vmul.f32 %v1807_v63, %v1807_v63  ;;  %v1878_v27 = vmul.f32 0.00048828125, %v7637_v22 }
 0x275   :  { %v1880_v2 = vsub.f32 %v1878_v27, %v1879_v28 }
 0x277   :  { %v1881_v29 = vadd.f32 1e-05, %v1880_v2 }
 0x279   :  { %9921 = vrsqrt.f32 %v1881_v29 }
 0x283   :  { %v9922_v10 = vpop.eup %9921 }
 0x284   :  { %v1884_v43 = vmul.f32 %v9922_v10, %v1883_v39 }
 0x286   :  { %7226 = vmatmul.mubr.msk.f32.vlgmr.msra.gmra.mrb[10].mxu0 %vm1890_vm7, %v1884_v43  ;;  %v1886_v18 = vmul.f32 %v1884_v43, %v1807_v63 }
 0x287   :  { %2293 = vmatprep.mubr.f32.mxu0 %v13132_v7 }
 0x288   :  { %v1887_v19 = vsub.f32 %v1885_v15, %v1886_v18 }
 0x28a   :  { %7227 = vmatmul.mubr.msk.f32.vlgmr.msra.gmra.mrb[10].mxu1 %vm1890_vm7, %v1887_v19 }
 0x359   :  { %v1960_v20 = vpop.f32.mrb[10].mxu0 }
 0x35a   :  { %v11063_v46 = vrot.slane %v1960_v20, %v10959_v9  ;;  %v1962_v24 = vpop.f32.mrb[11].mxu0 }
 0x35b   :  { %v11066_v32 = vrot.slane %v1962_v24, %v10959_v9 }
 0x35c   :  { %v2122_v14 = vmul.f32 %v11063_v46, %v10965_v55  ;;  %v2124_v33 = vmul.f32 %v11063_v46, %v10977_v37  ;;  %v2126_v35 = vmul.f32 %v11063_v46, %v11005_v1  ;;  %v2128_v16 = vmul.f32 %v11063_v46, %v11025_v11 }
 0x35d   :  { %v2034_v23 = vpop.f32.mrb[10].mxu1  ;;  %v2123_v25 = vmul.f32 %v11066_v32, %v10969_v0  ;;  %v2125_v30 = vmul.f32 %v11066_v32, %v10985_v42  ;;  %v2127_v26 = vmul.f32 %v11066_v32, %v11009_v5  ;;  %v2129_v55 = vmul.f32 %v11066_v32, %v11029_v31 }
 0x35e   :  { %v11085_v37 = vrot.slane %v2034_v23, %v10959_v9  ;;  %v2036_v1 = vpop.f32.mrb[11].mxu1  ;;  %v2471_v11 = vmul.f32 %v11066_v32, %v10971_v6  ;;  %v11091_v34 = vmul.f32 %v11066_v32, %v10987_v3  ;;  %v11095_v0 = vmul.f32 %v11066_v32, %v11011_v8 }
 0x35f   :  { %v11098_v42 = vrot.slane %v2036_v1, %v10959_v9  ;;  %v11102_v5 = vmul.f32 %v11063_v46, %v10967_v59  ;;  %v11106_v31 = vmul.f32 %v11063_v46, %v10979_v38  ;;  %v11110_v6 = vmul.f32 %v11063_v46, %v11007_v21 }
 0x360   :  { %v2138_v3 = vadd.f32 %v11085_v37, %v2122_v14  ;;  %v2140_v8 = vadd.f32 %v11085_v37, %v2124_v33  ;;  %v11115_v40 = vadd.f32 %v11085_v37, %v2126_v35  ;;  %v11118_v41 = vadd.f32 %v11085_v37, %v2128_v16 }
 0x361   :  { %v2139_v59 = vadd.f32 %v11098_v42, %v2123_v25  ;;  %v2141_v4 = vadd.f32 %v11098_v42, %v2125_v30  ;;  %v2143_v38 = vadd.f32 %v11098_v42, %v2127_v26  ;;  %v2145_v44 = vadd.f32 %v11098_v42, %v2129_v55 }
 0x362   :  { %v2155_v21 = vrot.slane %v2138_v3, 7  ;;  %v2157_v45 = vrot.slane %v2140_v8, 7  ;;  %v2179_v49 = vrot.slane %v2138_v3, 1  ;;  %v2180_v50 = vrot.slane %v2140_v8, 1 }
 0x363   :  { %v2156_v51 = vrot.slane %v2139_v59, 7  ;;  %v2159_v52 = vrot.slane %v2141_v4, 7  ;;  %v2182_v12 = vrot.slane %v2139_v59, 1  ;;  %v2183_v53 = vrot.slane %v2141_v4, 1 }
 0x364   :  { %v2187_v54 = vrot.slane %v2143_v38, 1  ;;  %v2158_v17 = vsel %vm2154_vm8, %v2155_v21, %v2157_v45  ;;  %v2177_v56 = vsel %vm2154_vm8, -1e+30, %v2155_v21  ;;  %v2181_v57 = vsel %vm161_vm4, %v2179_v49, %v2180_v50 }
 0x365   :  { %v2160_v58 = vsel %vm2154_vm8, %v2156_v51, %v2159_v52  ;;  %v2178_v47 = vsel %vm2154_vm8, -1e+30, %v2156_v51  ;;  %v2184_v48 = vsel %vm161_vm4, %v2182_v12, %v2183_v53  ;;  %v2185_v60 = vrot.slane %v11115_v40, 1 }
 0x366   :  { %v2188_v61 = vsel %vm161_vm4, %v2183_v53, %v2187_v54  ;;  %v2204_v62 = vmax.f32 %v2178_v47, %v2184_v48  ;;  %v2203_v63 = vmax.f32 %v2177_v56, %v2181_v57  ;;  %v2163_v22 = vrot.slane %v2143_v38, 7 }
 0x367   :  { %v2206_v28 = vmax.f32 %v2160_v58, %v2188_v61  ;;  %v2186_v27 = vsel %vm161_vm4, %v2180_v50, %v2185_v60  ;;  %v2167_v2 = vrot.slane %v2145_v44, 7  ;;  %v2191_v29 = vrot.slane %v2145_v44, 1 }
 0x368   :  { %v2212_v39 = vmax.f32 %v2139_v59, %v2204_v62  ;;  %v2205_v10 = vmax.f32 %v2158_v17, %v2186_v27  ;;  %v2211_v43 = vmax.f32 %v2138_v3, %v2203_v63  ;;  %v2164_v15 = vsel %vm2154_vm8, %v2159_v52, %v2163_v22 }
 0x369   :  { %v2214_v18 = vmax.f32 %v2141_v4, %v2206_v28  ;;  %v2168_v19 = vsel %vm2154_vm8, %v2163_v22, %v2167_v2  ;;  %v2192_v20 = vsel %vm161_vm4, %v2187_v54, %v2191_v29  ;;  %v2202_v24 = vsel %vm161_vm4, %v2191_v29, -1e+30  ;;  %v2039_v22 = vld [vmem:[%s13170_s11] sm:$0xff] }
 0x36a   :  { %v2213_v14 = vmax.f32 %v2140_v8, %v2205_v10  ;;  %v2208_v33 = vmax.f32 %v2164_v15, %v2192_v20  ;;  %v2210_v35 = vmax.f32 %v2168_v19, %v2202_v24  ;;  %v2161_v16 = vrot.slane %v11115_v40, 7 }
 0x36b   :  { %v8916_v23 = vpack.c.bf16 %v2214_v18, %v2212_v39  ;;  %v2165_v25 = vrot.slane %v11118_v41, 7  ;;  %v2189_v30 = vrot.slane %v11118_v41, 1  ;;  %v2479_v26 = vadd.f32 %v2471_v11, %v11098_v42 }
 0x36c   :  { %v8918_v55 = vpack.c.bf16 %v2213_v14, %v2211_v43  ;;  %v2216_v1 = vmax.f32 %v2143_v38, %v2208_v33  ;;  %v2218_v3 = vmax.f32 %v2145_v44, %v2210_v35  ;;  %v2162_v59 = vsel %vm2154_vm8, %v2157_v45, %v2161_v16  ;;  %v2040_v33 = vld [vmem:[%s13170_s11 + $0x8] sm:$0xff] }
 0x36d   :  { %8917 = vmatprep.subr.bf16.mxu0 %v8916_v23  ;;  %v2166_v8 = vsel %vm2154_vm8, %v2161_v16, %v2165_v25  ;;  %v2190_v4 = vsel %vm161_vm4, %v2185_v60, %v2189_v30  ;;  %v2201_v21 = vsel %vm161_vm4, %v2189_v30, -1e+30  ;;  %v2481_v49 = vadd.f32 %v11091_v34, %v11098_v42 }
 0x36e   :  { %8919 = vmatpush1.bf16.msra.mxu0 %v8918_v55  ;;  %v8920_v50 = vpack.c.bf16 %v2218_v3, %v2216_v1  ;;  %v2207_v51 = vmax.f32 %v2162_v59, %v2190_v4  ;;  %v2209_v11 = vmax.f32 %v2166_v8, %v2201_v21  ;;  %v11149_v38 = vadd.f32 %v11095_v0, %v11098_v42 }
 0x36f   :  { %v2495_v44 = vrot.slane %v2479_v26, 7  ;;  %v2498_v45 = vrot.slane %v2481_v49, 7  ;;  %v2521_v52 = vrot.slane %v2479_v26, 1  ;;  %v2522_v12 = vrot.slane %v2481_v49, 1 }
 0x370   :  { %8921 = vmatprep.subr.bf16.mxu0 %v8920_v50  ;;  %v2215_v53 = vmax.f32 %v11115_v40, %v2207_v51  ;;  %v2217_v54 = vmax.f32 %v11118_v41, %v2209_v11  ;;  %v2526_v17 = vrot.slane %v11149_v38, 1  ;;  %v2478_v34 = vadd.f32 %v11102_v5, %v11085_v37 }
 0x371   :  { %v2499_v56 = vsel %vm2154_vm8, %v2495_v44, %v2498_v45  ;;  %v2517_v57 = vsel %vm2154_vm8, -1e+30, %v2495_v44  ;;  %v2523_v0 = vsel %vm161_vm4, %v2521_v52, %v2522_v12  ;;  %v2480_v58 = vadd.f32 %v11106_v31, %v11085_v37 }
 0x372   :  { %v8922_v47 = vpack.c.bf16 %v2217_v54, %v2215_v53  ;;  %v2527_v48 = vsel %vm161_vm4, %v2522_v12, %v2526_v17  ;;  %v2543_v40 = vmax.f32 %v2517_v57, %v2523_v0  ;;  %v2482_v41 = vadd.f32 %v11110_v6, %v11085_v37  ;;  %v2045_v53 = vld [vmem:[%s13171_s30 + $0x18] sm:$0xff]  ;;  %v2042_v54 = vld [vmem:[%s13171_s30] sm:$0xff] }
 0x373   :  { %v2545_v60 = vmax.f32 %v2499_v56, %v2527_v48  ;;  %v2494_v61 = vrot.slane %v2478_v34, 7  ;;  %v2496_v62 = vrot.slane %v2480_v58, 7  ;;  %v2518_v5 = vrot.slane %v2478_v34, 1  ;;  %v2047_v56 = vld [vmem:[%s13171_s30 + $0x28] sm:$0xff]  ;;  %v2049_v57 = vld [vmem:[%s13171_s30 + $0x38] sm:$0xff]  ;;  %v2048_v48 = vld [vmem:[%s13171_s30 + $0x30] sm:$0xff] }
 0x374   :  { %8923 = vmatpush1.bf16.msra.mxu0 %v8922_v47  ;;  %v2551_v63 = vmax.f32 %v2479_v26, %v2543_v40  ;;  %v2519_v28 = vrot.slane %v2480_v58, 1  ;;  %v2524_v27 = vrot.slane %v2482_v41, 1  ;;  %v2477_v31 = vmul.f32 %v11066_v32, %v11031_v36  ;;  %v2046_v47 = vld [vmem:[%s13171_s30 + $0x20] sm:$0xff]  ;;  %v2051_v40 = vld [vmem:[%s13171_s30 + $0x48] sm:$0xff] }
 0x375   :  { %v2553_v2 = vmax.f32 %v2481_v49, %v2545_v60  ;;  %v2497_v29 = vsel %vm2154_vm8, %v2494_v61, %v2496_v62  ;;  %v2516_v6 = vsel %vm2154_vm8, -1e+30, %v2494_v61  ;;  %v2502_v39 = vrot.slane %v11149_v38, 7 }
 0x376   :  { %v2520_v10 = vsel %vm161_vm4, %v2518_v5, %v2519_v28  ;;  %v2525_v43 = vsel %vm161_vm4, %v2519_v28, %v2524_v27  ;;  %v2485_v15 = vadd.f32 %v2477_v31, %v11098_v42  ;;  %v2476_v18 = vmul.f32 %v11063_v46, %v11027_v13  ;;  %v2052_v5 = vld [vmem:[%s13171_s30 + $0x50] sm:$0xff]  ;;  %v2054_v31 = vld [vmem:[%s13171_s30 + $0x60] sm:$0xff] }
 0x377   :  { %v8988_v19 = vpack.c.bf16 %v2553_v2, %v2551_v63  ;;  %7228 = vmatmul.mubr.msk.f32.vlgmr.msra.gmra.mrb[12].mxu0 %vm2219_vm9, %v2039_v22  ;;  %v2542_v36 = vmax.f32 %v2516_v6, %v2520_v10  ;;  %v2544_v32 = vmax.f32 %v2497_v29, %v2525_v43  ;;  %v2503_v20 = vsel %vm2154_vm8, %v2498_v45, %v2502_v39  ;;  %v2055_v63 = vld [vmem:[%s13171_s30 + $0x68] sm:$0xff]  ;;  %v2056_v2 = vld [vmem:[%s13171_s30 + $0x70] sm:$0xff]  ;;  %v2061_v6 = vld [vmem:[%s13171_s30 + $0x98] sm:$0xff] }
 0x378   :  { %v2506_v24 = vrot.slane %v2485_v15, 7  ;;  %v2530_v14 = vrot.slane %v2485_v15, 1  ;;  %2299 = vmatprep.mubr.f32.mxu0 %v13132_v7  ;;  %v2484_v42 = vadd.f32 %v2476_v18, %v11085_v37  ;;  %v2500_v35 = vrot.slane %v2482_v41, 7  ;;  %v2041_v37 = vld [vmem:[%s13170_s11 + $0x10] sm:$0xf]  ;;  %v2059_v29 = vld [vmem:[%s13171_s30 + $0x88] sm:$0xff] }
 0x379   :  { %8989 = vmatprep.subr.bf16.mxu0 %v8988_v19  ;;  %v2550_v13 = vmax.f32 %v2478_v34, %v2542_v36  ;;  %v2552_v46 = vmax.f32 %v2480_v58, %v2544_v32  ;;  %v2044_v34 = vld [vmem:[%s13171_s30 + $0x10] sm:$0xff]  ;;  %v8928_v58 = vpack.c.bf16 %v2049_v57, %v2047_v56  ;;  %v8930_v60 = vpack.c.bf16 %v2048_v48, %v2046_v47  ;;  %v2058_v43 = vld [vmem:[%s13171_s30 + $0x80] sm:$0xff]  ;;  %v2063_v18 = vld [vmem:[%s13171_s30 + $0xa8] sm:$0xff] }
 0x37a   :  { %v2507_v16 = vsel %vm2154_vm8, %v2502_v39, %v2506_v24  ;;  %v2531_v23 = vsel %vm161_vm4, %v2526_v17, %v2530_v14  ;;  %v2541_v25 = vsel %vm161_vm4, %v2530_v14, -1e+30  ;;  %v2501_v30 = vsel %vm2154_vm8, %v2496_v62, %v2500_v35  ;;  %v2050_v62 = vld [vmem:[%s13171_s30 + $0x40] sm:$0xff]  ;;  %v2065_v19 = vld [vmem:[%s13171_s30 + $0xb8] sm:$0xff]  ;;  %v2064_v24 = vld [vmem:[%s13171_s30 + $0xb0] sm:$0xff] }
 0x37b   :  { %v8990_v26 = vpack.c.bf16 %v2552_v46, %v2550_v13  ;;  %v2547_v55 = vmax.f32 %v2503_v20, %v2531_v23  ;;  %v2549_v1 = vmax.f32 %v2507_v16, %v2541_v25  ;;  %7229 = vmatmul.mubr.msk.f32.gmra.mrb[14].mxu0 %vm2219_vm9, %v2040_v33  ;;  %v2504_v3 = vrot.slane %v2484_v42, 7  ;;  %v2062_v20 = vld [vmem:[%s13171_s30 + $0xa0] sm:$0xff]  ;;  %v2067_v14 = vld [vmem:[%s13171_s30 + $0xc8] sm:$0xff]  ;;  %v2068_v46 = vld [vmem:[%s13171_s30 + $0xd0] sm:$0xff] }
 0x37c   :  { %v2528_v59 = vrot.slane %v2484_v42, 1  ;;  %2305 = vmatprep.mubr.f32.mxu0 %v13132_v7  ;;  %v8926_v0 = vpack.c.bf16 %v2044_v34, %v2042_v54  ;;  %v8934_v28 = vpack.c.bf16 %v2052_v5, %v2050_v62  ;;  %v8938_v39 = vpack.c.bf16 %v2056_v2, %v2054_v31  ;;  %v2066_v13 = vld [vmem:[%s13171_s30 + $0xc0] sm:$0xff]  ;;  %v2071_v16 = vld [vmem:[%s13171_s30 + $0xe8] sm:$0xff]  ;;  %v2073_v23 = vld [vmem:[%s13171_s30 + $0xf8] sm:$0xff] }
 0x37d   :  { %8991 = vmatpush1.bf16.msra.mxu0 %v8990_v26  ;;  %v2555_v8 = vmax.f32 %v11149_v38, %v2547_v55  ;;  %v2557_v4 = vmax.f32 %v2485_v15, %v2549_v1  ;;  %v2505_v21 = vsel %vm2154_vm8, %v2500_v35, %v2504_v3  ;;  %v2043_v38 = vld [vmem:[%s13171_s30 + $0x8] sm:$0xff]  ;;  %v8940_v10 = vpack.c.bf16 %v2061_v6, %v2059_v29  ;;  %v2060_v15 = vld [vmem:[%s13171_s30 + $0x90] sm:$0xff]  ;;  %v2070_v26 = vld [vmem:[%s13171_s30 + $0xe0] sm:$0xff] }
 0x37e   :  { %v2529_v49 = vsel %vm161_vm4, %v2524_v27, %v2528_v59  ;;  %v2540_v50 = vsel %vm161_vm4, %v2528_v59, -1e+30  ;;  %v8924_v17 = vpack.c.bf16 %v2045_v53, %v2043_v38  ;;  %v8942_v36 = vpack.c.bf16 %v2060_v15, %v2058_v43  ;;  %v2072_v55 = vld [vmem:[%s13171_s30 + $0xf0] sm:$0xff]  ;;  %v2075_v1 = vld [vmem:[%s13171_s30 + $0x108] sm:$0xff]  ;;  %v2077_v3 = vld [vmem:[%s13171_s30 + $0x118] sm:$0xff] }
 0x37f   :  { %v8992_v51 = vpack.c.bf16 %v2557_v4, %v2555_v8  ;;  %v2546_v11 = vmax.f32 %v2501_v30, %v2529_v49  ;;  %v2548_v44 = vmax.f32 %v2505_v21, %v2540_v50  ;;  %7230 = vmatmul.mubr.msk.f32.gmra.mrb[16].mxu0 %vm2219_vm9, %v2041_v37  ;;  %v8944_v32 = vpack.c.bf16 %v2065_v19, %v2063_v18  ;;  %v2074_v8 = vld [vmem:[%s13171_s30 + $0x100] sm:$0xff]  ;;  %v2076_v4 = vld [vmem:[%s13171_s30 + $0x110] sm:$0xff]  ;;  %v2079_v21 = vld [vmem:[%s13171_s30 + $0x128] sm:$0xff] }
 0x380   :  { %2622 = vmatprep.mubr.f32.mxu0 %v13132_v7  ;;  %8925 = vmatprep.subr.bf16.mxu1 %v8924_v17  ;;  %v8950_v25 = vpack.c.bf16 %v2068_v46, %v2066_v13  ;;  %v8952_v30 = vpack.c.bf16 %v2073_v23, %v2071_v16  ;;  %v8954_v59 = vpack.c.bf16 %v2072_v55, %v2070_v26  ;;  %v2081_v49 = vld [vmem:[%s13171_s30 + $0x138] sm:$0xff]  ;;  %v2082_v53 = vld [vmem:[%s13171_s30 + $0x140] sm:$0xff]  ;;  %v2084_v54 = vld [vmem:[%s13171_s30 + $0x150] sm:$0xff] }
 0x381   :  { %8993 = vmatprep.subr.bf16.mxu0 %v8992_v51  ;;  %v2554_v45 = vmax.f32 %v2482_v41, %v2546_v11  ;;  %v2556_v52 = vmax.f32 %v2484_v42, %v2548_v44  ;;  %v2053_v41 = vld [vmem:[%s13171_s30 + $0x58] sm:$0xff]  ;;  %8927 = vmatpush1.bf16.msra.mxu1 %v8926_v0  ;;  %v8946_v42 = vpack.c.bf16 %v2064_v24, %v2062_v20  ;;  %v2078_v11 = vld [vmem:[%s13171_s30 + $0x120] sm:$0xff]  ;;  %v2080_v44 = vld [vmem:[%s13171_s30 + $0x130] sm:$0xff] }
 0x382   :  { %8929 = vmatprep.subr.bf16.mxu1 %v8928_v58  ;;  %v8932_v61 = vpack.c.bf16 %v2053_v41, %v2051_v40  ;;  %v8958_v50 = vpack.c.bf16 %v2076_v4, %v2074_v8  ;;  %v8960_v51 = vpack.c.bf16 %v2081_v49, %v2079_v21  ;;  %v2089_v34 = vld [vmem:[%s13171_s30 + $0x178] sm:$0xff]  ;;  %v8966_v56 = vpack.c.bf16 %v2084_v54, %v2082_v53  ;;  %v2091_v47 = vld [vmem:[%s13171_s30 + $0x188] sm:$0xff]  ;;  %v2098_v6 = vld [vmem:[%s13171_s30 + $0x1c0] sm:$0xff] }
 0x383   :  { %v8994_v12 = vpack.c.bf16 %v2556_v52, %v2554_v45  ;;  %v2083_v45 = vld [vmem:[%s13171_s30 + $0x148] sm:$0xff]  ;;  %v2085_v52 = vld [vmem:[%s13171_s30 + $0x158] sm:$0xff]  ;;  %v2102_v24 = vld [vmem:[%s13171_s30 + $0x1e0] sm:$0xff] }
 0x384   :  { %v8964_v38 = vpack.c.bf16 %v2085_v52, %v2083_v45  ;;  %v2093_v48 = vld [vmem:[%s13171_s30 + $0x198] sm:$0xff]  ;;  %v2095_v5 = vld [vmem:[%s13171_s30 + $0x1a8] sm:$0xff] }
 0x385   :  { %8995 = vmatpush1.bf16.msra.mxu0 %v8994_v12  ;;  %8931 = vmatpush1.bf16.msra.mxu1 %v8930_v60  ;;  %v8962_v12 = vpack.c.bf16 %v2080_v44, %v2078_v11  ;;  %v8972_v41 = vpack.c.bf16 %v2093_v48, %v2091_v47  ;;  %v2099_v2 = vld [vmem:[%s13171_s30 + $0x1c8] sm:$0xff]  ;;  %v2101_v29 = vld [vmem:[%s13171_s30 + $0x1d8] sm:$0xff]  ;;  %v7234_v48 = vld [vmem:[%s13172_s29 + $0xa0] sm:$0xff] }
 0x386   :  { %8997 = vmatprep.subr.bf16.mxu0 %v8924_v17  ;;  %8933 = vmatprep.subr.bf16.mxu1 %v8932_v61  ;;  %v2087_v17 = vld [vmem:[%s13171_s30 + $0x168] sm:$0xff]  ;;  %v2105_v20 = vld [vmem:[%s13171_s30 + $0x1f8] sm:$0xff] }
 0x387   :  { %v8968_v57 = vpack.c.bf16 %v2089_v34, %v2087_v17 }
 0x388   :  { %7231 = vmatmul.mubr.msk.f32.vlgmr.msra.gmra.mrb[18].mxu0 %vm2219_vm9, %v2039_v22  ;;  %v2057_v22 = vld [vmem:[%s13171_s30 + $0x78] sm:$0xff] }
 0x389   :  { %2628 = vmatprep.mubr.f32.mxu0 %v13132_v7  ;;  %8999 = vmatpush1.bf16.msra.mxu0 %v8926_v0  ;;  %v8936_v27 = vpack.c.bf16 %v2057_v22, %v2055_v63  ;;  %v2086_v0 = vld [vmem:[%s13171_s30 + $0x160] sm:$0xff]  ;;  %v2097_v63 = vld [vmem:[%s13171_s30 + $0x1b8] sm:$0xff] }
 0x38a   :  { %9001 = vmatprep.subr.bf16.mxu0 %v8928_v58  ;;  %8935 = vmatpush1.bf16.msra.mxu1 %v8934_v28  ;;  %v2088_v58 = vld [vmem:[%s13171_s30 + $0x170] sm:$0xff]  ;;  %v2094_v22 = vld [vmem:[%s13171_s30 + $0x1a0] sm:$0xff] }
 0x38b   :  { %8937 = vmatprep.subr.bf16.mxu1 %v8936_v27  ;;  %v8970_v40 = vpack.c.bf16 %v2088_v58, %v2086_v0 }
 0x38c   :  { %7232 = vmatmul.mubr.msk.f32.gmra.mrb[20].mxu0 %vm2219_vm9, %v2040_v33  ;;  %v2069_v33 = vld [vmem:[%s13171_s30 + $0xd8] sm:$0xff] }
 0x38d   :  { %2634 = vmatprep.mubr.f32.mxu0 %v13132_v7  ;;  %9003 = vmatpush1.bf16.msra.mxu0 %v8930_v60  ;;  %v8948_v35 = vpack.c.bf16 %v2069_v33, %v2067_v14  ;;  %v2090_v60 = vld [vmem:[%s13171_s30 + $0x180] sm:$0xff]  ;;  %v2104_v33 = vld [vmem:[%s13171_s30 + $0x1f0] sm:$0xff] }
 0x38e   :  { %9005 = vmatprep.subr.bf16.mxu0 %v8932_v61  ;;  %8939 = vmatpush1.bf16.msra.mxu1 %v8938_v39  ;;  %v2092_v61 = vld [vmem:[%s13171_s30 + $0x190] sm:$0xff] }
 0x38f   :  { %8941 = vmatprep.subr.bf16.mxu1 %v8940_v10  ;;  %v8974_v62 = vpack.c.bf16 %v2092_v61, %v2090_v60 }
 0x390   :  { %7233 = vmatmul.mubr.msk.f32.gmra.mrb[22].mxu0 %vm2219_vm9, %v2041_v37  ;;  %v8956_v37 = vpack.c.bf16 %v2077_v3, %v2075_v1 }
 0x391   :  { %9007 = vmatpush1.bf16.msra.mxu0 %v8934_v28  ;;  %v8976_v28 = vpack.c.bf16 %v2097_v63, %v2095_v5 }
 0x392   :  { %9009 = vmatprep.subr.bf16.mxu0 %v8936_v27  ;;  %8943 = vmatpush1.bf16.msra.mxu1 %v8942_v36  ;;  %v2096_v27 = vld [vmem:[%s13171_s30 + $0x1b0] sm:$0xff] }
 0x393   :  { %8945 = vmatprep.subr.bf16.mxu1 %v8944_v32  ;;  %v8978_v31 = vpack.c.bf16 %v2096_v27, %v2094_v22 }
 0x395   :  { %9011 = vmatpush1.bf16.msra.mxu0 %v8938_v39  ;;  %v8980_v39 = vpack.c.bf16 %v2101_v29, %v2099_v2 }
 0x396   :  { %9013 = vmatprep.subr.bf16.mxu0 %v8940_v10  ;;  %8947 = vmatpush1.bf16.msra.mxu1 %v8946_v42  ;;  %v2100_v10 = vld [vmem:[%s13171_s30 + $0x1d0] sm:$0xff] }
 0x397   :  { %8949 = vmatprep.subr.bf16.mxu1 %v8948_v35  ;;  %v8982_v15 = vpack.c.bf16 %v2100_v10, %v2098_v6 }
 0x399   :  { %9015 = vmatpush1.bf16.msra.mxu0 %v8942_v36 }
 0x39a   :  { %9017 = vmatprep.subr.bf16.mxu0 %v8944_v32  ;;  %8951 = vmatpush1.bf16.msra.mxu1 %v8950_v25  ;;  %v2103_v32 = vld [vmem:[%s13171_s30 + $0x1e8] sm:$0xff] }
 0x39b   :  { %8953 = vmatprep.subr.bf16.mxu1 %v8952_v30  ;;  %v8984_v14 = vpack.c.bf16 %v2105_v20, %v2103_v32 }
 0x39d   :  { %9019 = vmatpush1.bf16.msra.mxu0 %v8946_v42 }
 0x39e   :  { %9021 = vmatprep.subr.bf16.mxu0 %v8948_v35  ;;  %8955 = vmatpush1.bf16.msra.mxu1 %v8954_v59  ;;  %v8986_v35 = vpack.c.bf16 %v2104_v33, %v2102_v24 }
 0x39f   :  { %8957 = vmatprep.subr.bf16.mxu1 %v8956_v37 }
 0x3a1   :  { %9023 = vmatpush1.bf16.msra.mxu0 %v8950_v25 }
 0x3a2   :  { %9025 = vmatprep.subr.bf16.mxu0 %v8952_v30  ;;  %8959 = vmatpush1.bf16.msra.mxu1 %v8958_v50 }
 0x3a3   :  { %8961 = vmatprep.subr.bf16.mxu1 %v8960_v51 }
 0x3a5   :  { %9027 = vmatpush1.bf16.msra.mxu0 %v8954_v59 }
 0x3a6   :  { %9029 = vmatprep.subr.bf16.mxu0 %v8956_v37  ;;  %8963 = vmatpush1.bf16.msra.mxu1 %v8962_v12 }
 0x3a7   :  { %8965 = vmatprep.subr.bf16.mxu1 %v8964_v38 }
 0x3a9   :  { %9031 = vmatpush1.bf16.msra.mxu0 %v8958_v50 }
 0x3aa   :  { %9033 = vmatprep.subr.bf16.mxu0 %v8960_v51  ;;  %8967 = vmatpush1.bf16.msra.mxu1 %v8966_v56  ;;  %v13135_v51 = vmov 0.0|0.0  }
 0x3ab   :  { %8969 = vmatprep.subr.bf16.mxu1 %v8968_v57 }
 0x3ad   :  { %9035 = vmatpush1.bf16.msra.mxu0 %v8962_v12 }
 0x3ae   :  { %9037 = vmatprep.subr.bf16.mxu0 %v8964_v38  ;;  %8971 = vmatpush1.bf16.msra.mxu1 %v8970_v40 }
 0x3af   :  { %8973 = vmatprep.subr.bf16.mxu1 %v8972_v41 }
 0x3b1   :  { %9039 = vmatpush1.bf16.msra.mxu0 %v8966_v56 }
 0x3b2   :  { %9041 = vmatprep.subr.bf16.mxu0 %v8968_v57  ;;  %8975 = vmatpush1.bf16.msra.mxu1 %v8974_v62 }
 0x3b3   :  { %8977 = vmatprep.subr.bf16.mxu1 %v8976_v28 }
 0x3b5   :  { %9043 = vmatpush1.bf16.msra.mxu0 %v8970_v40  ;;  %v7235_v40 = vld [vmem:[%s13172_s29 + $0xa8] sm:$0xff] }
 0x3b6   :  { %9045 = vmatprep.subr.bf16.mxu0 %v8972_v41  ;;  %8979 = vmatpush1.bf16.msra.mxu1 %v8978_v31  ;;  %v11470_v2 = vpack.c.bf16 %v7235_v40, %v7234_v48 }
 0x3b7   :  { %8981 = vmatprep.subr.bf16.mxu1 %v8980_v39 }
 0x3b9   :  { %9047 = vmatpush1.bf16.msra.mxu0 %v8974_v62 }
 0x3ba   :  { %9049 = vmatprep.subr.bf16.mxu0 %v8976_v28  ;;  %8983 = vmatpush1.bf16.msra.mxu1 %v8982_v15 }
 0x3bb   :  { %8985 = vmatprep.subr.bf16.mxu1 %v8984_v14 }
 0x3bd   :  { %9051 = vmatpush1.bf16.msra.mxu0 %v8978_v31 }
 0x3be   :  { %9053 = vmatprep.subr.bf16.mxu0 %v8980_v39  ;;  %8987 = vmatpush1.bf16.msra.mxu1 %v8986_v35 }
 0x3bf   :  { %9060 = vmatprep.subr.bf16.mxu1 %v13135_v51 }
 0x3c1   :  { %9055 = vmatpush1.bf16.msra.mxu0 %v8982_v15  ;;  %v7236_v15 = vld [vmem:[%s13172_s29 + $0xb0] sm:$0xff] }
 0x3c2   :  { %9057 = vmatprep.subr.bf16.mxu0 %v8984_v14 }
 0x3c5   :  { %9059 = vmatpush1.bf16.msra.mxu0 %v8986_v35 }
 0x3c6   :  { %9090 = vmatprep.subr.bf16.mxu0 %v13135_v51 }
 0x44a   :  { %v11384_v43 = vpop.f32.mrb[12].mxu0 }
 0x44b   :  { %v11386_v18 = vpop.f32.mrb[13].mxu0 }
 0x44c   :  { %v9846_v19 = vpack.i.bf16 %v11384_v43, %v11386_v18  ;;  %v9841_v36 = vpack.i.bf16 %v11386_v18, %v11384_v43 }
 0x44e   :  { %9842 = vrot.lane.b32.xlu0 %v9841_v36, %s9953_s28  ;;  %v11405_v42 = vpop.f32.mrb[14].mxu0 }
 0x44f   :  { %v11407_v13 = vpop.f32.mrb[15].mxu0 }
 0x450   :  { %v9856_v46 = vpack.i.bf16 %v11405_v42, %v11407_v13  ;;  %v9851_v16 = vpack.i.bf16 %v11407_v13, %v11405_v42 }
 0x452   :  { %9847 = vrot.lane.b32.xlu0 %v9846_v19, %s9954_s0  ;;  %9852 = vrot.lane.b32.xlu1 %v9851_v16, %s9953_s28  ;;  %v11415_v23 = vpop.f32.mrb[16].mxu0 }
 0x453   :  { %v11417_v25 = vpop.f32.mrb[17].mxu0 }
 0x454   :  { %v9866_v30 = vpack.i.bf16 %v11415_v23, %v11417_v25  ;;  %v9861_v26 = vpack.i.bf16 %v11417_v25, %v11415_v23 }
 0x456   :  { %9857 = vrot.lane.b32.xlu1 %v9856_v46, %s9954_s0  ;;  %9862 = vrot.lane.b32.xlu0 %v9861_v26, %s9953_s28 }
 0x45a   :  { %9867 = vrot.lane.b32.xlu1 %v9866_v30, %s9954_s0 }
 0x45b   :  { %v11426_v55 = vpop.f32.mrb[18].mxu0 }
 0x45c   :  { %v11428_v1 = vpop.f32.mrb[19].mxu0 }
 0x45d   :  { %v9876_v3 = vpack.i.bf16 %v11426_v55, %v11428_v1  ;;  %v9871_v59 = vpack.i.bf16 %v11428_v1, %v11426_v55 }
 0x45f   :  { %9877 = vrot.lane.b32.xlu1 %v9876_v3, %s9954_s0  ;;  %9872 = vrot.lane.b32.xlu0 %v9871_v59, %s9953_s28  ;;  %v11436_v37 = vpop.f32.mrb[20].mxu0  ;;  %v7238_v59 = vld [vmem:[%s13172_s29 + $0xc0] sm:$0xff] }
 0x460   :  { %v11438_v8 = vpop.f32.mrb[21].mxu0 }
 0x461   :  { %v9886_v4 = vpack.i.bf16 %v11436_v37, %v11438_v8  ;;  %v9881_v21 = vpack.i.bf16 %v11438_v8, %v11436_v37 }
 0x463   :  { %9887 = vrot.lane.b32.xlu1 %v9886_v4, %s9954_s0  ;;  %9882 = vrot.lane.b32.xlu0 %v9881_v21, %s9953_s28  ;;  %v11446_v49 = vpop.f32.mrb[22].mxu0 }
 0x464   :  { %v11448_v50 = vpop.f32.mrb[23].mxu0 }
 0x465   :  { %v9896_v11 = vpack.i.bf16 %v11446_v49, %v11448_v50  ;;  %v9891_v44 = vpack.i.bf16 %v11448_v50, %v11446_v49 }
 0x467   :  { %9897 = vrot.lane.b32.xlu1 %v9896_v11, %s9954_s0  ;;  %9892 = vrot.lane.b32.xlu0 %v9891_v44, %s9953_s28 }
 0x4c0   :  { %v9843_v45 = vpop.permute.xlu0 %9842 }
 0x4c1   :  { %v9845_v52 = vunpack.i.h.bf16 %v9843_v45  ;;  %v9844_v12 = vunpack.i.l.bf16 %v9843_v45 }
 0x4c3   :  { %v2339_v34 = vsel %vm1890_vm7, -1e+30, %v9844_v12  ;;  %v2330_v56 = vsel %vm1890_vm7, %v9844_v12, %v9845_v52 }
 0x4c4   :  { %v9848_v38 = vpop.permute.xlu0 %9847  ;;  %v9853_v53 = vpop.permute.xlu1 %9852 }
 0x4c5   :  { %v9850_v54 = vunpack.i.h.bf16 %v9848_v38  ;;  %v9849_v17 = vunpack.i.l.bf16 %v9848_v38  ;;  %v9855_v58 = vunpack.i.h.bf16 %v9853_v53  ;;  %v9854_v47 = vunpack.i.l.bf16 %v9853_v53  ;;  %v2791_v38 = vld [vmem:[%s13172_s29] sm:$0xff]  ;;  %v2792_v53 = vld [vmem:[%s13172_s29 + $0x8] sm:$0xff] }
 0x4c7   :  { %v2355_v57 = vsel %vm2354_vm10, %v9850_v54, %v9849_v17  ;;  %v2364_v0 = vsel %vm2354_vm10, %v9849_v17, -1e+30  ;;  %v2340_v29 = vsel %vm1890_vm7, -1e+30, %v9854_v47  ;;  %v2331_v6 = vsel %vm1890_vm7, %v9854_v47, %v9855_v58 }
 0x4c8   :  { %v2367_v41 = vmax.f32 %v2339_v34, %v2355_v57  ;;  %v2368_v60 = vmax.f32 %v2330_v56, %v2364_v0  ;;  %v9858_v61 = vpop.permute.xlu1 %9857  ;;  %v9863_v62 = vpop.permute.xlu0 %9862  ;;  %v7240_v56 = vld [vmem:[%s13172_s29 + $0xd0] sm:$0xff]  ;;  %v7241_v57 = vld [vmem:[%s13172_s29 + $0xd8] sm:$0xff] }
 0x4c9   :  { %v9860_v5 = vunpack.i.h.bf16 %v9858_v61  ;;  %v9859_v63 = vunpack.i.l.bf16 %v9858_v61  ;;  %v9865_v22 = vunpack.i.h.bf16 %v9863_v62  ;;  %v9864_v28 = vunpack.i.l.bf16 %v9863_v62  ;;  %v2793_v62 = vld [vmem:[%s13172_s29 + $0x10] sm:$0xff] }
 0x4ca   :  { %v2374_v27 = vmax.f32 %v11386_v18, %v2368_v60  ;;  %v2373_v31 = vmax.f32 %v11384_v43, %v2367_v41  ;;  %v7237_v18 = vld [vmem:[%s13172_s29 + $0xb8] sm:$0xff] }
 0x4cb   :  { %v2356_v39 = vsel %vm2354_vm10, %v9860_v5, %v9859_v63  ;;  %v2365_v10 = vsel %vm2354_vm10, %v9859_v63, -1e+30  ;;  %v2332_v24 = vsel %vm1890_vm7, %v9864_v28, %v9865_v22  ;;  %v2341_v14 = vsel %vm1890_vm7, -1e+30, %v9864_v28  ;;  %v2794_v5 = vld [vmem:[%s13172_s29 + $0x18] sm:$0xff] }
 0x4cc   :  { %v2370_v19 = vmax.f32 %v2331_v6, %v2365_v10  ;;  %2443 = vmatprep.mubr.f32.mxu1 %v2374_v27  ;;  %v9868_v43 = vpop.permute.xlu1 %9867  ;;  %v2369_v36 = vmax.f32 %v2340_v29, %v2356_v39  ;;  %v11487_v46 = vpack.c.bf16 %v7237_v18, %v7236_v15  ;;  %v11528_v28 = vpack.c.bf16 %v2792_v53, %v2791_v38  ;;  %v2799_v53 = vld [vmem:[%s13172_s29 + $0x40] sm:$0xff] }
 0x4cd   :  { %v9870_v32 = vunpack.i.h.bf16 %v9868_v43  ;;  %v9869_v20 = vunpack.i.l.bf16 %v9868_v43  ;;  %2444 = vmatmul.mubr.f32.vlgmr.msra.gmra.mrb[12].mxu1 %v2373_v31  ;;  %v11531_v27 = vpack.c.bf16 %v7241_v57, %v7240_v56  ;;  %v11544_v43 = vpack.c.bf16 %v2794_v5, %v2793_v62  ;;  %v2807_v5 = vld [vmem:[%s13172_s29 + $0x80] sm:$0xff] }
 0x4ce   :  { %v2376_v33 = vmax.f32 %v11407_v13, %v2370_v19  ;;  %v2375_v35 = vmax.f32 %v11405_v42, %v2369_v36  ;;  %9062 = vmatpush1.bf16.msra.mxu1 %v11470_v2  ;;  %v7239_v42 = vld [vmem:[%s13172_s29 + $0xc8] sm:$0xff] }
 0x4cf   :  { %v2366_v16 = vsel %vm2354_vm10, %v9869_v20, -1e+30  ;;  %v2357_v30 = vsel %vm2354_vm10, %v9870_v32, %v9869_v20  ;;  %9063 = vmatprep.subr.bf16.mxu1 %v13135_v51  ;;  %v11508_v54 = vpack.c.bf16 %v7239_v42, %v7238_v59  ;;  %v7244_v59 = vld [vmem:[%s13172_s29 + $0xf0] sm:$0xff]  ;;  %v7245_v42 = vld [vmem:[%s13172_s29 + $0xf8] sm:$0xff] }
 0x4d0   :  { %v2371_v26 = vmax.f32 %v2341_v14, %v2357_v30  ;;  %2449 = vmatprep.mubr.f32.mxu1 %v2376_v33  ;;  %v2372_v3 = vmax.f32 %v2332_v24, %v2366_v16  ;;  %v2796_v16 = vld [vmem:[%s13172_s29 + $0x28] sm:$0xff] }
 0x4d1   :  { %v9878_v13 = vpop.permute.xlu1 %9877  ;;  %v9873_v4 = vpop.permute.xlu0 %9872  ;;  %2450 = vmatmul.mubr.f32.gmra.mrb[14].mxu1 %v2375_v35  ;;  %v2795_v35 = vld [vmem:[%s13172_s29 + $0x20] sm:$0xff] }
 0x4d2   :  { %v9880_v21 = vunpack.i.h.bf16 %v9878_v13  ;;  %v9879_v11 = vunpack.i.l.bf16 %v9878_v13  ;;  %v9875_v44 = vunpack.i.h.bf16 %v9873_v4  ;;  %v9874_v45 = vunpack.i.l.bf16 %v9873_v4  ;;  %9065 = vmatpush1.bf16.msra.mxu1 %v11487_v46 }
 0x4d3   :  { %v2378_v52 = vmax.f32 %v11417_v25, %v2372_v3  ;;  %v2377_v12 = vmax.f32 %v11415_v23, %v2371_v26  ;;  %9066 = vmatprep.subr.bf16.mxu1 %v13135_v51 }
 0x4d4   :  { %v2692_v17 = vsel %vm2354_vm10, %v9879_v11, -1e+30  ;;  %v2683_v34 = vsel %vm2354_vm10, %v9880_v21, %v9879_v11  ;;  %v2659_v25 = vsel %vm1890_vm7, %v9874_v45, %v9875_v44  ;;  %v2668_v23 = vsel %vm1890_vm7, -1e+30, %v9874_v45  ;;  %v2797_v45 = vld [vmem:[%s13172_s29 + $0x30] sm:$0xff] }
 0x4d5   :  { %v2695_v0 = vmax.f32 %v2668_v23, %v2683_v34  ;;  %2455 = vmatprep.mubr.f32.mxu1 %v2378_v52  ;;  %v9888_v58 = vpop.permute.xlu1 %9887  ;;  %v9883_v47 = vpop.permute.xlu0 %9882  ;;  %v2696_v48 = vmax.f32 %v2659_v25, %v2692_v17  ;;  %v11570_v21 = vpack.c.bf16 %v2796_v16, %v2795_v35  ;;  %v11579_v52 = vpack.c.bf16 %v7245_v42, %v7244_v59  ;;  %v2800_v34 = vld [vmem:[%s13172_s29 + $0x48] sm:$0xff]  ;;  %v7248_v25 = vld [vmem:[%s13172_s29 + $0x110] sm:$0xff]  ;;  %v7249_v23 = vld [vmem:[%s13172_s29 + $0x118] sm:$0xff] }
 0x4d6   :  { %v9890_v40 = vunpack.i.h.bf16 %v9888_v58  ;;  %v9889_v41 = vunpack.i.l.bf16 %v9888_v58  ;;  %v9885_v60 = vunpack.i.h.bf16 %v9883_v47  ;;  %v9884_v61 = vunpack.i.l.bf16 %v9883_v47  ;;  %2456 = vmatmul.mubr.f32.gmra.mrb[16].mxu1 %v2377_v12  ;;  %v2798_v12 = vld [vmem:[%s13172_s29 + $0x38] sm:$0xff]  ;;  %v7285_v35 = vld [vmem:[%s13172_s29 + $0x208] sm:$0xff] }
 0x4d7   :  { %v2701_v63 = vmax.f32 %v11426_v55, %v2695_v0  ;;  %v2702_v22 = vmax.f32 %v11428_v1, %v2696_v48  ;;  %9068 = vmatpush1.bf16.msra.mxu1 %v11508_v54  ;;  %v7242_v55 = vld [vmem:[%s13172_s29 + $0xe0] sm:$0xff]  ;;  %v7243_v1 = vld [vmem:[%s13172_s29 + $0xe8] sm:$0xff]  ;;  %v11593_v38 = vpack.c.bf16 %v2798_v12, %v2797_v45  ;;  %v11613_v56 = vpack.c.bf16 %v2800_v34, %v2799_v53  ;;  %v2801_v0 = vld [vmem:[%s13172_s29 + $0x50] sm:$0xff] }
 0x4d8   :  { %v2693_v31 = vsel %vm2354_vm10, %v9889_v41, -1e+30  ;;  %v2684_v29 = vsel %vm2354_vm10, %v9890_v40, %v9889_v41  ;;  %v2660_v6 = vsel %vm1890_vm7, %v9884_v61, %v9885_v60  ;;  %v2669_v39 = vsel %vm1890_vm7, -1e+30, %v9884_v61  ;;  %9069 = vmatprep.subr.bf16.mxu1 %v13135_v51  ;;  %v2802_v58 = vld [vmem:[%s13172_s29 + $0x58] sm:$0xff]  ;;  %v2803_v48 = vld [vmem:[%s13172_s29 + $0x60] sm:$0xff] }
 0x4d9   :  { %v2697_v10 = vmax.f32 %v2669_v39, %v2684_v29  ;;  %2771 = vmatprep.mubr.f32.mxu0 %v2702_v22  ;;  %v9898_v15 = vpop.permute.xlu1 %9897  ;;  %v9893_v18 = vpop.permute.xlu0 %9892  ;;  %v2698_v19 = vmax.f32 %v2660_v6, %v2693_v31  ;;  %v11556_v30 = vpack.c.bf16 %v7243_v1, %v7242_v55  ;;  %v11616_v57 = vpack.c.bf16 %v7249_v23, %v7248_v25  ;;  %v2804_v40 = vld [vmem:[%s13172_s29 + $0x68] sm:$0xff]  ;;  %v2805_v60 = vld [vmem:[%s13172_s29 + $0x70] sm:$0xff]  ;;  %v2806_v61 = vld [vmem:[%s13172_s29 + $0x78] sm:$0xff] }
 0x4da   :  { %v9900_v36 = vunpack.i.h.bf16 %v9898_v15  ;;  %v9899_v32 = vunpack.i.l.bf16 %v9898_v15  ;;  %v9895_v20 = vunpack.i.h.bf16 %v9893_v18  ;;  %v9894_v24 = vunpack.i.l.bf16 %v9893_v18  ;;  %2772 = vmatmul.mubr.f32.vlgmr.msra.gmra.mrb[24].mxu0 %v2701_v63  ;;  %v2808_v63 = vld [vmem:[%s13172_s29 + $0x88] sm:$0xff]  ;;  %v2809_v31 = vld [vmem:[%s13172_s29 + $0x90] sm:$0xff]  ;;  %v2810_v29 = vld [vmem:[%s13172_s29 + $0x98] sm:$0xff] }
 0x4db   :  { %v2704_v14 = vmax.f32 %v11438_v8, %v2698_v19  ;;  %v2703_v33 = vmax.f32 %v11436_v37, %v2697_v10  ;;  %9092 = vmatpush1.bf16.msra.mxu0 %v11528_v28  ;;  %9071 = vmatpush1.bf16.msra.mxu1 %v11531_v27  ;;  %v11627_v47 = vpack.c.bf16 %v2802_v58, %v2801_v0  ;;  %v7250_v39 = vld [vmem:[%s13172_s29 + $0x120] sm:$0xff]  ;;  %v7251_v55 = vld [vmem:[%s13172_s29 + $0x128] sm:$0xff]  ;;  %v7252_v10 = vld [vmem:[%s13172_s29 + $0x130] sm:$0xff] }
 0x4dc   :  { %v2694_v26 = vsel %vm2354_vm10, %v9899_v32, -1e+30  ;;  %v2685_v8 = vsel %vm2354_vm10, %v9900_v36, %v9899_v32  ;;  %v2661_v37 = vsel %vm1890_vm7, %v9894_v24, %v9895_v20  ;;  %v2670_v3 = vsel %vm1890_vm7, -1e+30, %v9894_v24  ;;  %9093 = vmatprep.subr.bf16.mxu0 %v13135_v51  ;;  %9072 = vmatprep.subr.bf16.mxu1 %v13135_v51  ;;  %v7253_v15 = vld [vmem:[%s13172_s29 + $0x138] sm:$0xff]  ;;  %v7280_v19 = vld [vmem:[%s13172_s29 + $0x1e0] sm:$0xff] }
 0x4dd   :  { %v2699_v13 = vmax.f32 %v2670_v3, %v2685_v8  ;;  %2777 = vmatprep.mubr.f32.mxu0 %v2704_v14  ;;  %v2700_v4 = vmax.f32 %v2661_v37, %v2694_v26  ;;  %v11639_v41 = vpack.c.bf16 %v2804_v40, %v2803_v48  ;;  %v11649_v62 = vpack.c.bf16 %v2806_v61, %v2805_v60  ;;  %v7281_v36 = vld [vmem:[%s13172_s29 + $0x1e8] sm:$0xff]  ;;  %v7282_v32 = vld [vmem:[%s13172_s29 + $0x1f0] sm:$0xff]  ;;  %v7283_v20 = vld [vmem:[%s13172_s29 + $0x1f8] sm:$0xff] }
 0x4de   :  { %2778 = vmatmul.mubr.f32.gmra.mrb[26].mxu0 %v2703_v33  ;;  %v11659_v22 = vpack.c.bf16 %v2808_v63, %v2807_v5  ;;  %v11669_v6 = vpack.c.bf16 %v2810_v29, %v2809_v31  ;;  %v11680_v1 = vpack.c.bf16 %v7251_v55, %v7250_v39  ;;  %v11690_v18 = vpack.c.bf16 %v7253_v15, %v7252_v10  ;;  %v7258_v24 = vld [vmem:[%s13172_s29 + $0x140] sm:$0xff]  ;;  %v7259_v14 = vld [vmem:[%s13172_s29 + $0x148] sm:$0xff]  ;;  %v7261_v48 = vld [vmem:[%s13172_s29 + $0x158] sm:$0xff] }
 0x4df   :  { %v2706_v11 = vmax.f32 %v11448_v50, %v2700_v4  ;;  %v2705_v44 = vmax.f32 %v11446_v49, %v2699_v13  ;;  %9095 = vmatpush1.bf16.msra.mxu0 %v11544_v43  ;;  %9074 = vmatpush1.bf16.msra.mxu1 %v11556_v30  ;;  %v7246_v49 = vld [vmem:[%s13172_s29 + $0x100] sm:$0xff]  ;;  %v7247_v50 = vld [vmem:[%s13172_s29 + $0x108] sm:$0xff]  ;;  %v11718_v26 = vpack.c.bf16 %v7281_v36, %v7280_v19  ;;  %v7286_v5 = vld [vmem:[%s13172_s29 + $0x210] sm:$0xff] }
 0x4e0   :  { %9096 = vmatprep.subr.bf16.mxu0 %v13135_v51  ;;  %9075 = vmatprep.subr.bf16.mxu1 %v13135_v51  ;;  %v11599_v17 = vpack.c.bf16 %v7247_v50, %v7246_v49  ;;  %13173 = vst [vmem:[#allocation7_spill] sm:$0xff] %v11669_v6  ;;  %v7284_v33 = vld [vmem:[%s13172_s29 + $0x200] sm:$0xff]  ;;  %v11721_v37 = vpack.c.bf16 %v7283_v20, %v7282_v32  ;;  %v7260_v49 = vld [vmem:[%s13172_s29 + $0x150] sm:$0xff]  ;;  %v7287_v63 = vld [vmem:[%s13172_s29 + $0x218] sm:$0xff] }
 0x4e1   :  { %2783 = vmatprep.mubr.f32.mxu0 %v2706_v11  ;;  %13174 = vst [vmem:[#allocation8_spill] sm:$0xff] %v11718_v26  ;;  %v11723_v3 = vpack.c.bf16 %v7259_v14, %v7258_v24  ;;  %v11725_v59 = vpack.c.bf16 %v7285_v35, %v7284_v33  ;;  %v11770_v24 = vpack.c.bf16 %v7261_v48, %v7260_v49  ;;  %v7262_v33 = vld [vmem:[%s13172_s29 + $0x160] sm:$0xff]  ;;  %v7263_v35 = vld [vmem:[%s13172_s29 + $0x168] sm:$0xff]  ;;  %v7265_v48 = vld [vmem:[%s13172_s29 + $0x178] sm:$0xff] }
 0x4e2   :  { %2784 = vmatmul.mubr.f32.gmra.mrb[28].mxu0 %v2705_v44  ;;  %13175 = vst [vmem:[#allocation9_spill] sm:$0xff] %v11721_v37  ;;  %v11772_v14 = vpack.c.bf16 %v7287_v63, %v7286_v5  ;;  %v7290_v5 = vld [vmem:[%s13172_s29 + $0x230] sm:$0xff] }
 0x4e3   :  { %9098 = vmatpush1.bf16.msra.mxu0 %v11570_v21  ;;  %9077 = vmatpush1.bf16.msra.mxu1 %v11579_v52  ;;  %13176 = vst [vmem:[#allocation10_spill] sm:$0xff] %v11725_v59 }
 0x4e4   :  { %9099 = vmatprep.subr.bf16.mxu0 %v13135_v51  ;;  %9078 = vmatprep.subr.bf16.mxu1 %v13135_v51  ;;  %13177 = vst [vmem:[#allocation11_spill] sm:$0xff] %v11772_v14 }
 0x4e7   :  { %9101 = vmatpush1.bf16.msra.mxu0 %v11593_v38  ;;  %9080 = vmatpush1.bf16.msra.mxu1 %v11599_v17 }
 0x4e8   :  { %9102 = vmatprep.subr.bf16.mxu0 %v13135_v51  ;;  %9081 = vmatprep.subr.bf16.mxu1 %v13135_v51 }
 0x4eb   :  { %9104 = vmatpush1.bf16.msra.mxu0 %v11613_v56  ;;  %9083 = vmatpush1.bf16.msra.mxu1 %v11616_v57 }
 0x4ec   :  { %9105 = vmatprep.subr.bf16.mxu0 %v13135_v51  ;;  %9084 = vmatprep.subr.bf16.mxu1 %v13135_v51 }
 0x4ef   :  { %9107 = vmatpush1.bf16.msra.mxu0 %v11627_v47  ;;  %9086 = vmatpush1.bf16.msra.mxu1 %v11680_v1 }
 0x4f0   :  { %9108 = vmatprep.subr.bf16.mxu0 %v13135_v51  ;;  %9087 = vmatprep.subr.bf16.mxu1 %v13135_v51 }
 0x4f3   :  { %9110 = vmatpush1.bf16.msra.mxu0 %v11639_v41  ;;  %9089 = vmatpush1.bf16.msra.mxu1 %v11690_v18 }
 0x4f4   :  { %9111 = vmatprep.subr.bf16.mxu0 %v13135_v51  ;;  %9120 = vmatprep.subr.bf16.mxu1 %v13135_v51 }
 0x4f7   :  { %9113 = vmatpush1.bf16.msra.mxu0 %v11649_v62 }
 0x4f8   :  { %9114 = vmatprep.subr.bf16.mxu0 %v13135_v51 }
 0x4fb   :  { %9116 = vmatpush1.bf16.msra.mxu0 %v11659_v22 }
 0x4fc   :  { %9117 = vmatprep.subr.bf16.mxu0 %v13135_v51 }
 0x4ff   :  { %9119 = vmatpush1.bf16.msra.mxu0 %v11669_v6 }
 0x500   :  { %9150 = vmatprep.subr.bf16.mxu0 %v13135_v51 }
 0x5a0   :  { %v2445_v16 = vpop.f32.mrb[12].mxu1 }
 0x5a1   :  { %v2447_v8 = vpop.f32.mrb[13].mxu1  ;;  %v2838_v42 = vrot.slane %v2445_v16, 1  ;;  %v3029_v13 = vrot.slane %v2445_v16, 2  ;;  %v3143_v4 = vrot.slane %v2445_v16, 3  ;;  %v3257_v11 = vrot.slane %v2445_v16, 4 }
 0x5a2   :  { %7256 = vmatprep.mubr.msk.f32.mxu0 %vm2219_vm9, %v2447_v8  ;;  %v2841_v45 = vrot.slane %v2447_v8, 1  ;;  %v3146_v12 = vrot.slane %v2447_v8, 3  ;;  %v3032_v50 = vrot.slane %v2447_v8, 2  ;;  %v3260_v53 = vrot.slane %v2447_v8, 4  ;;  %v7289_v8 = vld [vmem:[%s13172_s29 + $0x228] sm:$0xff] }
 0x5a3   :  { %2998 = vmatmul.mubr.f32.vlgmr.msra.gmra.mrb[30].mxu0 %v2445_v16  ;;  %v7288_v16 = vld [vmem:[%s13172_s29 + $0x220] sm:$0xff] }
 0x5a4   :  { %9152 = vmatpush1.bf16.msra.mxu0 %v11718_v26  ;;  %v11728_v44 = vpop.f32.mrb[14].mxu1 }
 0x5a5   :  { %v2839_v34 = vrot.slane %v11728_v44, 1  ;;  %v3030_v25 = vrot.slane %v11728_v44, 2  ;;  %v3144_v23 = vrot.slane %v11728_v44, 3  ;;  %v13134_v0 = vrot.slane %v11728_v44, 4  ;;  %v2453_v58 = vpop.f32.mrb[15].mxu1  ;;  %9153 = vmatprep.subr.bf16.mxu0 %v13135_v51 }
 0x5a6   :  { %7257 = vmatprep.mubr.msk.f32.mxu0 %vm2219_vm9, %v2453_v58  ;;  %v2842_v40 = vrot.slane %v2453_v58, 1  ;;  %v3147_v60 = vrot.slane %v2453_v58, 3  ;;  %v3033_v61 = vrot.slane %v2453_v58, 2  ;;  %v3261_v31 = vrot.slane %v2453_v58, 4 }
 0x5a7   :  { %3003 = vmatmul.mubr.f32.gmra.mrb[32].mxu0 %v11728_v44  ;;  %v2840_v29 = vsel %vm161_vm4, %v2838_v42, %v2839_v34  ;;  %v11751_v39 = vsel %vm558_vm0, %v3143_v4, %v3144_v23  ;;  %v11754_v55 = vsel %vm408_vm6, %v3029_v13, %v3030_v25  ;;  %v11759_v10 = vsel %vm180_vm1, %v3257_v11, %v13134_v0  ;;  %v7293_v0 = vld [vmem:[%s13172_s29 + $0x248] sm:$0xff] }
 0x5a8   :  { %9155 = vmatpush1.bf16.msra.mxu0 %v11721_v37  ;;  %v2843_v15 = vsel %vm161_vm4, %v2841_v45, %v2842_v40  ;;  %v3148_v19 = vsel %vm558_vm0, %v3146_v12, %v3147_v60  ;;  %v3034_v36 = vsel %vm408_vm6, %v3032_v50, %v3033_v61  ;;  %v11766_v32 = vsel %vm180_vm1, %v3260_v53, %v3261_v31  ;;  %v7264_v12 = vld [vmem:[%s13172_s29 + $0x170] sm:$0xff] }
 0x5a9   :  { %v2457_v20 = vpop.f32.mrb[16].mxu1  ;;  %7254 = vmatprep.mubr.msk.f32.mxu1 %vm2219_vm9, %v2843_v15  ;;  %7300 = vmatprep.mubr.msk.f32.mxu0 %vm2219_vm9, %v3148_v19  ;;  %v7266_v15 = vld [vmem:[%s13172_s29 + $0x180] sm:$0xff]  ;;  %v7267_v19 = vld [vmem:[%s13172_s29 + $0x188] sm:$0xff] }
 0x5aa   :  { %v2844_v42 = vrot.slane %v2457_v20, 1  ;;  %v3035_v13 = vrot.slane %v2457_v20, 2  ;;  %v3149_v4 = vrot.slane %v2457_v20, 3  ;;  %v3263_v11 = vrot.slane %v2457_v20, 4  ;;  %v2459_v45 = vpop.f32.mrb[17].mxu1  ;;  %2919 = vmatmul.mubr.f32.vlgmr.msra.gmra.mrb[18].mxu1 %v2840_v29  ;;  %9156 = vmatprep.subr.bf16.mxu0 %v13135_v51  ;;  %v7291_v29 = vld [vmem:[%s13172_s29 + $0x238] sm:$0xff] }
 0x5ab   :  { %v2846_v49 = vrot.slane %v2459_v45, 1  ;;  %v3037_v50 = vrot.slane %v2459_v45, 2  ;;  %v3151_v53 = vrot.slane %v2459_v45, 3  ;;  %v3265_v58 = vrot.slane %v2459_v45, 4  ;;  %9122 = vmatpush1.bf16.msra.mxu1 %v11723_v3 }
 0x5ac   :  { %9158 = vmatpush1.bf16.msra.mxu0 %v11725_v59  ;;  %9123 = vmatprep.subr.bf16.mxu1 %v13135_v51  ;;  %v2845_v63 = vsel %vm161_vm4, %v2839_v34, %v2844_v42  ;;  %v11810_v20 = vsel %vm558_vm0, %v3144_v23, %v3149_v4  ;;  %v11813_v45 = vsel %vm408_vm6, %v3030_v25, %v3035_v13  ;;  %v7292_v42 = vld [vmem:[%s13172_s29 + $0x240] sm:$0xff] }
 0x5ad   :  { %v11815_v7 = vpop.f32.mrb[24].mxu0  ;;  %v2847_v34 = vsel %vm161_vm4, %v2842_v40, %v2846_v49  ;;  %9159 = vmatprep.subr.bf16.mxu0 %v13135_v51  ;;  %v11826_v23 = vsel %vm558_vm0, %v3147_v60, %v3151_v53  ;;  %v11829_v25 = vsel %vm408_vm6, %v3033_v61, %v3037_v50  ;;  %v11832_v13 = vsel %vm180_vm1, %v3261_v31, %v3265_v58 }
 0x5ae   :  { %13178 = vst [vmem:[#allocation12_spill] sm:$0xff] %v11815_v7  ;;  %v11834_v40 = vpop.f32.mrb[25].mxu0  ;;  %7255 = vmatprep.mubr.msk.f32.mxu1 %vm2219_vm9, %v2847_v34  ;;  %v11837_v4 = vpack.c.bf16 %v7263_v35, %v7262_v33  ;;  %v11839_v49 = vpack.c.bf16 %v7289_v8, %v7288_v16  ;;  %v11841_v51 = vpack.c.bf16 %v7265_v48, %v7264_v12  ;;  %v13180_v61 = vrot.slane %v11728_v44, 4 }
 0x5af   :  { %2924 = vmatmul.mubr.f32.gmra.mrb[20].mxu1 %v2845_v63  ;;  %v11843_v9 = vpack.c.bf16 %v7291_v29, %v7290_v5  ;;  %v11845_v60 = vpack.c.bf16 %v7267_v19, %v7266_v15  ;;  %v3426_v50 = vrot.slane %v11815_v7, 1  ;;  %v3616_v53 = vrot.slane %v11815_v7, 2 }
 0x5b0   :  { %13179 = vst [vmem:[#allocation13_spill] sm:$0xff] %v11839_v49  ;;  %v11850_v31 = vsel %vm180_vm1, %v13180_v61, %v3263_v11  ;;  %v3729_v33 = vrot.slane %v11815_v7, 3  ;;  %9125 = vmatpush1.bf16.msra.mxu1 %v11770_v24  ;;  %7278 = vmatprep.mubr.msk.f32.mxu1 %vm2219_vm9, %v3034_v36  ;;  %v11857_v35 = vpack.c.bf16 %v7293_v0, %v7292_v42  ;;  %v3842_v16 = vrot.slane %v11815_v7, 4 }
 0x5b1   :  { %9161 = vmatpush1.bf16.msra.mxu0 %v11772_v14  ;;  %v11861_v44 = vpop.f32.mrb[26].mxu0  ;;  %v13182_v8 = vmov 0.0|0.0   ;;  %v3429_v11 = vrot.slane %v11834_v40, 1  ;;  %v3619_v12 = vrot.slane %v11834_v40, 2  ;;  %v3845_v58 = vrot.slane %v11834_v40, 4 }
 0x5b2   :  { %13181 = vst [vmem:[#allocation14_spill] sm:$0xff] %v11861_v44  ;;  %9126 = vmatprep.subr.bf16.mxu1 %v13182_v8  ;;  %v3427_v48 = vrot.slane %v11861_v44, 1  ;;  %v3617_v36 = vrot.slane %v11861_v44, 2  ;;  %v3730_v0 = vrot.slane %v11861_v44, 3  ;;  %v3843_v5 = vrot.slane %v11861_v44, 4  ;;  %v11871_v63 = vpop.f32.mrb[27].mxu0  ;;  %9162 = vmatprep.subr.bf16.mxu0 %v13182_v8 }
 0x5b3   :  { %13183 = vst [vmem:[#allocation15_spill] sm:$0xff] %v11871_v63  ;;  %v3430_v29 = vrot.slane %v11871_v63, 1  ;;  %v3620_v15 = vrot.slane %v11871_v63, 2  ;;  %v3846_v19 = vrot.slane %v11871_v63, 4  ;;  %v3733_v34 = vrot.slane %v11871_v63, 3 }
 0x5b4   :  { %9128 = vmatpush1.bf16.msra.mxu1 %v11837_v4  ;;  %v11880_v42 = vsel %vm161_vm4, %v3426_v50, %v3427_v48  ;;  %v11883_v61 = vsel %vm408_vm6, %v3616_v53, %v3617_v36  ;;  %v11886_v14 = vsel %vm180_vm1, %v3842_v16, %v3843_v5  ;;  %v11889_v59 = vsel %vm558_vm0, %v3729_v33, %v3730_v0 }
 0x5b5   :  { %13184 = vst [vmem:[#allocation16_spill] sm:$0xff] %v11886_v14  ;;  %13185 = vst [vmem:[#allocation17_spill] sm:$0xff] %v11889_v59  ;;  %9164 = vmatpush1.bf16.msra.mxu0 %v11839_v49  ;;  %v2785_v37 = vpop.f32.mrb[28].mxu0  ;;  %9129 = vmatprep.subr.bf16.mxu1 %v13182_v8  ;;  %v11894_v44 = vsel %vm161_vm4, %v3429_v11, %v3430_v29  ;;  %v11897_v50 = vsel %vm408_vm6, %v3619_v12, %v3620_v15  ;;  %v3732_v16 = vrot.slane %v11834_v40, 3 }
 0x5b6   :  { %v11900_v53 = vsel %vm180_vm1, %v3845_v58, %v3846_v19  ;;  %v3432_v14 = vrot.slane %v2785_v37, 1  ;;  %v3622_v26 = vrot.slane %v2785_v37, 2  ;;  %v3735_v33 = vrot.slane %v2785_v37, 3  ;;  %v2787_v63 = vpop.f32.mrb[29].mxu0  ;;  %9165 = vmatprep.subr.bf16.mxu0 %v13182_v8 }
 0x5b7   :  { %13186 = vst [vmem:[#allocation18_spill] sm:$0xff] %v11900_v53  ;;  %v3848_v59 = vrot.slane %v2785_v37, 4  ;;  %v3434_v49 = vrot.slane %v2787_v63, 1  ;;  %v3624_v7 = vrot.slane %v2787_v63, 2  ;;  %v3737_v6 = vrot.slane %v2787_v63, 3 }
 0x5b8   :  { %v3850_v11 = vrot.slane %v2787_v63, 4  ;;  %9131 = vmatpush1.bf16.msra.mxu1 %v11841_v51  ;;  %v11906_v12 = vsel %vm161_vm4, %v3427_v48, %v3432_v14  ;;  %v11909_v58 = vsel %vm408_vm6, %v3617_v36, %v3622_v26  ;;  %v11912_v53 = vsel %vm558_vm0, %v3732_v16, %v3733_v34  ;;  %v7268_v63 = vld [vmem:[%s13172_s29 + $0x190] sm:$0xff]  ;;  %v7269_v14 = vld [vmem:[%s13172_s29 + $0x198] sm:$0xff] }
 0x5b9   :  { %v11915_v37 = vsel %vm180_vm1, %v3843_v5, %v3848_v59  ;;  %9167 = vmatpush1.bf16.msra.mxu0 %v11843_v9  ;;  %9132 = vmatprep.subr.bf16.mxu1 %v13182_v8  ;;  %v11926_v26 = vsel %vm161_vm4, %v3430_v29, %v3434_v49  ;;  %v11929_v48 = vsel %vm408_vm6, %v3620_v15, %v3624_v7  ;;  %v7294_v36 = vld [vmem:[%s13172_s29 + $0x250] sm:$0xff]  ;;  %v7295_v5 = vld [vmem:[%s13172_s29 + $0x258] sm:$0xff]  ;;  %v7270_v15 = vld [vmem:[%s13172_s29 + $0x1a0] sm:$0xff] }
 0x5ba   :  { %v11932_v59 = vsel %vm180_vm1, %v3846_v19, %v3850_v11  ;;  %9168 = vmatprep.subr.bf16.mxu0 %v13182_v8  ;;  %v11942_v16 = vsel %vm558_vm0, %v3733_v34, %v3737_v6  ;;  %v11945_v49 = vsel %vm558_vm0, %v3730_v0, %v3735_v33  ;;  %v11948_v7 = vpack.c.bf16 %v7269_v14, %v7268_v63  ;;  %v7271_v6 = vld [vmem:[%s13172_s29 + $0x1a8] sm:$0xff]  ;;  %v7296_v0 = vld [vmem:[%s13172_s29 + $0x260] sm:$0xff]  ;;  %v7272_v11 = vld [vmem:[%s13172_s29 + $0x1b0] sm:$0xff] }
 0x5bb   :  { %v11952_v29 = vpack.c.bf16 %v7295_v5, %v7294_v36  ;;  %v7297_v19 = vld [vmem:[%s13172_s29 + $0x268] sm:$0xff]  ;;  %v11968_v34 = vpack.c.bf16 %v7271_v6, %v7270_v15  ;;  %v7273_v63 = vld [vmem:[%s13172_s29 + $0x1b8] sm:$0xff]  ;;  %v7298_v14 = vld [vmem:[%s13172_s29 + $0x270] sm:$0xff] }
 0x5bc   :  { %9134 = vmatpush1.bf16.msra.mxu1 %v11845_v60  ;;  %v11972_v33 = vpack.c.bf16 %v7297_v19, %v7296_v0  ;;  %v7299_v36 = vld [vmem:[%s13172_s29 + $0x278] sm:$0xff]  ;;  %v11988_v5 = vpack.c.bf16 %v7273_v63, %v7272_v11  ;;  %v7274_v6 = vld [vmem:[%s13172_s29 + $0x1c0] sm:$0xff]  ;;  %v7275_v0 = vld [vmem:[%s13172_s29 + $0x1c8] sm:$0xff] }
 0x5bd   :  { %9170 = vmatpush1.bf16.msra.mxu0 %v11857_v35  ;;  %9135 = vmatprep.subr.bf16.mxu1 %v13182_v8  ;;  %v11992_v15 = vpack.c.bf16 %v7299_v36, %v7298_v14  ;;  %v12002_v19 = vpack.c.bf16 %v7275_v0, %v7274_v6  ;;  %v7276_v11 = vld [vmem:[%s13172_s29 + $0x1d0] sm:$0xff]  ;;  %v7277_v63 = vld [vmem:[%s13172_s29 + $0x1d8] sm:$0xff]  ;;  %v7302_v36 = vld [vmem:[%s13172_s29 + $0x280] sm:$0xff] }
 0x5be   :  { %9171 = vmatprep.subr.bf16.mxu0 %v13182_v8  ;;  %v12015_v14 = vpack.c.bf16 %v7277_v63, %v7276_v11  ;;  %v7303_v6 = vld [vmem:[%s13172_s29 + $0x288] sm:$0xff]  ;;  %v7313_v11 = vld [vmem:[%s13172_s29 + $0x2d8] sm:$0xff] }
 0x5c0   :  { %9137 = vmatpush1.bf16.msra.mxu1 %v11948_v7 }
 0x5c1   :  { %9173 = vmatpush1.bf16.msra.mxu0 %v11952_v29  ;;  %9138 = vmatprep.subr.bf16.mxu1 %v13182_v8 }
 0x5c2   :  { %9174 = vmatprep.subr.bf16.mxu0 %v13182_v8 }
 0x5c4   :  { %9140 = vmatpush1.bf16.msra.mxu1 %v11968_v34 }
 0x5c5   :  { %9176 = vmatpush1.bf16.msra.mxu0 %v11972_v33  ;;  %9141 = vmatprep.subr.bf16.mxu1 %v13182_v8 }
 0x5c6   :  { %9177 = vmatprep.subr.bf16.mxu0 %v13182_v8 }
 0x5c8   :  { %9143 = vmatpush1.bf16.msra.mxu1 %v11988_v5 }
 0x5c9   :  { %9179 = vmatpush1.bf16.msra.mxu0 %v11992_v15  ;;  %9144 = vmatprep.subr.bf16.mxu1 %v13182_v8 }
 0x5ca   :  { %9210 = vmatprep.subr.bf16.mxu0 %v13182_v8 }
 0x5cc   :  { %9146 = vmatpush1.bf16.msra.mxu1 %v12002_v19  ;;  %3224 = vmatmul.mubr.f32.vlgmr.msra.gmra.mrb[34].mxu0 %v11751_v39  ;;  %v12030_v39 = vpack.c.bf16 %v7303_v6, %v7302_v36  ;;  %v7315_v36 = vld [vmem:[%s13172_s29 + $0x2e8] sm:$0xff] }
 0x5cd   :  { %7301 = vmatprep.mubr.msk.f32.mxu0 %vm2219_vm9, %v11826_v23  ;;  %9212 = vmatpush1.bf16.msra.mxu0 %v11470_v2  ;;  %v7304_v2 = vld [vmem:[%s13172_s29 + $0x290] sm:$0xff]  ;;  %v7305_v23 = vld [vmem:[%s13172_s29 + $0x298] sm:$0xff] }
 0x5ce   :  { %9147 = vmatprep.subr.bf16.mxu1 %v13182_v8  ;;  %9213 = vmatprep.subr.bf16.mxu0 %v13182_v8 }
 0x5d0   :  { %9149 = vmatpush1.bf16.msra.mxu1 %v12015_v14  ;;  %3229 = vmatmul.mubr.f32.gmra.mrb[36].mxu0 %v11810_v20  ;;  %v7306_v20 = vld [vmem:[%s13172_s29 + $0x2a0] sm:$0xff] }
 0x5d1   :  { %9215 = vmatpush1.bf16.msra.mxu0 %v11487_v46  ;;  %7345 = vmatprep.mubr.msk.f32.mxu0 %vm2219_vm9, %v11894_v44  ;;  %v12047_v46 = vpack.c.bf16 %v7305_v23, %v7304_v2  ;;  %v7307_v44 = vld [vmem:[%s13172_s29 + $0x2a8] sm:$0xff]  ;;  %v7317_v2 = vld [vmem:[%s13172_s29 + $0x2f8] sm:$0xff] }
 0x5d2   :  { %9180 = vmatprep.subr.bf16.mxu1 %v13182_v8  ;;  %9216 = vmatprep.subr.bf16.mxu0 %v13182_v8 }
 0x5d3   :  { %3110 = vmatmul.mubr.f32.vlgmr.msra.gmra.mrb[22].mxu1 %v11754_v55  ;;  %v7308_v55 = vld [vmem:[%s13172_s29 + $0x2b0] sm:$0xff] }
 0x5d4   :  { %7279 = vmatprep.mubr.msk.f32.mxu1 %vm2219_vm9, %v11829_v25  ;;  %9182 = vmatpush1.bf16.msra.mxu1 %v12030_v39  ;;  %v7309_v25 = vld [vmem:[%s13172_s29 + $0x2b8] sm:$0xff] }
 0x5d5   :  { %9218 = vmatpush1.bf16.msra.mxu0 %v11508_v54  ;;  %9183 = vmatprep.subr.bf16.mxu1 %v13182_v8  ;;  %v12062_v54 = vpack.c.bf16 %v7307_v44, %v7306_v20  ;;  %v7319_v20 = vld [vmem:[%s13172_s29 + $0x308] sm:$0xff] }
 0x5d6   :  { %9219 = vmatprep.subr.bf16.mxu0 %v13182_v8 }
 0x5d7   :  { %3115 = vmatmul.mubr.f32.gmra.mrb[24].mxu1 %v11813_v45  ;;  %v12074_v45 = vpack.c.bf16 %v7309_v25, %v7308_v55  ;;  %v7321_v55 = vld [vmem:[%s13172_s29 + $0x318] sm:$0xff] }
 0x5d8   :  { %9185 = vmatpush1.bf16.msra.mxu1 %v12047_v46  ;;  %7322 = vmatprep.mubr.msk.f32.mxu1 %vm2219_vm9, %v11766_v32  ;;  %v7311_v32 = vld [vmem:[%s13172_s29 + $0x2c8] sm:$0xff] }
 0x5d9   :  { %9221 = vmatpush1.bf16.msra.mxu0 %v11531_v27  ;;  %9186 = vmatprep.subr.bf16.mxu1 %v13182_v8  ;;  %v7310_v27 = vld [vmem:[%s13172_s29 + $0x2c0] sm:$0xff] }
 0x5da   :  { %9222 = vmatprep.subr.bf16.mxu0 %v13182_v8  ;;  %v12086_v0 = vpack.c.bf16 %v7311_v32, %v7310_v27  ;;  %v13199_v27 = vmov 0.0  }
 0x5dc   :  { %9188 = vmatpush1.bf16.msra.mxu1 %v12062_v54 }
 0x5dd   :  { %9224 = vmatpush1.bf16.msra.mxu0 %v11556_v30  ;;  %9189 = vmatprep.subr.bf16.mxu1 %v13182_v8  ;;  %v7312_v30 = vld [vmem:[%s13172_s29 + $0x2d0] sm:$0xff] }
 0x5de   :  { %9225 = vmatprep.subr.bf16.mxu0 %v13182_v8  ;;  %v12098_v63 = vpack.c.bf16 %v7313_v11, %v7312_v30  ;;  %v3968_v30 = vld [vmem:[%s13110_s13 + $0x48] sm:$0xff] }
 0x5e0   :  { %9191 = vmatpush1.bf16.msra.mxu1 %v12074_v45 }
 0x5e1   :  { %9227 = vmatpush1.bf16.msra.mxu0 %v11579_v52  ;;  %9192 = vmatprep.subr.bf16.mxu1 %v13182_v8  ;;  %v7314_v52 = vld [vmem:[%s13172_s29 + $0x2e0] sm:$0xff] }
 0x5e2   :  { %9228 = vmatprep.subr.bf16.mxu0 %v13182_v8  ;;  %v12110_v6 = vpack.c.bf16 %v7315_v36, %v7314_v52  ;;  %v3970_v52 = vld [vmem:[%s13110_s13 + $0x58] sm:$0xff] }
 0x5e4   :  { %9194 = vmatpush1.bf16.msra.mxu1 %v12086_v0 }
 0x5e5   :  { %9230 = vmatpush1.bf16.msra.mxu0 %v11599_v17  ;;  %9195 = vmatprep.subr.bf16.mxu1 %v13182_v8  ;;  %v7316_v17 = vld [vmem:[%s13172_s29 + $0x2f0] sm:$0xff] }
 0x5e6   :  { %9231 = vmatprep.subr.bf16.mxu0 %v13182_v8  ;;  %v12122_v23 = vpack.c.bf16 %v7317_v2, %v7316_v17  ;;  %v3972_v17 = vld [vmem:[%s13110_s13 + $0x68] sm:$0xff] }
 0x5e8   :  { %9197 = vmatpush1.bf16.msra.mxu1 %v12098_v63 }
 0x5e9   :  { %9233 = vmatpush1.bf16.msra.mxu0 %v11616_v57  ;;  %9198 = vmatprep.subr.bf16.mxu1 %v13182_v8  ;;  %v7318_v57 = vld [vmem:[%s13172_s29 + $0x300] sm:$0xff] }
 0x5ea   :  { %9234 = vmatprep.subr.bf16.mxu0 %v13182_v8  ;;  %v12134_v44 = vpack.c.bf16 %v7319_v20, %v7318_v57  ;;  %v3974_v57 = vld [vmem:[%s13110_s13 + $0x78] sm:$0xff] }
 0x5ec   :  { %9200 = vmatpush1.bf16.msra.mxu1 %v12110_v6 }
 0x5ed   :  { %9236 = vmatpush1.bf16.msra.mxu0 %v11680_v1  ;;  %9201 = vmatprep.subr.bf16.mxu1 %v13182_v8  ;;  %v7320_v1 = vld [vmem:[%s13172_s29 + $0x310] sm:$0xff] }
 0x5ee   :  { %9237 = vmatprep.subr.bf16.mxu0 %v13182_v8  ;;  %v12147_v25 = vpack.c.bf16 %v7321_v55, %v7320_v1 }
 0x5f0   :  { %9203 = vmatpush1.bf16.msra.mxu1 %v12122_v23 }
 0x5f1   :  { %9239 = vmatpush1.bf16.msra.mxu0 %v11690_v18  ;;  %9204 = vmatprep.subr.bf16.mxu1 %v13182_v8  ;;  %v13198_v18 = vld [vmem:[#allocation17_spill] sm:$0xff] }
 0x5f2   :  { %9270 = vmatprep.subr.bf16.mxu0 %v13182_v8 }
 0x5f4   :  { %9206 = vmatpush1.bf16.msra.mxu1 %v12134_v44  ;;  %3507 = vmatmul.mubr.f32.vlgmr.msra.gmra.mrb[38].mxu0 %v11880_v42 }
 0x5f5   :  { %7346 = vmatprep.mubr.msk.f32.mxu0 %vm2219_vm9, %v11926_v26  ;;  %9272 = vmatpush1.bf16.msra.mxu0 %v11723_v3 }
 0x5f6   :  { %9207 = vmatprep.subr.bf16.mxu1 %v13182_v8  ;;  %9273 = vmatprep.subr.bf16.mxu0 %v13182_v8 }
 0x5f8   :  { %9209 = vmatpush1.bf16.msra.mxu1 %v12147_v25  ;;  %3512 = vmatmul.mubr.f32.gmra.mrb[40].mxu0 %v11906_v12 }
 0x5f9   :  { %9275 = vmatpush1.bf16.msra.mxu0 %v11770_v24  ;;  %7369 = vmatprep.mubr.msk.f32.mxu0 %vm2219_vm9, %v11897_v50  ;;  %v3960_v50 = vld [vmem:[%s13110_s13 + $0x8] sm:$0xff] }
 0x5fa   :  { %9240 = vmatprep.subr.bf16.mxu1 %v13182_v8  ;;  %9276 = vmatprep.subr.bf16.mxu0 %v13182_v8 }
 0x5fb   :  { %3338 = vmatmul.mubr.f32.vlgmr.msra.gmra.mrb[26].mxu1 %v11759_v10 }
 0x5fc   :  { %7323 = vmatprep.mubr.msk.f32.mxu1 %vm2219_vm9, %v11832_v13  ;;  %9242 = vmatpush1.bf16.msra.mxu1 %v11528_v28  ;;  %v13188_v28 = vld [vmem:[#allocation18_spill] sm:$0xff] }
 0x5fd   :  { %9278 = vmatpush1.bf16.msra.mxu0 %v11837_v4  ;;  %9243 = vmatprep.subr.bf16.mxu1 %v13182_v8 }
 0x5fe   :  { %9279 = vmatprep.subr.bf16.mxu0 %v13182_v8 }
 0x5ff   :  { %3343 = vmatmul.mubr.f32.gmra.mrb[28].mxu1 %v11850_v31 }
 0x600   :  { %9245 = vmatpush1.bf16.msra.mxu1 %v11544_v43  ;;  %7347 = vmatprep.mubr.msk.f32.mxu1 %vm2219_vm9, %v11834_v40  ;;  %v13189_v43 = vld [vmem:[#allocation12_spill] sm:$0xff] }
 0x601   :  { %9281 = vmatpush1.bf16.msra.mxu0 %v11841_v51  ;;  %9246 = vmatprep.subr.bf16.mxu1 %v13182_v8  ;;  %v13187_v51 = vld [vmem:[#allocation7_spill] sm:$0xff] }
 0x602   :  { %9282 = vmatprep.subr.bf16.mxu0 %v13182_v8 }
 0x604   :  { %9248 = vmatpush1.bf16.msra.mxu1 %v11570_v21  ;;  %v13190_v21 = vld [vmem:[#allocation15_spill] sm:$0xff] }
 0x605   :  { %9284 = vmatpush1.bf16.msra.mxu0 %v11845_v60  ;;  %9249 = vmatprep.subr.bf16.mxu1 %v13182_v8 }
 0x606   :  { %9285 = vmatprep.subr.bf16.mxu0 %v13182_v8 }
 0x608   :  { %9251 = vmatpush1.bf16.msra.mxu1 %v11593_v38  ;;  %v13191_v38 = vld [vmem:[#allocation8_spill] sm:$0xff] }
 0x609   :  { %9287 = vmatpush1.bf16.msra.mxu0 %v11948_v7  ;;  %9252 = vmatprep.subr.bf16.mxu1 %v13182_v8  ;;  %v3962_v7 = vld [vmem:[%s13110_s13 + $0x18] sm:$0xff] }
 0x60a   :  { %9288 = vmatprep.subr.bf16.mxu0 %v13182_v8 }
 0x60c   :  { %9254 = vmatpush1.bf16.msra.mxu1 %v11613_v56  ;;  %v13192_v56 = vld [vmem:[#allocation14_spill] sm:$0xff] }
 0x60d   :  { %9290 = vmatpush1.bf16.msra.mxu0 %v11968_v34  ;;  %9255 = vmatprep.subr.bf16.mxu1 %v13182_v8 }
 0x60e   :  { %9291 = vmatprep.subr.bf16.mxu0 %v13182_v8 }
 0x610   :  { %9257 = vmatpush1.bf16.msra.mxu1 %v11627_v47  ;;  %v13193_v47 = vld [vmem:[#allocation9_spill] sm:$0xff] }
 0x611   :  { %9293 = vmatpush1.bf16.msra.mxu0 %v11988_v5  ;;  %9258 = vmatprep.subr.bf16.mxu1 %v13182_v8 }
 0x612   :  { %9294 = vmatprep.subr.bf16.mxu0 %v13182_v8 }
 0x614   :  { %9260 = vmatpush1.bf16.msra.mxu1 %v11639_v41  ;;  %v13194_v41 = vld [vmem:[#allocation10_spill] sm:$0xff] }
 0x615   :  { %9296 = vmatpush1.bf16.msra.mxu0 %v12002_v19  ;;  %9261 = vmatprep.subr.bf16.mxu1 %v13182_v8 }
 0x616   :  { %9297 = vmatprep.subr.bf16.mxu0 %v13182_v8 }
 0x618   :  { %9263 = vmatpush1.bf16.msra.mxu1 %v11649_v62  ;;  %v13195_v62 = vld [vmem:[#allocation11_spill] sm:$0xff] }
 0x619   :  { %9299 = vmatpush1.bf16.msra.mxu0 %v12015_v14  ;;  %9264 = vmatprep.subr.bf16.mxu1 %v13182_v8  ;;  %v3963_v14 = vld [vmem:[%s13110_s13 + $0x20] sm:$0xff] }
 0x61a   :  { %9330 = vmatprep.subr.bf16.mxu0 %v13182_v8 }
 0x61c   :  { %9266 = vmatpush1.bf16.msra.mxu1 %v11659_v22  ;;  %3697 = vmatmul.mubr.f32.vlgmr.msra.gmra.mrb[42].mxu0 %v11883_v61  ;;  %v13196_v22 = vld [vmem:[#allocation13_spill] sm:$0xff] }
 0x61d   :  { %7370 = vmatprep.mubr.msk.f32.mxu0 %vm2219_vm9, %v11929_v48  ;;  %9332 = vmatpush1.bf16.msra.mxu0 %v12030_v39  ;;  %v3959_v61 = vld [vmem:[%s13110_s13] sm:$0xff]  ;;  %v3964_v39 = vld [vmem:[%s13110_s13 + $0x28] sm:$0xff] }
 0x61e   :  { %9267 = vmatprep.subr.bf16.mxu1 %v13182_v8  ;;  %9333 = vmatprep.subr.bf16.mxu0 %v13182_v8 }
 0x620   :  { %9269 = vmatpush1.bf16.msra.mxu1 %v13187_v51  ;;  %3702 = vmatmul.mubr.f32.gmra.mrb[44].mxu0 %v11909_v58  ;;  %v7324_v51 = vld [vmem:[%s13200_s1] ss:$0 sm:$0xff] }
 0x621   :  { %9335 = vmatpush1.bf16.msra.mxu0 %v12047_v46  ;;  %7413 = vmatprep.mubr.msk.f32.mxu0 %vm2219_vm9, %v13188_v28  ;;  %v3965_v46 = vld [vmem:[%s13110_s13 + $0x30] sm:$0xff] }
 0x622   :  { %9300 = vmatprep.subr.bf16.mxu1 %v13182_v8  ;;  %9336 = vmatprep.subr.bf16.mxu0 %v13182_v8 }
 0x623   :  { %3586 = vmatmul.mubr.f32.vlgmr.msra.gmra.mrb[30].mxu1 %v13189_v43 }
 0x624   :  { %7348 = vmatprep.mubr.msk.f32.mxu1 %vm2219_vm9, %v13190_v21  ;;  %9302 = vmatpush1.bf16.msra.mxu1 %v13191_v38 }
 0x625   :  { %9338 = vmatpush1.bf16.msra.mxu0 %v12062_v54  ;;  %9303 = vmatprep.subr.bf16.mxu1 %v13182_v8  ;;  %v9367_v54 = vpack.c.bf16 %v3964_v39, %v3963_v14 }
 0x626   :  { %9339 = vmatprep.subr.bf16.mxu0 %v13182_v8 }
 0x627   :  { %3591 = vmatmul.mubr.f32.gmra.mrb[32].mxu1 %v13192_v56 }
 0x628   :  { %9305 = vmatpush1.bf16.msra.mxu1 %v13193_v47  ;;  %7391 = vmatprep.mubr.msk.f32.mxu1 %vm2219_vm9, %v11912_v53  ;;  %v9361_v53 = vpack.c.bf16 %v3960_v50, %v3959_v61 }
 0x629   :  { %9341 = vmatpush1.bf16.msra.mxu0 %v12074_v45  ;;  %9306 = vmatprep.subr.bf16.mxu1 %v13182_v8  ;;  %v3966_v45 = vld [vmem:[%s13110_s13 + $0x38] sm:$0xff] }
 0x62a   :  { %9342 = vmatprep.subr.bf16.mxu0 %v13182_v8  ;;  %v9370_v32 = vpack.c.bf16 %v3966_v45, %v3965_v46 }
 0x62c   :  { %9308 = vmatpush1.bf16.msra.mxu1 %v13194_v41 }
 0x62d   :  { %9344 = vmatpush1.bf16.msra.mxu0 %v12086_v0  ;;  %9309 = vmatprep.subr.bf16.mxu1 %v13182_v8  ;;  %v3967_v0 = vld [vmem:[%s13110_s13 + $0x40] sm:$0xff] }
 0x62e   :  { %9345 = vmatprep.subr.bf16.mxu0 %v13182_v8  ;;  %v9373_v11 = vpack.c.bf16 %v3968_v30, %v3967_v0 }
 0x630   :  { %9311 = vmatpush1.bf16.msra.mxu1 %v13195_v62 }
 0x631   :  { %9347 = vmatpush1.bf16.msra.mxu0 %v12098_v63  ;;  %9312 = vmatprep.subr.bf16.mxu1 %v13182_v8  ;;  %v3969_v63 = vld [vmem:[%s13110_s13 + $0x50] sm:$0xff] }
 0x632   :  { %9348 = vmatprep.subr.bf16.mxu0 %v13182_v8  ;;  %v9376_v36 = vpack.c.bf16 %v3970_v52, %v3969_v63 }
 0x634   :  { %9314 = vmatpush1.bf16.msra.mxu1 %v13196_v22 }
 0x635   :  { %9350 = vmatpush1.bf16.msra.mxu0 %v12110_v6  ;;  %9315 = vmatprep.subr.bf16.mxu1 %v13182_v8  ;;  %v3971_v6 = vld [vmem:[%s13110_s13 + $0x60] sm:$0xff] }
 0x636   :  { %9351 = vmatprep.subr.bf16.mxu0 %v13182_v8  ;;  %v9379_v2 = vpack.c.bf16 %v3972_v17, %v3971_v6 }
 0x638   :  { %9317 = vmatpush1.bf16.msra.mxu1 %v11843_v9  ;;  %v13197_v9 = vld [vmem:[#allocation16_spill] sm:$0xff] }
 0x639   :  { %9353 = vmatpush1.bf16.msra.mxu0 %v12122_v23  ;;  %9318 = vmatprep.subr.bf16.mxu1 %v13182_v8  ;;  %v3973_v23 = vld [vmem:[%s13110_s13 + $0x70] sm:$0xff] }
 0x63a   :  { %9354 = vmatprep.subr.bf16.mxu0 %v13182_v8  ;;  %v9382_v1 = vpack.c.bf16 %v3974_v57, %v3973_v23 }
 0x63c   :  { %9320 = vmatpush1.bf16.msra.mxu1 %v11857_v35 }
 0x63d   :  { %9356 = vmatpush1.bf16.msra.mxu0 %v12134_v44  ;;  %9321 = vmatprep.subr.bf16.mxu1 %v13182_v8 }
 0x63e   :  { %9357 = vmatprep.subr.bf16.mxu0 %v13182_v8 }
 0x640   :  { %9323 = vmatpush1.bf16.msra.mxu1 %v11952_v29 }
 0x641   :  { %9359 = vmatpush1.bf16.msra.mxu0 %v12147_v25  ;;  %9324 = vmatprep.subr.bf16.mxu1 %v13182_v8 }
 0x642   :  { %9384 = vmatprep.subr.bf16.mxu0 %v13182_v8 }
 0x644   :  { %9326 = vmatpush1.bf16.msra.mxu1 %v11972_v33  ;;  %3923 = vmatmul.mubr.f32.vlgmr.msra.gmra.mrb[46].mxu0 %v13197_v9 }
 0x645   :  { %7414 = vmatprep.mubr.msk.f32.mxu0 %vm2219_vm9, %v11932_v59  ;;  %9327 = vmatprep.subr.bf16.mxu1 %v13182_v8 }
 0x646   :  { %9386 = vmatpush3.bf16.msra.mxu0 %v9361_v53 }
 0x647   :  { %9387 = vmatprep.subr.bf16.mxu0 %v13182_v8 }
 0x648   :  { %9329 = vmatpush1.bf16.msra.mxu1 %v11992_v15  ;;  %3928 = vmatmul.mubr.f32.gmra.mrb[48].mxu0 %v11915_v37 }
 0x649   :  { %9360 = vmatprep.subr.bf16.mxu1 %v13182_v8  ;;  %8001 = vmatprep.mubr.msk.f32.mxu0 %vm9956_vm11, %v13199_v27 }
 0x64b   :  { %3810 = vmatmul.mubr.f32.vlgmr.msra.gmra.mrb[34].mxu1 %v13198_v18 }
 0x64c   :  { %7392 = vmatprep.mubr.msk.f32.mxu1 %vm2219_vm9, %v11942_v16  ;;  %9362 = vmatpush3.bf16.msra.mxu1 %v9361_v53 }
 0x64d   :  { %9363 = vmatprep.subr.bf16.mxu1 %v13182_v8 }
 0x64f   :  { %3815 = vmatmul.mubr.f32.gmra.mrb[36].mxu1 %v11945_v49  ;;  %v3961_v49 = vld [vmem:[%s13110_s13 + $0x10] sm:$0xff] }
 0x650   :  { %v9364_v29 = vpack.c.bf16 %v3962_v7, %v3961_v49  ;;  %7966 = vmatprep.mubr.msk.f32.mxu1 %vm9956_vm11, %v13199_v27 }
 0x652   :  { %9365 = vmatpush3.bf16.msra.mxu1 %v9364_v29  ;;  %9389 = vmatpush3.bf16.msra.mxu0 %v9364_v29 }
 0x653   :  { %9366 = vmatprep.subr.bf16.mxu1 %v13182_v8  ;;  %9390 = vmatprep.subr.bf16.mxu0 %v13182_v8 }
 0x656   :  { %9368 = vmatpush3.bf16.msra.mxu1 %v9367_v54  ;;  %9392 = vmatpush3.bf16.msra.mxu0 %v9367_v54 }
 0x657   :  { %9369 = vmatprep.subr.bf16.mxu1 %v13182_v8  ;;  %9393 = vmatprep.subr.bf16.mxu0 %v13182_v8 }
 0x65a   :  { %9371 = vmatpush3.bf16.msra.mxu1 %v9370_v32  ;;  %9395 = vmatpush3.bf16.msra.mxu0 %v9370_v32 }
 0x65b   :  { %9372 = vmatprep.subr.bf16.mxu1 %v13182_v8  ;;  %9396 = vmatprep.subr.bf16.mxu0 %v13182_v8 }
 0x65e   :  { %9374 = vmatpush3.bf16.msra.mxu1 %v9373_v11  ;;  %9398 = vmatpush3.bf16.msra.mxu0 %v9373_v11 }
 0x65f   :  { %9375 = vmatprep.subr.bf16.mxu1 %v13182_v8  ;;  %9399 = vmatprep.subr.bf16.mxu0 %v13182_v8 }
 0x662   :  { %9377 = vmatpush3.bf16.msra.mxu1 %v9376_v36  ;;  %9401 = vmatpush3.bf16.msra.mxu0 %v9376_v36 }
 0x663   :  { %9378 = vmatprep.subr.bf16.mxu1 %v13182_v8  ;;  %9402 = vmatprep.subr.bf16.mxu0 %v13182_v8 }
 0x666   :  { %9380 = vmatpush3.bf16.msra.mxu1 %v9379_v2  ;;  %9404 = vmatpush3.bf16.msra.mxu0 %v9379_v2 }
 0x667   :  { %9381 = vmatprep.subr.bf16.mxu1 %v13182_v8  ;;  %9405 = vmatprep.subr.bf16.mxu0 %v13182_v8 }
 0x66a   :  { %9383 = vmatpush3.bf16.msra.mxu1 %v9382_v1  ;;  %9407 = vmatpush3.bf16.msra.mxu0 %v9382_v1 }
 0x66b   :  { %8004 = vmatprep.subr.mxu1 %v13199_v27 }
 0x676   :  { %v2999_v3 = vpop.f32.mrb[30].mxu0 }
 0x677   :  { %v3001_v10 = vpop.f32.mrb[31].mxu0 }
 0x67a   :  { %v3004_v24 = vpop.f32.mrb[32].mxu0 }
 0x67b   :  { %v3006_v13 = vpop.f32.mrb[33].mxu0 }
 0x67d   :  { %v2920_v40 = vpop.f32.mrb[18].mxu1 }
 0x67e   :  { %v3000_v4 = vadd.f32 %v2999_v3, %v2920_v40  ;;  %v2922_v60 = vpop.f32.mrb[19].mxu1 }
 0x682   :  { %v2925_v31 = vpop.f32.mrb[20].mxu1 }
 0x683   :  { %v3005_v35 = vadd.f32 %v3004_v24, %v2925_v31  ;;  %v2927_v42 = vpop.f32.mrb[21].mxu1 }
 0x69f   :  { %v3225_v12 = vpop.f32.mrb[34].mxu0 }
 0x6a0   :  { %v3227_v58 = vpop.f32.mrb[35].mxu0 }
 0x6a3   :  { %v3230_v37 = vpop.f32.mrb[36].mxu0 }
 0x6a4   :  { %v3232_v26 = vpop.f32.mrb[37].mxu0 }
 0x6a6   :  { %v3111_v48 = vpop.f32.mrb[22].mxu1 }
 0x6a7   :  { %v3120_v59 = vadd.f32 %v3111_v48, %v3000_v4  ;;  %v3113_v16 = vpop.f32.mrb[23].mxu1 }
 0x6a9   :  { %v3234_v34 = vadd.f32 %v3225_v12, %v3120_v59 }
 0x6aa   :  { %v3116_v33 = vpop.f32.mrb[24].mxu1 }
 0x6ab   :  { %v3121_v5 = vadd.f32 %v3116_v33, %v3005_v35  ;;  %v3118_v15 = vpop.f32.mrb[25].mxu1 }
 0x6ad   :  { %v3235_v19 = vadd.f32 %v3230_v37, %v3121_v5 }
 0x6c7   :  { %v3508_v20 = vpop.f32.mrb[38].mxu0 }
 0x6c8   :  { %v3510_v44 = vpop.f32.mrb[39].mxu0 }
 0x6cb   :  { %v3513_v55 = vpop.f32.mrb[40].mxu0 }
 0x6cc   :  { %v3515_v25 = vpop.f32.mrb[41].mxu0 }
 0x6ce   :  { %v3339_v28 = vpop.f32.mrb[26].mxu1 }
 0x6cf   :  { %v3348_v43 = vadd.f32 %v3339_v28, %v3234_v34  ;;  %v3341_v21 = vpop.f32.mrb[27].mxu1 }
 0x6d1   :  { %v3356_v38 = vadd.f32 %v7324_v51, %v3348_v43 }
 0x6d2   :  { %v3344_v56 = vpop.f32.mrb[28].mxu1 }
 0x6d3   :  { %v12333_v47 = vmax.f32 %v3356_v38, 0.0  ;;  %v3349_v41 = vadd.f32 %v3344_v56, %v3235_v19  ;;  %v3346_v62 = vpop.f32.mrb[29].mxu1 }
 0x6d5   :  { %3360 = vst [vmem:[#allocation2] sm:$0xff] %v12333_v47  ;;  %v3357_v22 = vadd.f32 %v7324_v51, %v3349_v41  ;;  %v3370_v48 = vmul.f32 %v12333_v47, %v12333_v47 }
 0x6d7   :  { %v12336_v9 = vmax.f32 %v3357_v22, 0.0 }
 0x6d9   :  { %v3371_v37 = vmul.f32 %v12336_v9, %v12336_v9  ;;  %v3362_v59 = vadd.f32 %v12336_v9, %v12333_v47 }
 0x6db   :  { %v3372_v7 = vadd.f32 %v3371_v37, %v3370_v48  ;;  %v3363_v33 = vrot.slane %v3362_v59, 4  ;;  %v4274_v48 = vld [vmem:[%s13112_s15] sm:$0xff] }
 0x6dd   :  { %v3373_v14 = vrot.slane %v3372_v7, 4  ;;  %v3364_v54 = vadd.f32 %v3363_v33, %v3362_v59 }
 0x6df   :  { %v3374_v32 = vadd.f32 %v3373_v14, %v3372_v7  ;;  %v3365_v30 = vrot.slane %v3364_v54, 2 }
 0x6e1   :  { %v3375_v36 = vrot.slane %v3374_v32, 2  ;;  %v3366_v2 = vadd.f32 %v3365_v30, %v3364_v54 }
 0x6ef   :  { %v3698_v18 = vpop.f32.mrb[42].mxu0 }
 0x6f0   :  { %v3700_v3 = vpop.f32.mrb[43].mxu0 }
 0x6f3   :  { %v3703_v10 = vpop.f32.mrb[44].mxu0 }
 0x6f4   :  { %v3705_v24 = vpop.f32.mrb[45].mxu0 }
 0x6f6   :  { %v3587_v13 = vpop.f32.mrb[30].mxu1 }
 0x6f7   :  { %v3588_v40 = vadd.f32 %v3587_v13, %v3508_v20  ;;  %v3589_v4 = vpop.f32.mrb[31].mxu1  ;;  %v3376_v20 = vadd.f32 %v3375_v36, %v3374_v32 }
 0x6f9   :  { %v3707_v60 = vadd.f32 %v3698_v18, %v3588_v40  ;;  %v3377_v28 = vrot.slane %v3376_v20, 1 }
 0x6fa   :  { %v3592_v31 = vpop.f32.mrb[32].mxu1 }
 0x6fb   :  { %v3593_v35 = vadd.f32 %v3592_v31, %v3513_v55  ;;  %v3594_v42 = vpop.f32.mrb[33].mxu1  ;;  %v3367_v55 = vrot.slane %v3366_v2, 1  ;;  %v3378_v22 = vadd.f32 %v3377_v28, %v3376_v20 }
 0x6fd   :  { %v3708_v61 = vadd.f32 %v3703_v10, %v3593_v35  ;;  %v3368_v38 = vadd.f32 %v3367_v55, %v3366_v2  ;;  %v4127_v10 = vld [vmem:[%s13111_s14] sm:$0xff] }
 0x717   :  { %v3924_v50 = vpop.f32.mrb[46].mxu0 }
 0x718   :  { %v3926_v53 = vpop.f32.mrb[47].mxu0 }
 0x71b   :  { %v3929_v12 = vpop.f32.mrb[48].mxu0 }
 0x71c   :  { %v3931_v58 = vpop.f32.mrb[49].mxu0 }
 0x71d   :  { %v4124_v58 = vld [vmem:[%s13109_s12] sm:$0x1] }
 0x71e   :  { %v3811_v26 = vpop.f32.mrb[34].mxu1 }
 0x71f   :  { %v3820_v16 = vadd.f32 %v3811_v26, %v3707_v60  ;;  %v3813_v49 = vpop.f32.mrb[35].mxu1 }
 0x721   :  { %v3933_v29 = vadd.f32 %v3924_v50, %v3820_v16  ;;  %v4122_v50 = vld [vmem:[%s13201_s9] sm:$0x1]  ;;  %v13202_v16 = vld [vmem:[#allocation6_spill] sm:$0xff] }
 0x722   :  { %v3816_v34 = vpop.f32.mrb[36].mxu1 }
 0x723   :  { %v3935_v5 = vadd.f32 %v7324_v51, %v3933_v29  ;;  %v3821_v15 = vadd.f32 %v3816_v34, %v3708_v61  ;;  %v3818_v19 = vpop.f32.mrb[37].mxu1 }
 0x725   :  { %v12344_v39 = vmax.f32 %v3935_v5, 0.0  ;;  %v3934_v46 = vadd.f32 %v3929_v12, %v3821_v15 }
 0x727   :  { %3939 = vst [vmem:[#allocation2 + $0x40] sm:$0xff] %v12344_v39  ;;  %v3936_v45 = vadd.f32 %v7324_v51, %v3934_v46  ;;  %v3949_v11 = vmul.f32 %v12344_v39, %v12344_v39 }
 0x729   :  { %v12347_v0 = vmax.f32 %v3936_v45, 0.0 }
 0x72b   :  { %v3941_v63 = vadd.f32 %v12347_v0, %v12344_v39  ;;  %v3950_v52 = vmul.f32 %v12347_v0, %v12347_v0 }
 0x72d   :  { %v3942_v6 = vrot.slane %v3941_v63, 4  ;;  %v3951_v17 = vadd.f32 %v3950_v52, %v3949_v11 }
 0x72f   :  { %v3943_v23 = vadd.f32 %v3942_v6, %v3941_v63  ;;  %v3952_v57 = vrot.slane %v3951_v17, 4 }
 0x731   :  { %v3944_v44 = vrot.slane %v3943_v23, 2  ;;  %v3953_v1 = vadd.f32 %v3952_v57, %v3951_v17 }
 0x733   :  { %v3945_v25 = vadd.f32 %v3944_v44, %v3943_v23  ;;  %v3954_v51 = vrot.slane %v3953_v1, 2 }
 0x735   :  { %v3946_v43 = vrot.slane %v3945_v25, 1  ;;  %v3955_v21 = vadd.f32 %v3954_v51, %v3953_v1 }
 0x737   :  { %v3947_v56 = vadd.f32 %v3946_v43, %v3945_v25  ;;  %v3956_v41 = vrot.slane %v3955_v21, 1 }
 0x739   :  { %v3948_v62 = vadd.f32 %v3947_v56, %v3368_v38  ;;  %v3957_v18 = vadd.f32 %v3956_v41, %v3955_v21 }
 0x73b   :  { %7967 = vmatmul.mubr.f32.vlgmr.msra.gmra.mrb[38].mxu1 %v3948_v62  ;;  %v3958_v3 = vadd.f32 %v3957_v18, %v3378_v22  ;;  %v4275_v62 = vld [vmem:[%s13112_s15 + $0x8] sm:$0xf]  ;;  %v4276_v22 = vld [vmem:[%s13113_s16] sm:$0xff] }
 0x73c   :  { %8006 = vmatprep.mubr.msk.f32.mxu1 %vm9956_vm11, %v13199_v27  ;;  %8005 = vmatpush3.msra.mxu1 %v4127_v10  ;;  %v4277_v18 = vld [vmem:[%s13113_s16 + $0x8] sm:$0xff] }
 0x73d   :  { %8002 = vmatmul.mubr.f32.vlgmr.msra.gmra.mrb[50].mxu0 %v3958_v3  ;;  %8009 = vmatprep.subr.mxu1 %v13199_v27  ;;  %v4278_v3 = vld [vmem:[%s13113_s16 + $0x10] sm:$0xff] }
 0x73e   :  { %8060 = vmatprep.mubr.msk.f32.mxu0 %vm4324_vm12, %v4274_v48 }
 0x80e   :  { %v4041_v24 = vpop.f32.mrb[38].mxu1 }
 0x80f   :  { %v4046_v13 = vmul.f32 0.001953125, %v4041_v24  ;;  %v7968_v40 = vpop.f32.mrb[39].mxu1  ;;  %v4279_v24 = vld [vmem:[%s13113_s16 + $0x18] sm:$0xff] }
 0x810   :  { %v4113_v4 = vpop.f32.mrb[50].mxu0  ;;  %v4280_v40 = vld [vmem:[%s13113_s16 + $0x20] sm:$0xff] }
 0x811   :  { %v4118_v60 = vmul.f32 %v4046_v13, %v4046_v13  ;;  %v4117_v31 = vmul.f32 0.001953125, %v4113_v4  ;;  %v8003_v35 = vpop.f32.mrb[51].mxu0  ;;  %v4281_v4 = vld [vmem:[%s13113_s16 + $0x28] sm:$0xff] }
 0x812   :  { %v4283_v35 = vld [vmem:[%s13113_s16 + $0x38] sm:$0xff] }
 0x813   :  { %v4119_v42 = vsub.f32 %v4117_v31, %v4118_v60  ;;  %v9420_v60 = vpack.c.bf16 %v4281_v4, %v4280_v40  ;;  %v4282_v31 = vld [vmem:[%s13113_s16 + $0x30] sm:$0xff]  ;;  %v4703_v4 = vld [vmem:[%s13114_s17 + $0x18] sm:$0xff] }
 0x815   :  { %v4120_v61 = vadd.f32 1e-05, %v4119_v42  ;;  %v9424_v42 = vpack.c.bf16 %v4283_v35, %v4282_v31  ;;  %v7426_v31 = vld [vmem:[%s13114_s17 + $0x88] sm:$0xff] }
 0x817   :  { %9923 = vrsqrt.f32 %v4120_v61  ;;  %v4284_v61 = vld [vmem:[%s13113_s16 + $0x40] sm:$0xff] }
 0x821   :  { %v9924_v53 = vpop.eup %9923 }
 0x822   :  { %v4123_v12 = vmul.f32 %v9924_v53, %v4122_v50  ;;  %v4285_v50 = vld [vmem:[%s13113_s16 + $0x48] sm:$0xff] }
 0x823   :  { %v9428_v53 = vpack.c.bf16 %v4285_v50, %v4284_v61  ;;  %v4705_v50 = vld [vmem:[%s13114_s17 + $0x28] sm:$0xff] }
 0x824   :  { %8007 = vmatmul.mubr.msk.f32.vlgmr.msra.gmra.mrb[40].mxu1 %vm1890_vm7, %v4123_v12  ;;  %v4125_v37 = vmul.f32 %v4123_v12, %v4046_v13  ;;  %v9416_v13 = vpack.c.bf16 %v4279_v24, %v4278_v3  ;;  %v4286_v12 = vld [vmem:[%s13113_s16 + $0x50] sm:$0xff] }
 0x825   :  { %8010 = vmatpush3.msra.mxu1 %v4127_v10  ;;  %8011 = vmatprep.mubr.msk.f32.mxu1 %vm9956_vm11, %v13199_v27  ;;  %v9412_v10 = vpack.c.bf16 %v4277_v18, %v4276_v22  ;;  %v7424_v22 = vld [vmem:[%s13114_s17 + $0x78] sm:$0xff] }
 0x826   :  { %v4126_v26 = vsub.f32 %v4124_v58, %v4125_v37  ;;  %v4287_v58 = vld [vmem:[%s13113_s16 + $0x58] sm:$0xff] }
 0x827   :  { %v9432_v37 = vpack.c.bf16 %v4287_v58, %v4286_v12  ;;  %v7428_v12 = vld [vmem:[%s13114_s17 + $0x98] sm:$0xff] }
 0x828   :  { %8012 = vmatmul.mubr.msk.f32.vlgmr.msra.gmra.mrb[42].mxu1 %vm1890_vm7, %v4126_v26  ;;  %v4288_v26 = vld [vmem:[%s13113_s16 + $0x60] sm:$0xff] }
 0x829   :  { %8018 = vmatprep.mubr.msk.f32.mxu1 %vm4324_vm12, %v4274_v48  ;;  %v4289_v48 = vld [vmem:[%s13113_s16 + $0x68] sm:$0xff] }
 0x8f7   :  { %v4197_v59 = vpop.f32.mrb[40].mxu1 }
 0x8f8   :  { %v4297_v49 = vrot.slane %v4197_v59, %v13202_v16  ;;  %v8008_v7 = vpop.f32.mrb[41].mxu1  ;;  %v9436_v59 = vpack.c.bf16 %v4289_v48, %v4288_v26  ;;  %v4707_v48 = vld [vmem:[%s13114_s17 + $0x38] sm:$0xff] }
 0x8f9   :  { %v4290_v7 = vld [vmem:[%s13113_s16 + $0x70] sm:$0xff] }
 0x8fa   :  { %v4298_v29 = vmul.f32 %v4297_v49, %v12333_v47  ;;  %v4299_v33 = vmul.f32 %v4297_v49, %v12336_v9  ;;  %v4505_v5 = vmul.f32 %v4297_v49, %v12344_v39  ;;  %v4506_v15 = vmul.f32 %v4297_v49, %v12347_v0 }
 0x8fb   :  { %v4270_v34 = vpop.f32.mrb[42].mxu1 }
 0x8fc   :  { %v4303_v19 = vrot.slane %v4270_v34, %v13202_v16  ;;  %v8013_v14 = vpop.f32.mrb[43].mxu1 }
 0x8fe   :  { %v4304_v46 = vadd.f32 %v4303_v19, %v4298_v29  ;;  %v4305_v54 = vadd.f32 %v4303_v19, %v4299_v33  ;;  %v4507_v45 = vadd.f32 %v4505_v5, %v4303_v19  ;;  %v4508_v32 = vadd.f32 %v4506_v15, %v4303_v19  ;;  %v4291_v29 = vld [vmem:[%s13113_s16 + $0x78] sm:$0xff] }
 0x8ff   :  { %v9440_v33 = vpack.c.bf16 %v4291_v29, %v4290_v7 }
 0x900   :  { %v4309_v30 = vrot.slane %v4305_v54, 7  ;;  %v4314_v11 = vrot.slane %v4304_v46, 1  ;;  %v4512_v63 = vrot.slane %v4508_v32, 7  ;;  %v4517_v52 = vrot.slane %v4507_v45, 1 }
 0x901   :  { %v4308_v36 = vrot.slane %v4304_v46, 7  ;;  %v4315_v47 = vrot.slane %v4305_v54, 1  ;;  %v4511_v6 = vrot.slane %v4507_v45, 7  ;;  %v4518_v17 = vrot.slane %v4508_v32, 1 }
 0x903   :  { %v4310_v9 = vsel %vm2154_vm8, %v4308_v36, %v4309_v30  ;;  %v4313_v39 = vsel %vm2154_vm8, -1e+30, %v4308_v36  ;;  %v4316_v0 = vsel %vm161_vm4, %v4314_v11, %v4315_v47  ;;  %v4319_v2 = vsel %vm161_vm4, %v4315_v47, -1e+30 }
 0x904   :  { %v4320_v23 = vmax.f32 %v4313_v39, %v4316_v0  ;;  %v4321_v57 = vmax.f32 %v4310_v9, %v4319_v2  ;;  %v4513_v20 = vsel %vm2154_vm8, %v4511_v6, %v4512_v63  ;;  %v4516_v44 = vsel %vm2154_vm8, -1e+30, %v4511_v6  ;;  %v7421_v63 = vld [vmem:[%s13114_s17 + $0x60] sm:$0xff] }
 0x905   :  { %v4519_v1 = vsel %vm161_vm4, %v4517_v52, %v4518_v17  ;;  %v4522_v55 = vsel %vm161_vm4, %v4518_v17, -1e+30  ;;  %v7422_v52 = vld [vmem:[%s13114_s17 + $0x68] sm:$0xff] }
 0x906   :  { %v4322_v25 = vmax.f32 %v4304_v46, %v4320_v23  ;;  %v4323_v51 = vmax.f32 %v4305_v54, %v4321_v57  ;;  %v4523_v28 = vmax.f32 %v4516_v44, %v4519_v1  ;;  %v4524_v43 = vmax.f32 %v4513_v20, %v4522_v55  ;;  %v4700_v55 = vld [vmem:[%s13114_s17] sm:$0xff] }
 0x908   :  { %v9408_v21 = vpack.c.bf16 %v4323_v51, %v4322_v25  ;;  %v4525_v38 = vmax.f32 %v4507_v45, %v4523_v28  ;;  %v4526_v56 = vmax.f32 %v4508_v32, %v4524_v43  ;;  %v12462_v25 = vpack.c.bf16 %v7422_v52, %v7421_v63  ;;  %v7436_v63 = vld [vmem:[%s13114_s17 + $0xc8] sm:$0xff] }
 0x90a   :  { %9409 = vmatprep.subr.bf16.mxu1 %v9408_v21  ;;  %v9444_v41 = vpack.c.bf16 %v4526_v56, %v4525_v38 }
 0x90b   :  { %9411 = vmatpush3.bf16.msra.mxu1 %v9408_v21 }
 0x90c   :  { %9445 = vmatprep.subr.bf16.mxu0 %v9444_v41  ;;  %9413 = vmatprep.subr.bf16.mxu1 %v9412_v10 }
 0x90d   :  { %9447 = vmatpush3.bf16.msra.mxu0 %v9444_v41  ;;  %v4701_v41 = vld [vmem:[%s13114_s17 + $0x8] sm:$0xff] }
 0x90e   :  { %8019 = vmatmul.mubr.msk.f32.vlgmr.msra.gmra.mrb[44].mxu1 %vm4324_vm12, %v4275_v62  ;;  %9449 = vmatprep.subr.bf16.mxu0 %v9412_v10  ;;  %v12477_v24 = vpack.c.bf16 %v4701_v41, %v4700_v55  ;;  %v7453_v41 = vld [vmem:[%s13114_s17 + $0x148] sm:$0xff] }
 0x90f   :  { %9415 = vmatpush3.bf16.msra.mxu1 %v9412_v10 }
 0x910   :  { %8061 = vmatmul.mubr.msk.f32.vlgmr.msra.gmra.mrb[52].mxu0 %vm4324_vm12, %v4275_v62  ;;  %9417 = vmatprep.subr.bf16.mxu1 %v9416_v13  ;;  %v7423_v62 = vld [vmem:[%s13114_s17 + $0x70] sm:$0xff] }
 0x911   :  { %9451 = vmatpush3.bf16.msra.mxu0 %v9412_v10  ;;  %v12483_v40 = vpack.c.bf16 %v7424_v22, %v7423_v62 }
 0x912   :  { %9453 = vmatprep.subr.bf16.mxu0 %v9416_v13 }
 0x913   :  { %9419 = vmatpush3.bf16.msra.mxu1 %v9416_v13 }
 0x914   :  { %9421 = vmatprep.subr.bf16.mxu1 %v9420_v60 }
 0x915   :  { %9455 = vmatpush3.bf16.msra.mxu0 %v9416_v13  ;;  %v4702_v13 = vld [vmem:[%s13114_s17 + $0x10] sm:$0xff] }
 0x916   :  { %9457 = vmatprep.subr.bf16.mxu0 %v9420_v60  ;;  %v12498_v35 = vpack.c.bf16 %v4703_v4, %v4702_v13 }
 0x917   :  { %9423 = vmatpush3.bf16.msra.mxu1 %v9420_v60 }
 0x918   :  { %9425 = vmatprep.subr.bf16.mxu1 %v9424_v42 }
 0x919   :  { %9459 = vmatpush3.bf16.msra.mxu0 %v9420_v60  ;;  %v7425_v60 = vld [vmem:[%s13114_s17 + $0x80] sm:$0xff] }
 0x91a   :  { %9461 = vmatprep.subr.bf16.mxu0 %v9424_v42  ;;  %v12504_v61 = vpack.c.bf16 %v7426_v31, %v7425_v60 }
 0x91b   :  { %9427 = vmatpush3.bf16.msra.mxu1 %v9424_v42 }
 0x91c   :  { %9429 = vmatprep.subr.bf16.mxu1 %v9428_v53 }
 0x91d   :  { %9463 = vmatpush3.bf16.msra.mxu0 %v9424_v42  ;;  %v4704_v42 = vld [vmem:[%s13114_s17 + $0x20] sm:$0xff] }
 0x91e   :  { %9465 = vmatprep.subr.bf16.mxu0 %v9428_v53  ;;  %v12520_v58 = vpack.c.bf16 %v4705_v50, %v4704_v42 }
 0x91f   :  { %9431 = vmatpush3.bf16.msra.mxu1 %v9428_v53 }
 0x920   :  { %9433 = vmatprep.subr.bf16.mxu1 %v9432_v37 }
 0x921   :  { %9467 = vmatpush3.bf16.msra.mxu0 %v9428_v53  ;;  %v7427_v53 = vld [vmem:[%s13114_s17 + $0x90] sm:$0xff] }
 0x922   :  { %9469 = vmatprep.subr.bf16.mxu0 %v9432_v37  ;;  %v12526_v26 = vpack.c.bf16 %v7428_v12, %v7427_v53 }
 0x923   :  { %9435 = vmatpush3.bf16.msra.mxu1 %v9432_v37 }
 0x924   :  { %9437 = vmatprep.subr.bf16.mxu1 %v9436_v59 }
 0x925   :  { %9471 = vmatpush3.bf16.msra.mxu0 %v9432_v37  ;;  %v4706_v37 = vld [vmem:[%s13114_s17 + $0x30] sm:$0xff] }
 0x926   :  { %9473 = vmatprep.subr.bf16.mxu0 %v9436_v59  ;;  %v12540_v7 = vpack.c.bf16 %v4707_v48, %v4706_v37  ;;  %v7439_v37 = vld [vmem:[%s13114_s17 + $0xe0] sm:$0xff]  ;;  %v7440_v48 = vld [vmem:[%s13114_s17 + $0xe8] sm:$0xff] }
 0x927   :  { %9439 = vmatpush3.bf16.msra.mxu1 %v9436_v59 }
 0x928   :  { %9441 = vmatprep.subr.bf16.mxu1 %v9440_v33 }
 0x929   :  { %9475 = vmatpush3.bf16.msra.mxu0 %v9436_v59  ;;  %v7429_v59 = vld [vmem:[%s13114_s17 + $0xa0] sm:$0xff] }
 0x92a   :  { %9477 = vmatprep.subr.bf16.mxu0 %v9440_v33 }
 0x92b   :  { %9443 = vmatpush3.bf16.msra.mxu1 %v9440_v33 }
 0x92c   :  { %9480 = vmatprep.subr.bf16.mxu1 %v13182_v8 }
 0x92d   :  { %9479 = vmatpush3.bf16.msra.mxu0 %v9440_v33  ;;  %v4709_v33 = vld [vmem:[%s13114_s17 + $0x48] sm:$0xff] }
 0x92e   :  { %9498 = vmatprep.subr.bf16.mxu0 %v13182_v8 }
 0x9e1   :  { %v8020_v49 = vpop.f32.mrb[44].mxu1 }
 0x9e2   :  { %v4397_v34 = vpop.f32.mrb[45].mxu1 }
 0x9e3   :  { %v9906_v5 = vpack.i.bf16 %v8020_v49, %v4397_v34  ;;  %v8062_v15 = vpop.f32.mrb[52].mxu0 }
 0x9e4   :  { %v4593_v19 = vpop.f32.mrb[53].mxu0 }
 0x9e5   :  { %9907 = vrot.lane.b32.xlu1 %v9906_v5, %s9954_s0  ;;  %9902 = vrot.lane.b32.xlu0 %v9906_v5, %s9953_s28  ;;  %v9916_v14 = vpack.i.bf16 %v8062_v15, %v4593_v19 }
 0x9e9   :  { %9917 = vrot.lane.b32.xlu1 %v9916_v14, %s9954_s0  ;;  %9912 = vrot.lane.b32.xlu0 %v9916_v14, %s9953_s28 }
 0xa57   :  { %v9908_v46 = vpop.permute.xlu1 %9907  ;;  %v9903_v54 = vpop.permute.xlu0 %9902 }
 0xa58   :  { %v9910_v45 = vunpack.i.h.bf16 %v9908_v46  ;;  %v9909_v32 = vunpack.i.l.bf16 %v9908_v46  ;;  %v9905_v30 = vunpack.i.h.bf16 %v9903_v54  ;;  %v9904_v11 = vunpack.i.l.bf16 %v9903_v54  ;;  %v7431_v46 = vld [vmem:[%s13114_s17 + $0xb0] sm:$0xff]  ;;  %v7432_v54 = vld [vmem:[%s13114_s17 + $0xb8] sm:$0xff] }
 0xa5a   :  { %v4423_v36 = vsel %vm2354_vm10, %v9910_v45, -1e+30  ;;  %v4422_v47 = vsel %vm2354_vm10, %v9909_v32, -1e+30  ;;  %v4415_v6 = vsel %vm1890_vm7, -1e+30, %v9905_v30  ;;  %v12577_v45 = vpack.c.bf16 %v7432_v54, %v7431_v46 }
 0xa5b   :  { %v4425_v17 = vmax.f32 %v4415_v6, %v4423_v36  ;;  %v4414_v9 = vsel %vm1890_vm7, -1e+30, %v9904_v11  ;;  %v9918_v39 = vpop.permute.xlu1 %9917  ;;  %v9913_v0 = vpop.permute.xlu0 %9912  ;;  %v7448_v32 = vld [vmem:[%s13114_s17 + $0x120] sm:$0xff]  ;;  %v7449_v30 = vld [vmem:[%s13114_s17 + $0x128] sm:$0xff]  ;;  %v7450_v36 = vld [vmem:[%s13114_s17 + $0x130] sm:$0xff]  ;;  %v12674_v46 = vpack.c.bf16 %v7440_v48, %v7439_v37 }
 0xa5c   :  { %v4424_v2 = vmax.f32 %v4414_v9, %v4422_v47  ;;  %v9920_v23 = vunpack.i.h.bf16 %v9918_v39  ;;  %v9919_v57 = vunpack.i.l.bf16 %v9918_v39  ;;  %v9915_v20 = vunpack.i.h.bf16 %v9913_v0  ;;  %v7435_v11 = vld [vmem:[%s13114_s17 + $0xc0] sm:$0xff]  ;;  %v7437_v9 = vld [vmem:[%s13114_s17 + $0xd0] sm:$0xff]  ;;  %v7438_v39 = vld [vmem:[%s13114_s17 + $0xd8] sm:$0xff] }
 0xa5d   :  { %v4427_v44 = vmax.f32 %v8020_v49, %v4425_v17  ;;  %v9914_v1 = vunpack.i.l.bf16 %v9913_v0  ;;  %v7430_v49 = vld [vmem:[%s13114_s17 + $0xa8] sm:$0xff]  ;;  %v12593_v52 = vpack.c.bf16 %v7449_v30, %v7448_v32  ;;  %v12598_v6 = vpack.c.bf16 %v7436_v63, %v7435_v11  ;;  %v7451_v17 = vld [vmem:[%s13114_s17 + $0x138] sm:$0xff]  ;;  %v7441_v32 = vld [vmem:[%s13114_s17 + $0xf0] sm:$0xff] }
 0xa5e   :  { %v4619_v51 = vsel %vm2354_vm10, %v9920_v23, -1e+30  ;;  %v4618_v28 = vsel %vm2354_vm10, %v9919_v57, -1e+30  ;;  %v4611_v43 = vsel %vm1890_vm7, -1e+30, %v9915_v20  ;;  %v4426_v21 = vmax.f32 %v4397_v34, %v4424_v2 }
 0xa5f   :  { %v4621_v38 = vmax.f32 %v4611_v43, %v4619_v51  ;;  %v4610_v56 = vsel %vm1890_vm7, -1e+30, %v9914_v1  ;;  %v12543_v29 = vpack.c.bf16 %v7430_v49, %v7429_v59  ;;  %v4708_v34 = vld [vmem:[%s13114_s17 + $0x40] sm:$0xff]  ;;  %v12613_v43 = vpack.c.bf16 %v7438_v39, %v7437_v9  ;;  %v7454_v59 = vld [vmem:[%s13114_s17 + $0x150] sm:$0xff]  ;;  %v7455_v49 = vld [vmem:[%s13114_s17 + $0x158] sm:$0xff] }
 0xa60   :  { %v4620_v18 = vmax.f32 %v4610_v56, %v4618_v28  ;;  %8053 = vmatprep.mubr.f32.mxu1 %v4426_v21  ;;  %v12554_v5 = vpack.c.bf16 %v4709_v33, %v4708_v34  ;;  %v12611_v28 = vpack.c.bf16 %v7451_v17, %v7450_v36  ;;  %v7452_v56 = vld [vmem:[%s13114_s17 + $0x140] sm:$0xff]  ;;  %v12678_v54 = vpack.c.bf16 %v7455_v49, %v7454_v59  ;;  %v7442_v30 = vld [vmem:[%s13114_s17 + $0xf8] sm:$0xff]  ;;  %v7457_v63 = vld [vmem:[%s13114_s17 + $0x168] sm:$0xff] }
 0xa61   :  { %v4623_v3 = vmax.f32 %v8062_v15, %v4621_v38  ;;  %8054 = vmatmul.mubr.f32.vlgmr.msra.gmra.mrb[46].mxu1 %v4427_v44  ;;  %v4710_v15 = vld [vmem:[%s13114_s17 + $0x50] sm:$0xff]  ;;  %v12646_v12 = vpack.c.bf16 %v7453_v41, %v7452_v56  ;;  %v7456_v11 = vld [vmem:[%s13114_s17 + $0x160] sm:$0xff]  ;;  %v12694_v36 = vpack.c.bf16 %v7442_v30, %v7441_v32  ;;  %v7444_v9 = vld [vmem:[%s13114_s17 + $0x108] sm:$0xff] }
 0xa62   :  { %v4622_v10 = vmax.f32 %v4593_v19, %v4620_v18  ;;  %9482 = vmatpush3.bf16.msra.mxu1 %v12462_v25  ;;  %8122 = vmatprep.mubr.msk.f32.mxu1 %vm9956_vm11, %v13199_v27  ;;  %v4711_v19 = vld [vmem:[%s13114_s17 + $0x58] sm:$0xff]  ;;  %v7443_v17 = vld [vmem:[%s13114_s17 + $0x100] sm:$0xff]  ;;  %v7458_v39 = vld [vmem:[%s13114_s17 + $0x170] sm:$0xff] }
 0xa63   :  { %9483 = vmatprep.subr.bf16.mxu1 %v13182_v8  ;;  %v12566_v14 = vpack.c.bf16 %v4711_v19, %v4710_v15  ;;  %v7465_v56 = vld [vmem:[%s13114_s17 + $0x1a0] sm:$0xff]  ;;  %v7466_v41 = vld [vmem:[%s13114_s17 + $0x1a8] sm:$0xff] }
 0xa64   :  { %8095 = vmatprep.mubr.f32.mxu0 %v4622_v10 }
 0xa65   :  { %8096 = vmatmul.mubr.f32.vlgmr.msra.gmra.mrb[54].mxu0 %v4623_v3 }
 0xa66   :  { %9500 = vmatpush3.bf16.msra.mxu0 %v12477_v24  ;;  %9485 = vmatpush3.bf16.msra.mxu1 %v12483_v40 }
 0xa67   :  { %9501 = vmatprep.subr.bf16.mxu0 %v13182_v8  ;;  %9486 = vmatprep.subr.bf16.mxu1 %v13182_v8 }
 0xa68   :  { %8149 = vmatprep.mubr.msk.f32.mxu0 %vm9956_vm11, %v13199_v27 }
 0xa6a   :  { %9503 = vmatpush3.bf16.msra.mxu0 %v12498_v35  ;;  %9488 = vmatpush3.bf16.msra.mxu1 %v12504_v61 }
 0xa6b   :  { %9504 = vmatprep.subr.bf16.mxu0 %v13182_v8  ;;  %9489 = vmatprep.subr.bf16.mxu1 %v13182_v8 }
 0xa6e   :  { %9506 = vmatpush3.bf16.msra.mxu0 %v12520_v58  ;;  %9491 = vmatpush3.bf16.msra.mxu1 %v12526_v26 }
 0xa6f   :  { %9507 = vmatprep.subr.bf16.mxu0 %v13182_v8  ;;  %9492 = vmatprep.subr.bf16.mxu1 %v13182_v8 }
 0xa72   :  { %9509 = vmatpush3.bf16.msra.mxu0 %v12540_v7  ;;  %9494 = vmatpush3.bf16.msra.mxu1 %v12543_v29 }
 0xa73   :  { %9510 = vmatprep.subr.bf16.mxu0 %v13182_v8  ;;  %9495 = vmatprep.subr.bf16.mxu1 %v13182_v8 }
 0xa76   :  { %9512 = vmatpush3.bf16.msra.mxu0 %v12554_v5  ;;  %9497 = vmatpush3.bf16.msra.mxu1 %v12577_v45 }
 0xa77   :  { %9513 = vmatprep.subr.bf16.mxu0 %v13182_v8  ;;  %9516 = vmatprep.subr.bf16.mxu1 %v13182_v8 }
 0xa7a   :  { %9515 = vmatpush3.bf16.msra.mxu0 %v12566_v14 }
 0xa7b   :  { %9534 = vmatprep.subr.bf16.mxu0 %v13182_v8 }
 0xb34   :  { %v8055_v47 = vpop.f32.mrb[46].mxu1 }
 0xb35   :  { %v4728_v0 = vrot.slane %v8055_v47, 1  ;;  %v4889_v2 = vrot.slane %v8055_v47, 2  ;;  %v4978_v23 = vrot.slane %v8055_v47, 3  ;;  %v5067_v57 = vrot.slane %v8055_v47, 4  ;;  %v4494_v20 = vpop.f32.mrb[47].mxu1 }
 0xb36   :  { %v4727_v44 = vrot.slane %v4494_v20, 1  ;;  %v4888_v1 = vrot.slane %v4494_v20, 2  ;;  %v4977_v55 = vrot.slane %v4494_v20, 3  ;;  %v5066_v51 = vrot.slane %v4494_v20, 4  ;;  %8150 = vmatmul.mubr.msk.f32.vlgmr.msra.gmra.mrb[56].mxu0 %vm4730_vm13, %v4494_v20  ;;  %v7446_v20 = vld [vmem:[%s13114_s17 + $0x118] sm:$0xff] }
 0xb37   :  { %9536 = vmatpush3.bf16.msra.mxu0 %v12593_v52  ;;  %8203 = vmatprep.mubr.msk.f32.mxu0 %vm9956_vm11, %v13199_v27  ;;  %v12698_v47 = vpack.c.bf16 %v7457_v63, %v7456_v11 }
 0xb38   :  { %v8097_v21 = vpop.f32.mrb[54].mxu0  ;;  %v4729_v38 = vsel %vm161_vm4, %v4727_v44, %v4728_v0  ;;  %9537 = vmatprep.subr.bf16.mxu0 %v13182_v8  ;;  %v12626_v62 = vsel %vm558_vm0, %v4977_v55, %v4978_v23  ;;  %v12629_v22 = vsel %vm408_vm6, %v4888_v1, %v4889_v2  ;;  %v12632_v18 = vsel %vm180_vm1, %v5066_v51, %v5067_v57  ;;  %v7459_v0 = vld [vmem:[%s13114_s17 + $0x178] sm:$0xff]  ;;  %v7445_v57 = vld [vmem:[%s13114_s17 + $0x110] sm:$0xff]  ;;  %v7461_v1 = vld [vmem:[%s13114_s17 + $0x180] sm:$0xff] }
 0xb39   :  { %v5196_v3 = vrot.slane %v8097_v21, 1  ;;  %v5355_v10 = vrot.slane %v8097_v21, 2  ;;  %v5443_v13 = vrot.slane %v8097_v21, 3  ;;  %v5531_v4 = vrot.slane %v8097_v21, 4  ;;  %v12634_v60 = vpop.f32.mrb[55].mxu0  ;;  %8123 = vmatmul.mubr.msk.f32.vlgmr.msra.gmra.mrb[48].mxu1 %vm4730_vm13, %v4729_v38  ;;  %v7462_v55 = vld [vmem:[%s13114_s17 + $0x188] sm:$0xff] }
 0xb3a   :  { %v5195_v31 = vrot.slane %v12634_v60, 1  ;;  %v5354_v42 = vrot.slane %v12634_v60, 2  ;;  %v5442_v50 = vrot.slane %v12634_v60, 3  ;;  %v5530_v53 = vrot.slane %v12634_v60, 4  ;;  %9518 = vmatpush3.bf16.msra.mxu1 %v12598_v6  ;;  %8176 = vmatprep.mubr.msk.f32.mxu1 %vm9956_vm11, %v13199_v27  ;;  %v7463_v21 = vld [vmem:[%s13114_s17 + $0x190] sm:$0xff]  ;;  %v7464_v38 = vld [vmem:[%s13114_s17 + $0x198] sm:$0xff] }
 0xb3b   :  { %9539 = vmatpush3.bf16.msra.mxu0 %v12611_v28  ;;  %9519 = vmatprep.subr.bf16.mxu1 %v13182_v8  ;;  %v12714_v2 = vpack.c.bf16 %v7444_v9, %v7443_v17  ;;  %v12718_v23 = vpack.c.bf16 %v7459_v0, %v7458_v39  ;;  %v12728_v44 = vpack.c.bf16 %v7446_v20, %v7445_v57 }
 0xb3c   :  { %9540 = vmatprep.subr.bf16.mxu0 %v13182_v8  ;;  %v12662_v34 = vsel %vm161_vm4, %v5195_v31, %v5196_v3  ;;  %v12665_v33 = vsel %vm408_vm6, %v5354_v42, %v5355_v10  ;;  %v12668_v15 = vsel %vm180_vm1, %v5530_v53, %v5531_v4  ;;  %v12671_v19 = vsel %vm558_vm0, %v5442_v50, %v5443_v13  ;;  %v7470_v10 = vld [vmem:[%s13114_s17 + $0x1c8] sm:$0xff]  ;;  %v7472_v4 = vld [vmem:[%s13114_s17 + $0x1d8] sm:$0xff] }
 0xb3d   :  { %v12742_v51 = vpack.c.bf16 %v7462_v55, %v7461_v1  ;;  %vm6608_vm0 = vcmask 73728  }
 0xb3e   :  { %9521 = vmatpush3.bf16.msra.mxu1 %v12613_v43 }
 0xb3f   :  { %9542 = vmatpush3.bf16.msra.mxu0 %v12646_v12  ;;  %9522 = vmatprep.subr.bf16.mxu1 %v13182_v8 }
 0xb40   :  { %9543 = vmatprep.subr.bf16.mxu0 %v13182_v8 }
 0xb42   :  { %9524 = vmatpush3.bf16.msra.mxu1 %v12674_v46 }
 0xb43   :  { %9545 = vmatpush3.bf16.msra.mxu0 %v12678_v54  ;;  %9525 = vmatprep.subr.bf16.mxu1 %v13182_v8 }
 0xb44   :  { %9546 = vmatprep.subr.bf16.mxu0 %v13182_v8 }
 0xb46   :  { %9527 = vmatpush3.bf16.msra.mxu1 %v12694_v36 }
 0xb47   :  { %9548 = vmatpush3.bf16.msra.mxu0 %v12698_v47  ;;  %9528 = vmatprep.subr.bf16.mxu1 %v13182_v8 }
 0xb48   :  { %9549 = vmatprep.subr.bf16.mxu0 %v13182_v8 }
 0xb4a   :  { %9530 = vmatpush3.bf16.msra.mxu1 %v12714_v2 }
 0xb4b   :  { %9551 = vmatpush3.bf16.msra.mxu0 %v12718_v23  ;;  %9531 = vmatprep.subr.bf16.mxu1 %v13182_v8 }
 0xb4c   :  { %9570 = vmatprep.subr.bf16.mxu0 %v13182_v8 }
 0xb4e   :  { %9533 = vmatpush3.bf16.msra.mxu1 %v12728_v44  ;;  %8204 = vmatmul.mubr.msk.f32.vlgmr.msra.gmra.mrb[58].mxu0 %vm4730_vm13, %v12626_v62  ;;  %v12772_v62 = vpack.c.bf16 %v7466_v41, %v7465_v56 }
 0xb4f   :  { %9572 = vmatpush3.bf16.msra.mxu0 %v12462_v25  ;;  %9552 = vmatprep.subr.bf16.mxu1 %v13182_v8  ;;  %v12758_v25 = vpack.c.bf16 %v7464_v38, %v7463_v21 }
 0xb50   :  { %9573 = vmatprep.subr.bf16.mxu0 %v13182_v8  ;;  %8257 = vmatprep.mubr.msk.f32.mxu0 %vm9956_vm11, %v13199_v27 }
 0xb51   :  { %8177 = vmatmul.mubr.msk.f32.vlgmr.msra.gmra.mrb[50].mxu1 %vm4730_vm13, %v12629_v22  ;;  %v7468_v22 = vld [vmem:[%s13114_s17 + $0x1b8] sm:$0xff] }
 0xb52   :  { %9554 = vmatpush3.bf16.msra.mxu1 %v12742_v51  ;;  %8230 = vmatprep.mubr.msk.f32.mxu1 %vm9956_vm11, %v13199_v27 }
 0xb53   :  { %9575 = vmatpush3.bf16.msra.mxu0 %v12483_v40  ;;  %9555 = vmatprep.subr.bf16.mxu1 %v13182_v8  ;;  %v7467_v40 = vld [vmem:[%s13114_s17 + $0x1b0] sm:$0xff] }
 0xb54   :  { %9576 = vmatprep.subr.bf16.mxu0 %v13182_v8  ;;  %v9562_v3 = vpack.c.bf16 %v7468_v22, %v7467_v40 }
 0xb56   :  { %9557 = vmatpush3.bf16.msra.mxu1 %v12758_v25 }
 0xb57   :  { %9578 = vmatpush3.bf16.msra.mxu0 %v12504_v61  ;;  %9558 = vmatprep.subr.bf16.mxu1 %v13182_v8  ;;  %v7469_v61 = vld [vmem:[%s13114_s17 + $0x1c0] sm:$0xff] }
 0xb58   :  { %9579 = vmatprep.subr.bf16.mxu0 %v13182_v8  ;;  %v9565_v13 = vpack.c.bf16 %v7470_v10, %v7469_v61 }
 0xb5a   :  { %9560 = vmatpush3.bf16.msra.mxu1 %v12772_v62 }
 0xb5b   :  { %9581 = vmatpush3.bf16.msra.mxu0 %v12526_v26  ;;  %9561 = vmatprep.subr.bf16.mxu1 %v13182_v8  ;;  %v7471_v26 = vld [vmem:[%s13114_s17 + $0x1d0] sm:$0xff] }
 0xb5c   :  { %9582 = vmatprep.subr.bf16.mxu0 %v13182_v8  ;;  %v9568_v31 = vpack.c.bf16 %v7472_v4, %v7471_v26 }
 0xb5e   :  { %9563 = vmatpush3.bf16.msra.mxu1 %v9562_v3 }
 0xb5f   :  { %9584 = vmatpush3.bf16.msra.mxu0 %v12543_v29  ;;  %9564 = vmatprep.subr.bf16.mxu1 %v13182_v8  ;;  %v5629_v29 = vld [vmem:[%s13118_s21 + $0x18] sm:$0xff] }
 0xb60   :  { %9585 = vmatprep.subr.bf16.mxu0 %v13182_v8 }
 0xb62   :  { %9566 = vmatpush3.bf16.msra.mxu1 %v9565_v13 }
 0xb63   :  { %9587 = vmatpush3.bf16.msra.mxu0 %v12577_v45  ;;  %9567 = vmatprep.subr.bf16.mxu1 %v13182_v8  ;;  %v5631_v45 = vld [vmem:[%s13118_s21 + $0x28] sm:$0xff] }
 0xb64   :  { %9606 = vmatprep.subr.bf16.mxu0 %v13182_v8 }
 0xb66   :  { %9569 = vmatpush3.bf16.msra.mxu1 %v9568_v31  ;;  %8258 = vmatmul.mubr.msk.f32.vlgmr.msra.gmra.mrb[60].mxu0 %vm4730_vm13, %v12662_v34 }
 0xb67   :  { %9608 = vmatpush3.bf16.msra.mxu0 %v12598_v6  ;;  %9588 = vmatprep.subr.bf16.mxu1 %v13182_v8  ;;  %v5632_v6 = vld [vmem:[%s13118_s21 + $0x30] sm:$0xff] }
 0xb68   :  { %9609 = vmatprep.subr.bf16.mxu0 %v13182_v8  ;;  %8311 = vmatprep.mubr.msk.f32.mxu0 %vm9956_vm11, %v13199_v27 }
 0xb69   :  { %8231 = vmatmul.mubr.msk.f32.vlgmr.msra.gmra.mrb[52].mxu1 %vm4730_vm13, %v12632_v18 }
 0xb6a   :  { %9590 = vmatpush3.bf16.msra.mxu1 %v12477_v24  ;;  %8284 = vmatprep.mubr.msk.f32.mxu1 %vm9956_vm11, %v13199_v27  ;;  %v5626_v24 = vld [vmem:[%s13118_s21] sm:$0xff] }
 0xb6b   :  { %9611 = vmatpush3.bf16.msra.mxu0 %v12613_v43  ;;  %9591 = vmatprep.subr.bf16.mxu1 %v13182_v8 }
 0xb6c   :  { %9612 = vmatprep.subr.bf16.mxu0 %v13182_v8 }
 0xb6e   :  { %9593 = vmatpush3.bf16.msra.mxu1 %v12498_v35  ;;  %v5627_v35 = vld [vmem:[%s13118_s21 + $0x8] sm:$0xff] }
 0xb6f   :  { %9614 = vmatpush3.bf16.msra.mxu0 %v12674_v46  ;;  %9594 = vmatprep.subr.bf16.mxu1 %v13182_v8 }
 0xb70   :  { %9615 = vmatprep.subr.bf16.mxu0 %v13182_v8 }
 0xb72   :  { %9596 = vmatpush3.bf16.msra.mxu1 %v12520_v58  ;;  %v5628_v58 = vld [vmem:[%s13118_s21 + $0x10] sm:$0xff] }
 0xb73   :  { %9617 = vmatpush3.bf16.msra.mxu0 %v12694_v36  ;;  %9597 = vmatprep.subr.bf16.mxu1 %v13182_v8 }
 0xb74   :  { %9618 = vmatprep.subr.bf16.mxu0 %v13182_v8 }
 0xb76   :  { %9599 = vmatpush3.bf16.msra.mxu1 %v12540_v7  ;;  %v9661_v7 = vpack.c.bf16 %v5627_v35, %v5626_v24 }
 0xb77   :  { %9620 = vmatpush3.bf16.msra.mxu0 %v12714_v2  ;;  %9600 = vmatprep.subr.bf16.mxu1 %v13182_v8 }
 0xb78   :  { %9621 = vmatprep.subr.bf16.mxu0 %v13182_v8 }
 0xb7a   :  { %9602 = vmatpush3.bf16.msra.mxu1 %v12554_v5  ;;  %v9664_v5 = vpack.c.bf16 %v5629_v29, %v5628_v58 }
 0xb7b   :  { %9623 = vmatpush3.bf16.msra.mxu0 %v12728_v44  ;;  %9603 = vmatprep.subr.bf16.mxu1 %v13182_v8 }
 0xb7c   :  { %9642 = vmatprep.subr.bf16.mxu0 %v13182_v8 }
 0xb7e   :  { %9605 = vmatpush3.bf16.msra.mxu1 %v12566_v14  ;;  %8312 = vmatmul.mubr.msk.f32.vlgmr.msra.gmra.mrb[62].mxu0 %vm4730_vm13, %v12665_v33  ;;  %v5630_v14 = vld [vmem:[%s13118_s21 + $0x20] sm:$0xff] }
 0xb7f   :  { %9644 = vmatpush3.bf16.msra.mxu0 %v12742_v51  ;;  %9624 = vmatprep.subr.bf16.mxu1 %v13182_v8 }
 0xb80   :  { %9645 = vmatprep.subr.bf16.mxu0 %v13182_v8  ;;  %8365 = vmatprep.mubr.msk.f32.mxu0 %vm9956_vm11, %v13199_v27 }
 0xb81   :  { %8285 = vmatmul.mubr.msk.f32.vlgmr.msra.gmra.mrb[54].mxu1 %vm4730_vm13, %v12634_v60 }
 0xb82   :  { %9626 = vmatpush3.bf16.msra.mxu1 %v12593_v52  ;;  %8338 = vmatprep.mubr.msk.f32.mxu1 %vm9956_vm11, %v13199_v27  ;;  %v9667_v52 = vpack.c.bf16 %v5631_v45, %v5630_v14 }
 0xb83   :  { %9647 = vmatpush3.bf16.msra.mxu0 %v12758_v25  ;;  %9627 = vmatprep.subr.bf16.mxu1 %v13182_v8 }
 0xb84   :  { %9648 = vmatprep.subr.bf16.mxu0 %v13182_v8 }
 0xb86   :  { %9629 = vmatpush3.bf16.msra.mxu1 %v12611_v28  ;;  %v5633_v28 = vld [vmem:[%s13118_s21 + $0x38] sm:$0xff] }
 0xb87   :  { %9650 = vmatpush3.bf16.msra.mxu0 %v12772_v62  ;;  %9630 = vmatprep.subr.bf16.mxu1 %v13182_v8  ;;  %v9670_v18 = vpack.c.bf16 %v5633_v28, %v5632_v6 }
 0xb88   :  { %9651 = vmatprep.subr.bf16.mxu0 %v13182_v8 }
 0xb8a   :  { %9632 = vmatpush3.bf16.msra.mxu1 %v12646_v12 }
 0xb8b   :  { %9653 = vmatpush3.bf16.msra.mxu0 %v9562_v3  ;;  %9633 = vmatprep.subr.bf16.mxu1 %v13182_v8 }
 0xb8c   :  { %9654 = vmatprep.subr.bf16.mxu0 %v13182_v8 }
 0xb8e   :  { %9635 = vmatpush3.bf16.msra.mxu1 %v12678_v54 }
 0xb8f   :  { %9656 = vmatpush3.bf16.msra.mxu0 %v9565_v13  ;;  %9636 = vmatprep.subr.bf16.mxu1 %v13182_v8 }
 0xb90   :  { %9657 = vmatprep.subr.bf16.mxu0 %v13182_v8 }
 0xb92   :  { %9638 = vmatpush3.bf16.msra.mxu1 %v12698_v47 }
 0xb93   :  { %9659 = vmatpush3.bf16.msra.mxu0 %v9568_v31  ;;  %9639 = vmatprep.subr.bf16.mxu1 %v13182_v8 }
 0xb94   :  { %9672 = vmatprep.subr.bf16.mxu0 %v13182_v8 }
 0xb96   :  { %9641 = vmatpush3.bf16.msra.mxu1 %v12718_v23  ;;  %8366 = vmatmul.mubr.msk.f32.vlgmr.msra.gmra.mrb[64].mxu0 %vm4730_vm13, %v12668_v15 }
 0xb97   :  { %9660 = vmatprep.subr.bf16.mxu1 %v13182_v8  ;;  %8403 = vmatprep.mubr.msk.f32.mxu0 %vm9956_vm11, %v13199_v27 }
 0xb98   :  { %9674 = vmatpush3.bf16.msra.mxu0 %v9661_v7 }
 0xb99   :  { %8339 = vmatmul.mubr.msk.f32.vlgmr.msra.gmra.mrb[56].mxu1 %vm4730_vm13, %v12671_v19  ;;  %9675 = vmatprep.subr.bf16.mxu0 %v13182_v8  ;;  %v7474_v19 = vld [vmem:[%s13115_s18] ss:$0 sm:$0xff] }
 0xb9a   :  { %8384 = vmatprep.mubr.msk.f32.mxu1 %vm9956_vm11, %v13199_v27  ;;  %9662 = vmatpush3.bf16.msra.mxu1 %v9661_v7 }
 0xb9b   :  { %9663 = vmatprep.subr.bf16.mxu1 %v13182_v8 }
 0xb9c   :  { %9677 = vmatpush3.bf16.msra.mxu0 %v9664_v5 }
 0xb9d   :  { %9678 = vmatprep.subr.bf16.mxu0 %v13182_v8 }
 0xb9e   :  { %9665 = vmatpush3.bf16.msra.mxu1 %v9664_v5 }
 0xb9f   :  { %9666 = vmatprep.subr.bf16.mxu1 %v13182_v8 }
 0xba0   :  { %9680 = vmatpush3.bf16.msra.mxu0 %v9667_v52 }
 0xba1   :  { %9681 = vmatprep.subr.bf16.mxu0 %v13182_v8 }
 0xba2   :  { %9668 = vmatpush3.bf16.msra.mxu1 %v9667_v52 }
 0xba3   :  { %9669 = vmatprep.subr.bf16.mxu1 %v13182_v8 }
 0xba4   :  { %9683 = vmatpush3.bf16.msra.mxu0 %v9670_v18 }
 0xba5   :  { %9684 = vmatprep.subr.bf16.mxu0 %v13182_v8 }
 0xba6   :  { %9671 = vmatpush3.bf16.msra.mxu1 %v9670_v18 }
 0xba7   :  { %8406 = vmatprep.subr.mxu1 %v13199_v27 }
 0xc09   :  { %v4871_v43 = vpop.f32.mrb[56].mxu0 }
 0xc0a   :  { %v8151_v60 = vpop.f32.mrb[57].mxu0 }
 0xc0c   :  { %v4799_v42 = vpop.f32.mrb[48].mxu1 }
 0xc0d   :  { %v4872_v50 = vadd.f32 %v4871_v43, %v4799_v42  ;;  %v8124_v53 = vpop.f32.mrb[49].mxu1 }
 0xc0e   :  { %v5792_v53 = vld [vmem:[%s13119_s22] sm:$0xff] }
 0xc21   :  { %v5048_v12 = vpop.f32.mrb[58].mxu0 }
 0xc22   :  { %v8205_v37 = vpop.f32.mrb[59].mxu0 }
 0xc24   :  { %v4959_v48 = vpop.f32.mrb[50].mxu1 }
 0xc25   :  { %v4963_v59 = vadd.f32 %v4959_v48, %v4872_v50  ;;  %v8178_v49 = vpop.f32.mrb[51].mxu1 }
 0xc27   :  { %v5052_v34 = vadd.f32 %v5048_v12, %v4963_v59 }
 0xc39   :  { %v5266_v33 = vpop.f32.mrb[60].mxu0 }
 0xc3a   :  { %v8259_v15 = vpop.f32.mrb[61].mxu0 }
 0xc3c   :  { %v5137_v46 = vpop.f32.mrb[52].mxu1 }
 0xc3d   :  { %v5141_v54 = vadd.f32 %v5137_v46, %v5052_v34  ;;  %v8232_v32 = vpop.f32.mrb[53].mxu1  ;;  %v5787_v46 = vld [vmem:[%s13116_s19] sm:$0x1] }
 0xc3f   :  { %v5148_v30 = vadd.f32 %v7474_v19, %v5141_v54 }
 0xc41   :  { %v5149_v11 = vmax.f32 %v5148_v30, 0.0  ;;  %v5789_v30 = vld [vmem:[%s13117_s20] sm:$0x1] }
 0xc43   :  { %5151 = vst.msk [vmem:[#allocation2] sm:$0xff] %vm5150_vm14, %v5149_v11  ;;  %v5160_v0 = vmul.f32 %v5149_v11, %v5149_v11  ;;  %v5152_v2 = vsel %vm5150_vm14, %v5149_v11, 0.0 }
 0xc44   :  { %v5153_v44 = vrot.slane %v5152_v2, 4 }
 0xc45   :  { %v5161_v20 = vsel %vm5150_vm14, %v5160_v0, 0.0 }
 0xc46   :  { %v5162_v21 = vrot.slane %v5161_v20, 4  ;;  %v5154_v25 = vadd.f32 %v5153_v44, %v5152_v2 }
 0xc48   :  { %v5163_v41 = vadd.f32 %v5162_v21, %v5161_v20  ;;  %v5155_v40 = vrot.slane %v5154_v25, 2 }
 0xc4a   :  { %v5164_v61 = vrot.slane %v5163_v41, 2  ;;  %v5156_v26 = vadd.f32 %v5155_v40, %v5154_v25 }
 0xc4c   :  { %v5165_v24 = vadd.f32 %v5164_v61, %v5163_v41  ;;  %v5157_v7 = vrot.slane %v5156_v26, 1 }
 0xc4e   :  { %v5166_v14 = vrot.slane %v5165_v24, 1  ;;  %v5158_v6 = vadd.f32 %v5157_v7, %v5156_v26  ;;  %v5942_v26 = vld [vmem:[%s13121_s24 + $0x10] sm:$0xff] }
 0xc50   :  { %v5167_v60 = vadd.f32 %v5166_v14, %v5165_v24 }
 0xc51   :  { %v5425_v63 = vpop.f32.mrb[62].mxu0 }
 0xc52   :  { %v8313_v36 = vpop.f32.mrb[63].mxu0 }
 0xc54   :  { %v5338_v47 = vpop.f32.mrb[54].mxu1 }
 0xc55   :  { %v5339_v17 = vadd.f32 %v5338_v47, %v5266_v33  ;;  %v8286_v9 = vpop.f32.mrb[55].mxu1 }
 0xc56   :  { %v5948_v9 = vld [vmem:[#allocation2] sm:$0xff] }
 0xc57   :  { %v5429_v39 = vadd.f32 %v5425_v63, %v5339_v17 }
 0xc69   :  { %v5601_v23 = vpop.f32.mrb[64].mxu0 }
 0xc6a   :  { %v8367_v57 = vpop.f32.mrb[65].mxu0 }
 0xc6c   :  { %v5513_v1 = vpop.f32.mrb[56].mxu1 }
 0xc6d   :  { %v5517_v55 = vadd.f32 %v5513_v1, %v5429_v39  ;;  %v8340_v51 = vpop.f32.mrb[57].mxu1 }
 0xc6f   :  { %v5605_v38 = vadd.f32 %v5601_v23, %v5517_v55 }
 0xc71   :  { %v5606_v56 = vadd.f32 %v7474_v19, %v5605_v38 }
 0xc73   :  { %v5607_v62 = vmax.f32 %v5606_v56, 0.0 }
 0xc75   :  { %5608 = vst.msk [vmem:[#allocation2 + $0x40] sm:$0xff] %vm5150_vm14, %v5607_v62  ;;  %v5609_v22 = vsel %vm5150_vm14, %v5607_v62, 0.0  ;;  %v5617_v3 = vmul.f32 %v5607_v62, %v5607_v62 }
 0xc76   :  { %v5610_v10 = vrot.slane %v5609_v22, 4 }
 0xc77   :  { %v5618_v13 = vsel %vm5150_vm14, %v5617_v3, 0.0 }
 0xc78   :  { %v5611_v4 = vadd.f32 %v5610_v10, %v5609_v22  ;;  %v5619_v31 = vrot.slane %v5618_v13, 4  ;;  %v5940_v10 = vld [vmem:[%s13121_s24] sm:$0xff] }
 0xc7a   :  { %v5612_v35 = vrot.slane %v5611_v4, 2  ;;  %v5620_v58 = vadd.f32 %v5619_v31, %v5618_v13  ;;  %v5941_v13 = vld [vmem:[%s13121_s24 + $0x8] sm:$0xff]  ;;  %v5943_v31 = vld [vmem:[%s13121_s24 + $0x18] sm:$0xff] }
 0xc7b   :  { %v9688_v24 = vpack.c.bf16 %v5943_v31, %v5942_v26 }
 0xc7c   :  { %v5613_v29 = vadd.f32 %v5612_v35, %v5611_v4  ;;  %v5621_v5 = vrot.slane %v5620_v58, 2  ;;  %v6126_v39 = vld [vmem:[#allocation2 + $0x40] sm:$0xff]  ;;  %v9685_v4 = vpack.c.bf16 %v5941_v13, %v5940_v10 }
 0xc7d   :  { %v5944_v35 = vld [vmem:[%s13121_s24 + $0x20] sm:$0xff] }
 0xc7e   :  { %v5614_v45 = vrot.slane %v5613_v29, 1  ;;  %v5622_v52 = vadd.f32 %v5621_v5, %v5620_v58  ;;  %v5945_v58 = vld [vmem:[%s13121_s24 + $0x28] sm:$0xff]  ;;  %v5947_v5 = vld [vmem:[%s13121_s24 + $0x38] sm:$0xff]  ;;  %v6292_v10 = vld [vmem:[%s13123_s26] sm:$0x1] }
 0xc7f   :  { %v9691_v7 = vpack.c.bf16 %v5945_v58, %v5944_v35 }
 0xc80   :  { %v5615_v28 = vadd.f32 %v5614_v45, %v5613_v29  ;;  %v5623_v43 = vrot.slane %v5622_v52, 1  ;;  %v5946_v29 = vld [vmem:[%s13121_s24 + $0x30] sm:$0xff] }
 0xc81   :  { %v9694_v14 = vpack.c.bf16 %v5947_v5, %v5946_v29 }
 0xc82   :  { %v5616_v18 = vadd.f32 %v5615_v28, %v5158_v6  ;;  %v5624_v42 = vadd.f32 %v5623_v43, %v5622_v52 }
 0xc84   :  { %8385 = vmatmul.mubr.msk.f32.vlgmr.msra.gmra.mrb[58].mxu1 %vm5150_vm14, %v5616_v18  ;;  %v5625_v50 = vadd.f32 %v5624_v42, %v5167_v60  ;;  %v6293_v60 = vld [vmem:[%s13122_s25] sm:$0xff]  ;;  %v6294_v42 = vld [vmem:[%s13122_s25 + $0x8] sm:$0xff] }
 0xc85   :  { %8408 = vmatprep.mubr.msk.f32.mxu1 %vm9956_vm11, %v13199_v27  ;;  %8407 = vmatpush3.msra.mxu1 %v5792_v53 }
 0xc86   :  { %8404 = vmatmul.mubr.msk.f32.vlgmr.msra.gmra.mrb[66].mxu0 %vm5150_vm14, %v5625_v50  ;;  %8411 = vmatprep.subr.mxu1 %v13199_v27 }
 0xc87   :  { %8437 = vmatprep.mubr.msk.f32.mxu0 %vm9956_vm11, %v13199_v27  ;;  %9686 = vmatpush3.bf16.msra.mxu0 %v9685_v4 }
 0xc88   :  { %9687 = vmatprep.subr.bf16.mxu0 %v13182_v8 }
 0xc8b   :  { %9689 = vmatpush3.bf16.msra.mxu0 %v9688_v24 }
 0xc8c   :  { %9690 = vmatprep.subr.bf16.mxu0 %v13182_v8 }
 0xc8f   :  { %9692 = vmatpush3.bf16.msra.mxu0 %v9691_v7 }
 0xc90   :  { %9693 = vmatprep.subr.bf16.mxu0 %v13182_v8 }
 0xc93   :  { %9695 = vmatpush3.bf16.msra.mxu0 %v9694_v14 }
 0xc94   :  { %9708 = vmatprep.subr.bf16.mxu0 %v13182_v8 }
 0xd57   :  { %v5703_v12 = vpop.f32.mrb[58].mxu1 }
 0xd58   :  { %v5708_v37 = vmul.f32 0.0078125, %v5703_v12  ;;  %v8386_v48 = vpop.f32.mrb[59].mxu1 }
 0xd59   :  { %v5778_v59 = vpop.f32.mrb[66].mxu0 }
 0xd5a   :  { %v5783_v49 = vmul.f32 %v5708_v37, %v5708_v37  ;;  %v5782_v34 = vmul.f32 0.0078125, %v5778_v59  ;;  %v8405_v33 = vpop.f32.mrb[67].mxu0 }
 0xd5b   :  { %v6296_v33 = vld [vmem:[%s13122_s25 + $0x18] sm:$0xff] }
 0xd5c   :  { %v5784_v15 = vsub.f32 %v5782_v34, %v5783_v49  ;;  %v6295_v34 = vld [vmem:[%s13122_s25 + $0x10] sm:$0xff] }
 0xd5e   :  { %v5785_v19 = vadd.f32 1e-05, %v5784_v15 }
 0xd60   :  { %9925 = vrsqrt.f32 %v5785_v19 }
 0xd6a   :  { %v9926_v54 = vpop.eup %9925 }
 0xd6b   :  { %v5788_v32 = vmul.f32 %v9926_v54, %v5787_v46  ;;  %v9712_v54 = vpack.c.bf16 %v6296_v33, %v6295_v34 }
 0xd6d   :  { %8409 = vmatmul.mubr.msk.f32.vlgmr.msra.gmra.mrb[60].mxu1 %vm1890_vm7, %v5788_v32  ;;  %v5790_v11 = vmul.f32 %v5788_v32, %v5708_v37  ;;  %v9709_v37 = vpack.c.bf16 %v6294_v42, %v6293_v60 }
 0xd6e   :  { %8412 = vmatpush3.msra.mxu1 %v5792_v53  ;;  %8413 = vmatprep.mubr.msk.f32.mxu1 %vm9956_vm11, %v13199_v27 }
 0xd6f   :  { %v5791_v63 = vsub.f32 %v5789_v30, %v5790_v11  ;;  %8416 = vmatprep.subr.mxu1 %v13199_v27  ;;  %v7537_v30 = vld [vmem:[%s13122_s25 + $0x20] sm:$0xff]  ;;  %v7538_v11 = vld [vmem:[%s13122_s25 + $0x28] sm:$0xff] }
 0xd71   :  { %8414 = vmatmul.mubr.msk.f32.vlgmr.msra.gmra.mrb[62].mxu1 %vm1890_vm7, %v5791_v63  ;;  %v9715_v63 = vpack.c.bf16 %v7538_v11, %v7537_v30 }
 0xd72   :  { %8418 = vmatprep.mubr.msk.f32.mxu1 %vm9956_vm11, %v13199_v27 }
 0xe40   :  { %v5862_v36 = vpop.f32.mrb[60].mxu1 }
 0xe41   :  { %v5952_v47 = vrot.slane %v5862_v36, %v13202_v16  ;;  %v8410_v17 = vpop.f32.mrb[61].mxu1  ;;  %v7539_v36 = vld [vmem:[%s13122_s25 + $0x30] sm:$0xff] }
 0xe43   :  { %v5953_v2 = vmul.f32 %v5952_v47, %v5948_v9  ;;  %v6127_v23 = vmul.f32 %v6126_v39, %v5952_v47  ;;  %v7540_v47 = vld [vmem:[%s13122_s25 + $0x38] sm:$0xff] }
 0xe44   :  { %v5935_v0 = vpop.f32.mrb[62].mxu1  ;;  %v9718_v39 = vpack.c.bf16 %v7540_v47, %v7539_v36 }
 0xe45   :  { %v5957_v57 = vrot.slane %v5935_v0, %v13202_v16  ;;  %v8415_v20 = vpop.f32.mrb[63].mxu1  ;;  %v5939_v16 = vld [vmem:[%s13120_s23] sm:$0xf] }
 0xe46   :  { %v7542_v0 = vld [vmem:[%s13122_s25 + $0x40] sm:$0xff] }
 0xe47   :  { %v5958_v44 = vadd.f32 %v5957_v57, %v5953_v2  ;;  %v6128_v1 = vadd.f32 %v6127_v23, %v5957_v57  ;;  %v7543_v2 = vld [vmem:[%s13122_s25 + $0x48] sm:$0xff] }
 0xe48   :  { %v9721_v20 = vpack.c.bf16 %v7543_v2, %v7542_v0 }
 0xe49   :  { %v5960_v55 = vrot.slane %v5958_v44, 7  ;;  %v5963_v51 = vrot.slane %v5958_v44, 1  ;;  %v6130_v21 = vrot.slane %v6128_v1, 7  ;;  %v6133_v38 = vrot.slane %v6128_v1, 1 }
 0xe4b   :  { %v5962_v25 = vsel %vm2154_vm8, -1e+30, %v5960_v55  ;;  %v5965_v56 = vsel %vm161_vm4, %v5963_v51, -1e+30  ;;  %v6132_v41 = vsel %vm2154_vm8, -1e+30, %v6130_v21 }
 0xe4c   :  { %v5966_v62 = vmax.f32 %v5962_v25, %v5965_v56  ;;  %v6135_v40 = vsel %vm161_vm4, %v6133_v38, -1e+30  ;;  %v7545_v55 = vld [vmem:[%s13122_s25 + $0x58] sm:$0xff]  ;;  %v7547_v38 = vld [vmem:[%s13122_s25 + $0x60] sm:$0xff]  ;;  %v7548_v25 = vld [vmem:[%s13122_s25 + $0x68] sm:$0xff] }
 0xe4d   :  { %v6136_v22 = vmax.f32 %v6132_v41, %v6135_v40  ;;  %v9727_v56 = vpack.c.bf16 %v7548_v25, %v7547_v38  ;;  %v7550_v40 = vld [vmem:[%s13122_s25 + $0x78] sm:$0xff] }
 0xe4e   :  { %v5967_v3 = vmax.f32 %v5958_v44, %v5966_v62  ;;  %v7549_v62 = vld [vmem:[%s13122_s25 + $0x70] sm:$0xff] }
 0xe4f   :  { %v6137_v61 = vmax.f32 %v6128_v1, %v6136_v22  ;;  %v7544_v1 = vld [vmem:[%s13122_s25 + $0x50] sm:$0xff]  ;;  %v9730_v22 = vpack.c.bf16 %v7550_v40, %v7549_v62 }
 0xe50   :  { %8417 = vmatpush3.msra.mxu1 %v5967_v3  ;;  %v9724_v51 = vpack.c.bf16 %v7545_v55, %v7544_v1 }
 0xe51   :  { %8419 = vmatmul.mubr.msk.f32.vlgmr.msra.gmra.mrb[64].mxu1 %vm1890_vm7, %v5939_v16  ;;  %8440 = vmatprep.subr.mxu1 %v13199_v27 }
 0xe52   :  { %8441 = vmatpush3.msra.mxu1 %v6137_v61  ;;  %8442 = vmatprep.mubr.msk.f32.mxu1 %vm9956_vm11, %v13199_v27 }
 0xe53   :  { %9696 = vmatprep.subr.bf16.mxu1 %v13182_v8 }
 0xe55   :  { %8443 = vmatmul.mubr.msk.f32.vlgmr.msra.gmra.mrb[66].mxu1 %vm1890_vm7, %v5939_v16 }
 0xe56   :  { %8461 = vmatprep.mubr.msk.f32.mxu1 %vm9956_vm11, %v13199_v27  ;;  %9698 = vmatpush3.bf16.msra.mxu1 %v9685_v4 }
 0xe57   :  { %9699 = vmatprep.subr.bf16.mxu1 %v13182_v8 }
 0xe5a   :  { %9701 = vmatpush3.bf16.msra.mxu1 %v9688_v24 }
 0xe5b   :  { %9702 = vmatprep.subr.bf16.mxu1 %v13182_v8 }
 0xe5e   :  { %9704 = vmatpush3.bf16.msra.mxu1 %v9691_v7 }
 0xe5f   :  { %9705 = vmatprep.subr.bf16.mxu1 %v13182_v8 }
 0xe62   :  { %9707 = vmatpush3.bf16.msra.mxu1 %v9694_v14 }
 0xe63   :  { %9732 = vmatprep.subr.bf16.mxu1 %v13182_v8 }
 0xf24   :  { %v6037_v45 = vpop.f32.mrb[64].mxu1 }
 0xf25   :  { %6046 = vrot.lane.b32.xlu1 %v6037_v45, %s9954_s0  ;;  %6042 = vrot.lane.b32.xlu0 %v6037_v45, %s9953_s28  ;;  %v8420_v52 = vpop.f32.mrb[65].mxu1 }
 0xf28   :  { %v6204_v6 = vpop.f32.mrb[66].mxu1 }
 0xf29   :  { %6213 = vrot.lane.b32.xlu1 %v6204_v6, %s9954_s0  ;;  %6209 = vrot.lane.b32.xlu0 %v6204_v6, %s9953_s28  ;;  %v8444_v28 = vpop.f32.mrb[67].mxu1  ;;  %s9957_s0 = smov [#allocation3]  }
 0xf2a   :  { %s6929_s11 = sshll.u32 %s9957_s0, 4  ;;  %s6930_s11 = int_to_ptr.vmem [resolvable:$true] %s6929_s11 }
 0xf2b   :  { %s9927_s17 = scalar_lea.vmem %s6930_s11, 32  ;;  %p9932_p1 = scmp.lt.s32.totalorder %s6930_s11, %s6930_s11 }
 0xf2c   :  { %p9928_p0 = scmp.ne.s32.totalorder %s6930_s11, %s9927_s17  ;;  %p9933_p2 = scmp.lt.s32.totalorder %s9927_s17, %s9927_s17 }
 0xf2e   :  { %p9934_p3 = por %p9933_p2, %p9932_p1 }
 0xf30   :  { %p9935_p4 = pnand %p9934_p3, %p9928_p0 }
 0xf97   :  { %v6047_v43 = vpop.permute.xlu1 %6046  ;;  %v6043_v18 = vpop.permute.xlu0 %6042 }
 0xf98   :  { %v6050_v50 = vsel %vm6049_vm15, %v6047_v43, -1e+30  ;;  %v6045_v53 = vsel %vm1890_vm7, -1e+30, %v6043_v18 }
 0xf99   :  { %v6051_v12 = vmax.f32 %v6045_v53, %v6050_v50 }
 0xf9b   :  { %v6052_v48 = vmax.f32 %v6037_v45, %v6051_v12  ;;  %v6214_v59 = vpop.permute.xlu1 %6213  ;;  %v6210_v49 = vpop.permute.xlu0 %6209 }
 0xf9c   :  { %v6216_v15 = vsel %vm6049_vm15, %v6214_v59, -1e+30  ;;  %v6212_v19 = vsel %vm1890_vm7, -1e+30, %v6210_v49 }
 0xf9d   :  { %v6217_v46 = vmax.f32 %v6212_v19, %v6216_v15  ;;  %8438 = vmatmul.mubr.msk.f32.vlgmr.msra.gmra.mrb[68].mxu0 %vm5150_vm14, %v6052_v48 }
 0xf9e   :  { %9710 = vmatpush3.bf16.msra.mxu0 %v9709_v37  ;;  %8472 = vmatprep.mubr.msk.f32.mxu0 %vm9956_vm11, %v13199_v27 }
 0xf9f   :  { %v6218_v32 = vmax.f32 %v6204_v6, %v6217_v46  ;;  %9711 = vmatprep.subr.bf16.mxu0 %v13182_v8 }
 0xfa1   :  { %8462 = vmatmul.mubr.msk.f32.vlgmr.msra.gmra.mrb[68].mxu1 %vm5150_vm14, %v6218_v32 }
 0xfa2   :  { %9713 = vmatpush3.bf16.msra.mxu0 %v9712_v54  ;;  %9734 = vmatpush3.bf16.msra.mxu1 %v9709_v37 }
 0xfa3   :  { %9714 = vmatprep.subr.bf16.mxu0 %v13182_v8  ;;  %9735 = vmatprep.subr.bf16.mxu1 %v13182_v8 }
 0xfa4   :  { %8516 = vmatprep.mubr.msk.f32.mxu1 %vm9956_vm11, %v13199_v27 }
 0xfa6   :  { %9737 = vmatpush3.bf16.msra.mxu1 %v9712_v54 }
 0xfa7   :  { %9738 = vmatprep.subr.bf16.mxu1 %v13182_v8 }
0x1070   :  { %v6122_v17 = vpop.f32.mrb[68].mxu0 }
0x1071   :  { %v8439_v9 = vpop.f32.mrb[69].mxu0  ;;  %8473 = vmatmul.mubr.msk.f32.vlgmr.msra.gmra.mrb[70].mxu0 %vm2219_vm9, %v6122_v17  ;;  %v6376_v44 = vrot.slane %v6122_v17, 1  ;;  %v6455_v41 = vrot.slane %v6122_v17, 2  ;;  %v6534_v16 = vrot.slane %v6122_v17, 3 }
0x1072   :  { %9716 = vmatpush3.bf16.msra.mxu0 %v9715_v63  ;;  %8483 = vmatprep.mubr.msk.f32.mxu0 %vm9956_vm11, %v13199_v27 }
0x1073   :  { %9717 = vmatprep.subr.bf16.mxu0 %v13182_v8 }
0x1074   :  { %v6288_v23 = vpop.f32.mrb[68].mxu1 }
0x1075   :  { %v8463_v57 = vpop.f32.mrb[69].mxu1  ;;  %8517 = vmatmul.mubr.msk.f32.vlgmr.msra.gmra.mrb[70].mxu1 %vm2219_vm9, %v6288_v23  ;;  %v6692_v21 = vrot.slane %v6288_v23, 1  ;;  %v6770_v3 = vrot.slane %v6288_v23, 2  ;;  %v6848_v61 = vrot.slane %v6288_v23, 3 }
0x1076   :  { %9719 = vmatpush3.bf16.msra.mxu0 %v9718_v39  ;;  %9740 = vmatpush3.bf16.msra.mxu1 %v9715_v63 }
0x1077   :  { %9720 = vmatprep.subr.bf16.mxu0 %v13182_v8  ;;  %9741 = vmatprep.subr.bf16.mxu1 %v13182_v8 }
0x1078   :  { %8527 = vmatprep.mubr.msk.f32.mxu1 %vm9956_vm11, %v13199_v27 }
0x1079   :  { %8484 = vmatmul.mubr.msk.f32.vlgmr.msra.gmra.mrb[70].mxu0 %vm2219_vm9, %v6376_v44 }
0x107a   :  { %9722 = vmatpush3.bf16.msra.mxu0 %v9721_v20  ;;  %9743 = vmatpush3.bf16.msra.mxu1 %v9718_v39 }
0x107b   :  { %9723 = vmatprep.subr.bf16.mxu0 %v13182_v8  ;;  %9744 = vmatprep.subr.bf16.mxu1 %v13182_v8 }
0x107c   :  { %8494 = vmatprep.mubr.msk.f32.mxu0 %vm9956_vm11, %v13199_v27 }
0x107d   :  { %8528 = vmatmul.mubr.msk.f32.vlgmr.msra.gmra.mrb[70].mxu1 %vm2219_vm9, %v6692_v21 }
0x107e   :  { %9725 = vmatpush3.bf16.msra.mxu0 %v9724_v51  ;;  %9746 = vmatpush3.bf16.msra.mxu1 %v9721_v20 }
0x107f   :  { %9726 = vmatprep.subr.bf16.mxu0 %v13182_v8  ;;  %9747 = vmatprep.subr.bf16.mxu1 %v13182_v8 }
0x1080   :  { %8538 = vmatprep.mubr.msk.f32.mxu1 %vm9956_vm11, %v13199_v27 }
0x1081   :  { %8495 = vmatmul.mubr.msk.f32.vlgmr.msra.gmra.mrb[70].mxu0 %vm2219_vm9, %v6455_v41 }
0x1082   :  { %9728 = vmatpush3.bf16.msra.mxu0 %v9727_v56  ;;  %9749 = vmatpush3.bf16.msra.mxu1 %v9724_v51 }
0x1083   :  { %9729 = vmatprep.subr.bf16.mxu0 %v13182_v8  ;;  %9750 = vmatprep.subr.bf16.mxu1 %v13182_v8 }
0x1084   :  { %8505 = vmatprep.mubr.msk.f32.mxu0 %vm9956_vm11, %v13199_v27 }
0x1085   :  { %8539 = vmatmul.mubr.msk.f32.vlgmr.msra.gmra.mrb[70].mxu1 %vm2219_vm9, %v6770_v3 }
0x1086   :  { %9731 = vmatpush3.bf16.msra.mxu0 %v9730_v22  ;;  %9752 = vmatpush3.bf16.msra.mxu1 %v9727_v56 }
0x1087   :  { %9753 = vmatprep.subr.bf16.mxu1 %v13182_v8  ;;  %8549 = vmatprep.mubr.msk.f32.mxu1 %vm9956_vm11, %v13199_v27 }
0x1089   :  { %8506 = vmatmul.mubr.msk.f32.vlgmr.msra.gmra.mrb[70].mxu0 %vm2219_vm9, %v6534_v16 }
0x108a   :  { %9755 = vmatpush3.bf16.msra.mxu1 %v9730_v22 }
0x108d   :  { %8550 = vmatmul.mubr.msk.f32.vlgmr.msra.gmra.mrb[70].mxu1 %vm2219_vm9, %v6848_v61 }
0x115c   :  { %v6603_v13 = vpop.f32.mrb[70].mxu0 }
0x115d   :  { %v9756_v26 = vadd.f32 %v6603_v13, %v6292_v10  ;;  %v8507_v4 = vpop.f32.mrb[71].mxu0 }
0x115f   :  { %6609 = vst.msk [vmem:[#allocation3] sm:$0x1] %vm6608_vm0, %v9756_v26 }
0x1160   :  { %v6917_v8 = vpop.f32.mrb[70].mxu1 }
0x1161   :  { %v9757_v31 = vadd.f32 %v6917_v8, %v6292_v10  ;;  %v8551_v27 = vpop.f32.mrb[71].mxu1 }
0x1163   :  { %6922 = vst.msk [vmem:[#allocation3 + $0x1] sm:$0x1] %vm6608_vm0, %v9757_v31 }
0x1164   :  { %9938 = shalt.err (!%p9935_p4)
}
0x1165   :  { %s9939_s2 = scalar_lea.hbm %s13124_s27, 32 }
0x1166   :  { %p9940_p5 = scmp.ne.s32.totalorder %s13124_s27, %s9939_s2  ;;  %p9943_p6 = scmp.lt.u32.totalorder %s9939_s2, %s13124_s27 }
0x1168   :  { %p9945_p7 = pnand %p9943_p6, %p9940_p5 }
0x116a   :  { %9948 = shalt.err (!%p9945_p7)
}
0x116b   :  { %6932 = dma.vmem_to_hbm [thread:$0]  %s6930_s11, 32, %s13124_s27, [#allocation4]  }
0x116c   :  { %9949 = dma.done.wait [#allocation4], 32  }
0x116d   :  { %9950 = vsyncadd [#allocation4], 4294967264 }
0x116e   :  { %6936 = vsyncpa [#allocation4], 1 }

</bundles_post_ra>
